<compile_context>
chip_gen: v5e
topology: v5e:2x2
jax: 0.10.0
libtpu: 0.0.40
codegen_flags: <defaults>
</compile_context>

<pallas_src>
import jax
import jax.numpy as jnp
from jax import lax
from jax.experimental import pallas as pl
from jax.experimental.pallas import tpu as pltpu

EPS = 1e-3


def _conv_bn_kernel(p_ref, w_ref, gamma_ref, beta_ref, o_ref, sum_ref, sumsq_ref):
    # p_ref:     (TM, Kp)     bf16  im2col patch tile
    # w_ref:     (Kp, Cout)   bf16  reshaped conv weight (resident, constant map)
    # gamma_ref: (1, Cout)    f32
    # beta_ref:  (1, Cout)    f32
    # o_ref:     (HW, Cout)   f32   resident output block (written per-tile,
    #                               normalized in-place on the last step)
    # sum_ref/sumsq_ref: (1, Cout) f32 scratch accumulators
    i = pl.program_id(0)
    n = pl.num_programs(0)
    tm = p_ref.shape[0]

    @pl.when(i == 0)
    def _():
        sum_ref[...] = jnp.zeros_like(sum_ref)
        sumsq_ref[...] = jnp.zeros_like(sumsq_ref)

    # MXU matmul, f32 accumulation.
    acc = jnp.dot(p_ref[...], w_ref[...], preferred_element_type=jnp.float32)

    # Single streaming pass over the hot tile: store un-normalized conv output
    # into the resident output block and fold per-channel sum / sum-of-squares.
    row = pl.multiple_of(i * tm, tm)
    o_ref[pl.ds(row, tm), :] = acc
    sum_ref[...] += jnp.sum(acc, axis=0, keepdims=True)
    sumsq_ref[...] += jnp.sum(acc * acc, axis=0, keepdims=True)

    @pl.when(i == n - 1)
    def _():
        hw = o_ref.shape[0]
        inv_hw = 1.0 / hw
        mean = sum_ref[...] * inv_hw
        var = sumsq_ref[...] * inv_hw - mean * mean      # one-pass, f32
        scale = lax.rsqrt(var + EPS) * gamma_ref[...]    # (1, Cout)
        bias = beta_ref[...] - mean * scale              # (1, Cout)
        # Exactly one read + one write of the full (HW, Cout) block.
        o_ref[...] = o_ref[...] * scale + bias


def conv_bn_nchw(x_nchw, weight_oihw, gamma, beta, *, tm=112, k_pad_to=896):
    """x_nchw: (1, Cin, H, W); weight_oihw: (Cout, Cin, 3, 3). Returns NCHW f32."""
    N, Cin, H, W = x_nchw.shape
    Cout, _, KH, KW = weight_oihw.shape
    assert N == 1, "kernel written for batch 1 (matches reference module)"
    assert (KH, KW) == (3, 3)
    HW = H * W
    K = KH * KW * Cin
    assert HW % tm == 0
    Kp = max(K, k_pad_to)

    # ---- wrapper glue: bf16 first, then layout + padding + im2col ----
    x_hwc = jnp.transpose(x_nchw[0], (1, 2, 0)).astype(jnp.bfloat16)   # (H, W, Cin)
    x_pad = jnp.pad(x_hwc, ((1, 1), (1, 1), (0, 0)))                   # (H+2, W+2, Cin)

    # im2col patches, feature order (kh, kw, cin) to match the weight reshape;
    # zero-pad K to a multiple of 128 so the last lane tile / MXU pass is full.
    slabs = [x_pad[kh:kh + H, kw:kw + W, :] for kh in range(KH) for kw in range(KW)]
    if Kp > K:
        slabs.append(jnp.zeros((H, W, Kp - K), jnp.bfloat16))
    patches = jnp.concatenate(slabs, axis=-1).reshape(HW, Kp)          # (HW, Kp) bf16

    # (Cout, Cin, 3, 3) -> (3, 3, Cin, Cout) -> (K, Cout), zero-padded to Kp.
    w_mat = jnp.transpose(weight_oihw, (2, 3, 1, 0)).reshape(K, Cout)
    if Kp > K:
        w_mat = jnp.concatenate(
            [w_mat, jnp.zeros((Kp - K, Cout), w_mat.dtype)], axis=0)
    w_mat = w_mat.astype(jnp.bfloat16)                                 # (Kp, Cout)

    gamma2 = gamma.reshape(1, Cout).astype(jnp.float32)
    beta2 = beta.reshape(1, Cout).astype(jnp.float32)

    out_flat = pl.pallas_call(
        _conv_bn_kernel,
        out_shape=jax.ShapeDtypeStruct((HW, Cout), jnp.float32),
        grid_spec=pltpu.PrefetchScalarGridSpec(
            num_scalar_prefetch=0,
            grid=(HW // tm,),
            in_specs=[
                pl.BlockSpec((tm, Kp), lambda i: (i, 0)),      # streamed patches
                pl.BlockSpec((Kp, Cout), lambda i: (0, 0)),    # resident weight
                pl.BlockSpec((1, Cout), lambda i: (0, 0)),
                pl.BlockSpec((1, Cout), lambda i: (0, 0)),
            ],
            out_specs=pl.BlockSpec((HW, Cout), lambda i: (0, 0)),  # resident output
            scratch_shapes=[
                pltpu.VMEM((1, Cout), jnp.float32),   # per-channel sum
                pltpu.VMEM((1, Cout), jnp.float32),   # per-channel sum of squares
            ],
        ),
        compiler_params=pltpu.CompilerParams(
            dimension_semantics=("arbitrary",)),
    )(patches, w_mat, gamma2, beta2)

    # Module output is NCHW; in an NHWC pipeline this relayout would be fused
    # into the consumer instead.
    return jnp.transpose(out_flat.reshape(H, W, Cout), (2, 0, 1))[None]


def _reference(x_nchw, weight_oihw, gamma, beta, *, operand_dtype=jnp.float32):
    y = jax.lax.conv_general_dilated(
        x_nchw.astype(operand_dtype), weight_oihw.astype(operand_dtype),
        window_strides=(1, 1), padding=((1, 1), (1, 1)),
        dimension_numbers=("NCHW", "OIHW", "NCHW"),
        preferred_element_type=jnp.float32)
    mean = jnp.mean(y, axis=(0, 2, 3), keepdims=True)
    var = jnp.mean((y - mean) ** 2, axis=(0, 2, 3), keepdims=True)
    return (y - mean) * jax.lax.rsqrt(var + EPS) * gamma.reshape(1, -1, 1, 1) \
        + beta.reshape(1, -1, 1, 1)


if __name__ == "__main__":
    key = jax.random.PRNGKey(0)
    k_x, k_w, k_g, k_b = jax.random.split(key, 4)

    # Shapes fixed by the module: Conv2d(96 -> 384, 3x3), input (1, 96, 28, 28).
    Cin, Cout, H, W = 96, 384, 28, 28
    x = jax.random.normal(k_x, (1, Cin, H, W), dtype=jnp.float32)
    weight = jax.random.normal(k_w, (Cout, Cin, 3, 3), dtype=jnp.float32) * 0.05
    gamma = 1.0 + 0.1 * jax.random.normal(k_g, (Cout,), dtype=jnp.float32)
    beta = 0.1 * jax.random.normal(k_b, (Cout,), dtype=jnp.float32)

    out = jax.block_until_ready(conv_bn_nchw(x, weight, gamma, beta))
    assert out.shape == (1, Cout, H, W), out.shape

    # Primary check: reference with the same bf16 operand rounding as the
    # kernel's MXU matmul (f32 accumulation) -> only reassociation / one-pass
    # variance error remains.
    ref_bf16 = _reference(x, weight, gamma, beta, operand_dtype=jnp.bfloat16)
    err_bf16 = float(jnp.max(jnp.abs(out - ref_bf16)))
    assert jnp.allclose(out, ref_bf16, rtol=2e-3, atol=2e-3), err_bf16

    # Sanity check vs. the full-f32 reference: bf16 operands on the MXU give
    # ~1e-2 worst-case deviation on normalized outputs for K=864.
    ref_f32 = _reference(x, weight, gamma, beta, operand_dtype=jnp.float32)
    err_f32 = float(jnp.max(jnp.abs(out - ref_f32)))
    assert jnp.allclose(out, ref_f32, rtol=5e-2, atol=5e-2), err_f32

    print("KERNEL_OK")
</pallas_src>

<mosaic_0001>
module attributes {stable_mosaic.version = 11 : i64} {
  func.func @_conv_bn_kernel(%arg0: i32, %arg1: memref<112x896xbf16, #tpu.memory_space<vmem>>, %arg2: memref<896x384xbf16, #tpu.memory_space<vmem>>, %arg3: memref<1x384xf32, #tpu.memory_space<vmem>>, %arg4: memref<1x384xf32, #tpu.memory_space<vmem>>, %arg5: memref<784x384xf32, #tpu.memory_space<vmem>>, %arg6: memref<1x384xf32, #tpu.memory_space<vmem>>, %arg7: memref<1x384xf32, #tpu.memory_space<vmem>>) attributes {dimension_semantics = [#tpu.dimension_semantics<arbitrary>], iteration_bounds = array<i64: 7>, scalar_prefetch = 0 : i64, scratch_operands = 2 : i64, tpu.core_type = #tpu.core_type<tc>, window_params = [{transform_indices = @transform_0, window_bounds = array<i64: 112, 896>}, {pipeline_mode = #tpu.pipeline_mode<synchronous>, transform_indices = @transform_1, window_bounds = array<i64: 896, 384>}, {pipeline_mode = #tpu.pipeline_mode<synchronous>, transform_indices = @transform_2, window_bounds = array<i64: 1, 384>}, {pipeline_mode = #tpu.pipeline_mode<synchronous>, transform_indices = @transform_3, window_bounds = array<i64: 1, 384>}, {pipeline_mode = #tpu.pipeline_mode<synchronous>, transform_indices = @transform_4, window_bounds = array<i64: 784, 384>}]} {
    %c0_i32 = arith.constant 0 : i32
    %0 = arith.cmpi eq, %arg0, %c0_i32 : i32
    %1 = arith.extui %0 : i1 to i32
    %c0_i32_0 = arith.constant 0 : i32
    %2 = arith.cmpi ne, %1, %c0_i32_0 : i32
    scf.if %2 {
      %cst_16 = arith.constant 0.000000e+00 : f32
      %24 = vector.broadcast %cst_16 : f32 to vector<1x384xf32>
      %c0_17 = arith.constant 0 : index
      %c0_18 = arith.constant 0 : index
      %25 = vector.load %arg6[%c0_17, %c0_18] : memref<1x384xf32, #tpu.memory_space<vmem>>, vector<1x384xf32>
      tpu.vector_store %arg6[%c0_17, %c0_18], %24 {strides = array<i32>} : memref<1x384xf32, #tpu.memory_space<vmem>>, vector<1x384xf32>,
      %cst_19 = arith.constant 0.000000e+00 : f32
      %26 = vector.broadcast %cst_19 : f32 to vector<1x384xf32>
      %c0_20 = arith.constant 0 : index
      %c0_21 = arith.constant 0 : index
      %27 = vector.load %arg7[%c0_20, %c0_21] : memref<1x384xf32, #tpu.memory_space<vmem>>, vector<1x384xf32>
      tpu.vector_store %arg7[%c0_20, %c0_21], %26 {strides = array<i32>} : memref<1x384xf32, #tpu.memory_space<vmem>>, vector<1x384xf32>,
    } else {
    }
    %c0 = arith.constant 0 : index
    %c0_1 = arith.constant 0 : index
    %3 = vector.load %arg1[%c0, %c0_1] : memref<112x896xbf16, #tpu.memory_space<vmem>>, vector<112x896xbf16>
    %c0_2 = arith.constant 0 : index
    %c0_3 = arith.constant 0 : index
    %4 = vector.load %arg2[%c0_2, %c0_3] : memref<896x384xbf16, #tpu.memory_space<vmem>>, vector<896x384xbf16>
    %cst = arith.constant dense<0.000000e+00> : vector<112x384xf32>
    %5 = tpu.matmul %3, %4, %cst {dimension_numbers = #tpu.dot_dimension_numbers<[1], [0], [0], [1], [0, 0, 1, 1], [], []>} : vector<112x896xbf16>, vector<896x384xbf16>, vector<112x384xf32> -> vector<112x384xf32>
    %c112_i32 = arith.constant 112 : i32
    %6 = arith.muli %arg0, %c112_i32 : i32
    %7 = tpu.assume_multiple %6, 112 : i32
    %8 = arith.index_cast %7 : i32 to index
    %c0_4 = arith.constant 0 : index
    %9 = vector.load %arg5[%8, %c0_4] : memref<784x384xf32, #tpu.memory_space<vmem>>, vector<112x384xf32>
    tpu.vector_store %arg5[%8, %c0_4], %5 {strides = array<i32>} : memref<784x384xf32, #tpu.memory_space<vmem>>, vector<112x384xf32>,
    %c0_5 = arith.constant 0 : index
    %c0_6 = arith.constant 0 : index
    %10 = vector.load %arg6[%c0_5, %c0_6] : memref<1x384xf32, #tpu.memory_space<vmem>>, vector<1x384xf32>
    %cst_7 = arith.constant dense<0.000000e+00> : vector<384xf32>
    %11 = vector.multi_reduction <add>, %5, %cst_7 [0] : vector<112x384xf32> to vector<384xf32>
    %12 = vector.shape_cast %11 : vector<384xf32> to vector<1x384xf32>
    %13 = arith.addf %10, %12 : vector<1x384xf32>
    %c0_8 = arith.constant 0 : index
    %c0_9 = arith.constant 0 : index
    %14 = vector.load %arg6[%c0_8, %c0_9] : memref<1x384xf32, #tpu.memory_space<vmem>>, vector<1x384xf32>
    tpu.vector_store %arg6[%c0_8, %c0_9], %13 {strides = array<i32>} : memref<1x384xf32, #tpu.memory_space<vmem>>, vector<1x384xf32>,
    %c0_10 = arith.constant 0 : index
    %c0_11 = arith.constant 0 : index
    %15 = vector.load %arg7[%c0_10, %c0_11] : memref<1x384xf32, #tpu.memory_space<vmem>>, vector<1x384xf32>
    %16 = arith.mulf %5, %5 : vector<112x384xf32>
    %cst_12 = arith.constant dense<0.000000e+00> : vector<384xf32>
    %17 = vector.multi_reduction <add>, %16, %cst_12 [0] : vector<112x384xf32> to vector<384xf32>
    %18 = vector.shape_cast %17 : vector<384xf32> to vector<1x384xf32>
    %19 = arith.addf %15, %18 : vector<1x384xf32>
    %c0_13 = arith.constant 0 : index
    %c0_14 = arith.constant 0 : index
    %20 = vector.load %arg7[%c0_13, %c0_14] : memref<1x384xf32, #tpu.memory_space<vmem>>, vector<1x384xf32>
    tpu.vector_store %arg7[%c0_13, %c0_14], %19 {strides = array<i32>} : memref<1x384xf32, #tpu.memory_space<vmem>>, vector<1x384xf32>,
    %c6_i32 = arith.constant 6 : i32
    %21 = arith.cmpi eq, %arg0, %c6_i32 : i32
    %22 = arith.extui %21 : i1 to i32
    %c0_i32_15 = arith.constant 0 : i32
    %23 = arith.cmpi ne, %22, %c0_i32_15 : i32
    scf.if %23 {
      %c0_16 = arith.constant 0 : index
      %c0_17 = arith.constant 0 : index
      %24 = vector.load %arg6[%c0_16, %c0_17] : memref<1x384xf32, #tpu.memory_space<vmem>>, vector<1x384xf32>
      %cst_18 = arith.constant 0.00127551018 : f32
      %25 = vector.broadcast %cst_18 : f32 to vector<1x384xf32>
      %26 = arith.mulf %24, %25 : vector<1x384xf32>
      %c0_19 = arith.constant 0 : index
      %c0_20 = arith.constant 0 : index
      %27 = vector.load %arg7[%c0_19, %c0_20] : memref<1x384xf32, #tpu.memory_space<vmem>>, vector<1x384xf32>
      %cst_21 = arith.constant 0.00127551018 : f32
      %28 = vector.broadcast %cst_21 : f32 to vector<1x384xf32>
      %29 = arith.mulf %27, %28 : vector<1x384xf32>
      %30 = arith.mulf %26, %26 : vector<1x384xf32>
      %31 = arith.subf %29, %30 : vector<1x384xf32>
      %cst_22 = arith.constant 1.000000e-03 : f32
      %32 = vector.broadcast %cst_22 : f32 to vector<1x384xf32>
      %33 = arith.addf %31, %32 : vector<1x384xf32>
      %34 = math.rsqrt %33 : vector<1x384xf32>
      %c0_23 = arith.constant 0 : index
      %c0_24 = arith.constant 0 : index
      %35 = vector.load %arg3[%c0_23, %c0_24] : memref<1x384xf32, #tpu.memory_space<vmem>>, vector<1x384xf32>
      %36 = arith.mulf %34, %35 : vector<1x384xf32>
      %c0_25 = arith.constant 0 : index
      %c0_26 = arith.constant 0 : index
      %37 = vector.load %arg4[%c0_25, %c0_26] : memref<1x384xf32, #tpu.memory_space<vmem>>, vector<1x384xf32>
      %38 = arith.mulf %26, %36 : vector<1x384xf32>
      %39 = arith.subf %37, %38 : vector<1x384xf32>
      %c0_27 = arith.constant 0 : index
      %c0_28 = arith.constant 0 : index
      %40 = vector.load %arg5[%c0_27, %c0_28] : memref<784x384xf32, #tpu.memory_space<vmem>>, vector<784x384xf32>
      %41 = vector.broadcast %36 : vector<1x384xf32> to vector<784x384xf32>
      %42 = arith.mulf %40, %41 : vector<784x384xf32>
      %43 = vector.broadcast %39 : vector<1x384xf32> to vector<784x384xf32>
      %44 = arith.addf %42, %43 : vector<784x384xf32>
      %c0_29 = arith.constant 0 : index
      %c0_30 = arith.constant 0 : index
      %45 = vector.load %arg5[%c0_29, %c0_30] : memref<784x384xf32, #tpu.memory_space<vmem>>, vector<784x384xf32>
      tpu.vector_store %arg5[%c0_29, %c0_30], %44 {strides = array<i32>} : memref<784x384xf32, #tpu.memory_space<vmem>>, vector<784x384xf32>,
    } else {
    }
    return
  }
  func.func @transform_0(%arg0: i32) -> (i32, i32) {
    %c0_i32 = arith.constant 0 : i32
    %c0_i32_0 = arith.constant 0 : i32
    return %arg0, %c0_i32 : i32, i32
  }
  func.func @transform_1(%arg0: i32) -> (i32, i32) {
    %c0_i32 = arith.constant 0 : i32
    %c0_i32_0 = arith.constant 0 : i32
    %c0_i32_1 = arith.constant 0 : i32
    return %c0_i32, %c0_i32_0 : i32, i32
  }
  func.func @transform_2(%arg0: i32) -> (i32, i32) {
    %c0_i32 = arith.constant 0 : i32
    %c0_i32_0 = arith.constant 0 : i32
    %c0_i32_1 = arith.constant 0 : i32
    return %c0_i32, %c0_i32_0 : i32, i32
  }
  func.func @transform_3(%arg0: i32) -> (i32, i32) {
    %c0_i32 = arith.constant 0 : i32
    %c0_i32_0 = arith.constant 0 : i32
    %c0_i32_1 = arith.constant 0 : i32
    return %c0_i32, %c0_i32_0 : i32, i32
  }
  func.func @transform_4(%arg0: i32) -> (i32, i32) {
    %c0_i32 = arith.constant 0 : i32
    %c0_i32_0 = arith.constant 0 : i32
    %c0_i32_1 = arith.constant 0 : i32
    return %c0_i32, %c0_i32_0 : i32, i32
  }
}

</mosaic_0001>

<bundles_post_ra>
// kernel: tpu_custom_call.1
= control target key start
LH: loop header
LB: loop body
LE: loop exit
PB: predicated region body
PF: predicated region fallthrough
CT: control target
= control target key end

     0   :  { %9 = vsyncpa [#allocation5], 0  ;;  %s6946_s0 = inlined_call_operand.hbm [shape: bf16[784,896], index: 0, kind: input, shape index: {}]   ;;  %s6947_s1 = inlined_call_operand.hbm [shape: bf16[896,384], index: 1, kind: input, shape index: {}]   ;;  %s6948_s2 = inlined_call_operand.hbm [shape: f32[1,384], index: 2, kind: input, shape index: {}]   ;;  %s6949_s3 = inlined_call_operand.hbm [shape: f32[1,384], index: 3, kind: input, shape index: {}]   ;;  %s6950_s4 = inlined_call_operand.hbm [shape: f32[784,384], index: 4, kind: output, shape index: {}]  }
   0x1   :  { %11 = vsyncpa [#allocation5 + $0x1], 0 }
   0x2   :  { %12 = vsyncpa [#allocation8], 0 }
   0x3   :  { %13 = vsyncpa [#allocation11], 0 }
   0x4   :  { %14 = vsyncpa [#allocation6], 0  ;;  %s5606_s15 = smov 0   ;;  %s5608_s16 = smov 0  }
   0x5   :  { %s5610_s17 = smov 0   ;;  %s5612_s18 = smov 0  }
   0x6 LB: > { %s5625_s19 = sadd.s32 4294967295, %s5568_s18   ;;  %p40_p0 = scmp.ne.s32.totalorder %s5560_s16, %s5556_s15  ;;  %s5568_s18 = sphi %s5612_s18, %s7050_s18   ;;  %s5564_s17 = sphi %s5610_s17, %s7049_s17   ;;  %s5560_s16 = sphi %s5608_s16, %s7048_s16   ;;  %s5556_s15 = sphi %s5606_s15, %s7047_s15  }
   0x7   : > { %p41_p1 = scmp.eq.s32.totalorder %s5625_s19, 0  ;;  %p4157_p2 = scmp.ge.s32.totalorder %s5568_s18, 1 }
   0x8   : > { %p135_p3 = scmp.lt.s32.totalorder %s5568_s18, 8  ;;  %p4158_p4 = scmp.ne.s32.totalorder %s5625_s19, 0 }
   0x9   : > { %p5634_p5 = por %p41_p1, %p40_p0  ;;  %s146_s23 = sshll.u32 %s6947_s1, 4  ;;  %s147_s23 = int_to_ptr.hbm [resolvable:$true] %s146_s23 }
   0xa   : > { %p5641_p6 = pnand %p4157_p2, %p135_p3  ;;  %s5570_s25 = smov [#allocation7]  }
   0xb   : > { %s148_s26 = sshll.u32 %s5570_s25, 4  ;;  %s161_s30 = sshll.u32 %s6948_s2, 4  ;;  %s149_s26 = int_to_ptr.vmem [resolvable:$true] %s148_s26  ;;  %s162_s30 = int_to_ptr.hbm [resolvable:$true] %s161_s30 }
   0xc   : > { %p5305_p7 = pneg %p5641_p6  ;;  %s5571_s5 = smov 192  }
   0xd   : > { %s5572_s6 = smov 12   ;;  %s173_s9 = sshll.u32 %s6949_s3, 4  ;;  %s174_s9 = int_to_ptr.hbm [resolvable:$true] %s173_s9 }
   0xe   : > { %p5649_p8 = pnand %p5305_p7, %p41_p1  ;;  %s5573_s10 = smov [#allocation9]  }
   0xf   : > { %s163_s11 = sshll.u32 %s5573_s10, 4  ;;  %s5574_s12 = smov [#allocation10]   ;;  %s164_s11 = int_to_ptr.vmem [resolvable:$true] %s163_s11 }
  0x10   : > { %5308 = dma.hbm_to_vmem [thread:$0]  (!%p5649_p8), %s147_s23, 21504, %s149_s26, [#allocation8], %s5571_s5, %s5571_s5, %s5572_s6  }
  0x11   : > { %5311 = dma.hbm_to_vmem [thread:$0]  (!%p5649_p8), %s162_s30, 48, %s164_s11, [#allocation8]  }
  0x12   : > { %s175_s13 = sshll.u32 %s5574_s12, 4  ;;  %s5666_s14 = sadd.s32 1, %s5568_s18   ;;  %s176_s13 = int_to_ptr.vmem [resolvable:$true] %s175_s13 }
  0x13   : > { %5314 = dma.hbm_to_vmem [thread:$0]  (!%p5649_p8), %s174_s9, 48, %s176_s13, [#allocation11]  }
  0x14   : > { %s27_s15 = sadd.s32 1, %s5564_s17  ;;  %s24_s21 = ssub.s32 %s5568_s18, %s5666_s14 }
  0x15   : > { %p34_p9 = scmp.ne.s32.totalorder %s5564_s17, %s5560_s16  ;;  %p25_p10 = scmp.eq.s32.totalorder %s24_s21, 0 }
  0x16   : > { %p35_p11 = scmp.eq.s32.totalorder %s5568_s18, 0  ;;  %p5322_p12 = scmp.lt.s32.totalorder %s5568_s18, 7 }
  0x17   : > { %s186_s22 = sand.u32 1, %s5564_s17   ;;  %s5323_s26 = smul.u32 392, %s5568_s18 }
  0x18   : > { %s5677_s23 = scalar_select %p25_p10, %s5564_s17, %s27_s15  }
  0x19   : > { %p36_p13 = por %p35_p11, %p34_p9  ;;  %s5284_s25 = smul.u32 392, %s186_s22 }
  0x1a   : > { %s196_s30 = scalar_lea.hbm %s6946_s0, %s5323_s26  ;;  %s187_s8 = scalar_lea.sflag [#allocation5], %s186_s22 }
  0x1b   : > { %p5680_p0 = pnand %p5322_p12, %p36_p13  ;;  %s190_s5 = scalar_lea.vmem [#allocation4], %s5284_s25 }
  0x1c   : > { %s199_s6 = sshll.u32 %s190_s5, 4  ;;  %s197_s7 = sshll.u32 %s196_s30, 4  ;;  %s200_s6 = int_to_ptr.vmem [resolvable:$true] %s199_s6  ;;  %s198_s7 = int_to_ptr.hbm [resolvable:$true] %s197_s7 }
  0x1d   : > { %s5464_s9 = sshra.s32 %s198_s7, 4  ;;  %p5468_p3 = pneg %p5680_p0  ;;  %s5465_s9 = int_to_ptr.hbm [resolvable:$true] %s5464_s9 }
  0x1e   : > { %s5466_s10 = scalar_lea.hbm %s5465_s9, 392  ;;  %s5471_s12 = scalar_lea.hbm %s6946_s0, 2744 }
  0x1f   : > { %p5467_p2 = scmp.ne.s32.totalorder %s5465_s9, %s5466_s10  ;;  %p5472_p9 = scmp.lt.s32.totalorder %s5465_s9, %s6946_s0 }
  0x20   : > { %p5473_p10 = scmp.lt.s32.totalorder %s5471_s12, %s5466_s10 }
  0x21   : > { %p5469_p7 = pnand %p5468_p3, %p5467_p2 }
  0x22   : > { %p5474_p11 = por %p5473_p10, %p5472_p9 }
  0x23   : > { %p5470_p8 = pneg %p5469_p7 }
  0x25   : > { %p5475_p12 = pnand %p5474_p11, %p5470_p8 }
  0x27   : > { %5478 = shalt.err (!%p5475_p12)
}
  0x28   : > { %s5575_s21 = smov 448   ;;  %s5576_s22 = smov 28  }
  0x29   : > { %5318 = dma.hbm_to_vmem [thread:$0]  (!%p5680_p0), %s198_s7, 6272, %s200_s6, %s187_s8, %s5575_s21, %s5575_s21, %s5576_s22  }
  0x2a   : > { %211 = sbr.rel (%p5641_p6) target bundleno = 1185 (0x4a1), region = 36 }
  0x2f   : > { %s213_s25 = sand.u32 1, %s5560_s16  }
  0x30   : > { %s5286_s26 = smul.u32 392, %s213_s25  ;;  %s214_s27 = scalar_lea.sflag [#allocation5], %s213_s25 }
  0x32   : > { %s5700_s29 = scalar_lea.vmem [#allocation4], %s5286_s26 }
  0x33   : > { %5539 = dma.done.wait (%p5634_p5), %s214_s27, 6272  }
  0x34   : > { %5541 = vsyncadd (%p5634_p5), %s214_s27, 4294961024 }
  0x35   : > { %5543 = dma.done.wait (%p41_p1), [#allocation8], 21552  }
  0x36   : > { %5545 = vsyncadd (%p41_p1), [#allocation8], 4294945744 }
  0x37   : > { %5547 = dma.done.wait (%p41_p1), [#allocation11], 48  }
  0x38   : > { %5549 = vsyncadd (%p41_p1), [#allocation11], 4294967248  ;;  %257 = sbr.rel (%p4158_p4) target bundleno = 66 (0x42), region = 56 }
  0x3d   : > { %v258_v0 = vlaneseq  ;;  %v5577_v1 = vmov 0.0  }
  0x3f   : > { %vm260_vm0 = vcmp.lt.s32.totalorder %v258_v0, 384 }
  0x40   : > { %262 = vst.msk [vmem:[#allocation2] sm:$0x7] %vm260_vm0, %v5577_v1 }
  0x41   : > { %263 = vst.msk [vmem:[#allocation3] sm:$0x7] %vm260_vm0, %v5577_v1 }
  0x42 PF: > { %v4450_v2 = vld [vmem:[#allocation7 + $0xa8] sm:$0xf]  ;;  %v5113_v3 = vld [vmem:[#allocation7 + $0xb0] sm:$0xf0]  ;;  %v4438_v4 = vld [vmem:[#allocation7 + $0x90] sm:$0xf] }
  0x43   : > { %v4451_v5 = vor.u32 %v5113_v3, %v4450_v2  ;;  %v5110_v6 = vld [vmem:[#allocation7 + $0x98] sm:$0xf0]  ;;  %v4426_v8 = vld [vmem:[#allocation7 + $0x78] sm:$0xf]  ;;  %v5107_v9 = vld [vmem:[#allocation7 + $0x80] sm:$0xf0] }
  0x44   : > { %v4439_v7 = vor.u32 %v5110_v6, %v4438_v4  ;;  %v4427_v10 = vor.u32 %v5107_v9, %v4426_v8  ;;  %v4414_v11 = vld [vmem:[#allocation7 + $0x60] sm:$0xf]  ;;  %v5104_v12 = vld [vmem:[#allocation7 + $0x68] sm:$0xf0]  ;;  %v4402_v14 = vld [vmem:[#allocation7 + $0x48] sm:$0xf] }
  0x45   : > { %5260 = vmatpush.bf16.msra.mxu1 %v4451_v5  ;;  %5261 = vmatpush.bf16.msra.mxu2 %v4451_v5  ;;  %v4415_v13 = vor.u32 %v5104_v12, %v4414_v11  ;;  %v5101_v15 = vld [vmem:[#allocation7 + $0x50] sm:$0xf0]  ;;  %v4390_v17 = vld [vmem:[#allocation7 + $0x30] sm:$0xf]  ;;  %v5098_v18 = vld [vmem:[#allocation7 + $0x38] sm:$0xf0] }
  0x46   : > { %5262 = vmatpush.bf16.msra.mxu3 %v4451_v5  ;;  %1692 = vmatpush.bf16.msra.mxu0 %v4451_v5  ;;  %v4403_v16 = vor.u32 %v5101_v15, %v4402_v14  ;;  %v4391_v19 = vor.u32 %v5098_v18, %v4390_v17  ;;  %v4378_v20 = vld [vmem:[#allocation7 + $0x18] sm:$0xf]  ;;  %v5095_v21 = vld [vmem:[#allocation7 + $0x20] sm:$0xf0]  ;;  %v4366_v23 = vld [vmem:[#allocation7] sm:$0xf] }
  0x47   : > { %v4379_v22 = vor.u32 %v5095_v21, %v4378_v20  ;;  %v5092_v24 = vld [vmem:[#allocation7 + $0x8] sm:$0xf0]  ;;  %v4738_v25 = vld [vmem:[#allocation7 + $0x2e8] sm:$0xf]  ;;  %v5185_v26 = vld [vmem:[#allocation7 + $0x2f0] sm:$0xf0] }
  0x48   : > { %v4226_v27 = vld [vmem:[%s5700_s29 + $0x70] sm:$0xf]  ;;  %v5059_v28 = vld [vmem:[%s5700_s29 + $0x88] sm:$0xf0]  ;;  %v4282_v29 = vld [vmem:[%s5700_s29 + $0xe0] sm:$0xf]  ;;  %v4367_v33 = vor.u32 %v5092_v24, %v4366_v23  ;;  %v4739_v40 = vor.u32 %v5185_v26, %v4738_v25 }
  0x49   : > { %5263 = vmatpush.bf16.msra.mxu1 %v4439_v7  ;;  %5264 = vmatpush.bf16.msra.mxu2 %v4439_v7  ;;  %v5073_v30 = vld [vmem:[%s5700_s29 + $0xf8] sm:$0xf0]  ;;  %v4642_v31 = vld [vmem:[#allocation7 + $0x228] sm:$0xf]  ;;  %v4170_v36 = vld [vmem:[%s5700_s29] sm:$0xf]  ;;  %v5724_v45 = vor.u32 %v5059_v28, %v4226_v27 }
  0x4a   : > { %5265 = vmatpush.bf16.msra.mxu3 %v4439_v7  ;;  %1693 = vmatpush.bf16.msra.mxu0 %v4439_v7  ;;  %v5161_v32 = vld [vmem:[#allocation7 + $0x230] sm:$0xf0]  ;;  %v4546_v34 = vld [vmem:[#allocation7 + $0x168] sm:$0xf]  ;;  %v4726_v38 = vld [vmem:[#allocation7 + $0x2d0] sm:$0xf]  ;;  %v5726_v46 = vor.u32 %v5073_v30, %v4282_v29 }
  0x4b   : > { %v5137_v35 = vld [vmem:[#allocation7 + $0x170] sm:$0xf0]  ;;  %v4834_v39 = vld [vmem:[#allocation7 + $0x3a8] sm:$0xf]  ;;  %v4643_v41 = vor.u32 %v5161_v32, %v4642_v31  ;;  %v5087_v44 = vld [vmem:[%s5700_s29 + $0x168] sm:$0xf0] }
  0x4c   : > { %v5045_v37 = vld [vmem:[%s5700_s29 + $0x18] sm:$0xf0]  ;;  %v4338_v43 = vld [vmem:[%s5700_s29 + $0x150] sm:$0xf]  ;;  %6992 = vst [vmem:[#allocation17_spill] sm:$0xff] %v5724_v45  ;;  %v4547_v50 = vor.u32 %v5137_v35, %v4546_v34  ;;  %s2616_s20 = smul.u32 112, %s5625_s19 }
  0x4d   : > { %5266 = vmatpush.bf16.msra.mxu1 %v4427_v10  ;;  %5267 = vmatpush.bf16.msra.mxu2 %v4427_v10  ;;  %v5209_v42 = vld [vmem:[#allocation7 + $0x3b0] sm:$0xf0]  ;;  %6993 = vst [vmem:[#allocation18_spill] sm:$0xff] %v5726_v46  ;;  %v5182_v47 = vld [vmem:[#allocation7 + $0x2d8] sm:$0xf0]  ;;  %v5728_v51 = vor.u32 %v5045_v37, %v4170_v36  ;;  %v5730_v55 = vor.u32 %v5087_v44, %v4338_v43  ;;  %vm2727_vm1 = vcmask 1040384  }
  0x4e   : > { %5268 = vmatpush.bf16.msra.mxu3 %v4427_v10  ;;  %1694 = vmatpush.bf16.msra.mxu0 %v4427_v10  ;;  %v4630_v48 = vld [vmem:[#allocation7 + $0x210] sm:$0xf]  ;;  %v5158_v49 = vld [vmem:[#allocation7 + $0x218] sm:$0xf0]  ;;  %v4835_v52 = vor.u32 %v5209_v42, %v4834_v39  ;;  %v4727_v56 = vor.u32 %v5182_v47, %v4726_v38  ;;  %v4714_v58 = vld [vmem:[#allocation7 + $0x2b8] sm:$0xf] }
  0x4f   : > { %6994 = vst [vmem:[#allocation19_spill] sm:$0xff] %v5728_v51  ;;  %v4534_v53 = vld [vmem:[#allocation7 + $0x150] sm:$0xf]  ;;  %v5134_v54 = vld [vmem:[#allocation7 + $0x158] sm:$0xf0]  ;;  %v4631_v57 = vor.u32 %v5158_v49, %v4630_v48  ;;  %s2617_s24 = sshra.s32 %s2616_s20, 3 }
  0x50   : > { %6995 = vst [vmem:[#allocation20_spill] sm:$0xff] %v5730_v55  ;;  %v4822_v59 = vld [vmem:[#allocation7 + $0x390] sm:$0xf]  ;;  %v5206_v60 = vld [vmem:[#allocation7 + $0x398] sm:$0xf0]  ;;  %v4535_v0 = vor.u32 %v5134_v54, %v4534_v53  ;;  %s5259_s28 = smul.u32 24, %s2617_s24 }
  0x51   : > { %5269 = vmatpush.bf16.msra.mxu1 %v4415_v13  ;;  %5270 = vmatpush.bf16.msra.mxu2 %v4415_v13  ;;  %v5179_v61 = vld [vmem:[#allocation7 + $0x2c0] sm:$0xf0]  ;;  %v4618_v62 = vld [vmem:[#allocation7 + $0x1f8] sm:$0xf]  ;;  %v4823_v1 = vor.u32 %v5206_v60, %v4822_v59  ;;  %v4702_v6 = vld [vmem:[#allocation7 + $0x2a0] sm:$0xf] }
  0x52   : > { %5271 = vmatpush.bf16.msra.mxu3 %v4415_v13  ;;  %1695 = vmatpush.bf16.msra.mxu0 %v4415_v13  ;;  %v5155_v63 = vld [vmem:[#allocation7 + $0x200] sm:$0xf0]  ;;  %v4522_v2 = vld [vmem:[#allocation7 + $0x138] sm:$0xf]  ;;  %v4715_v4 = vor.u32 %v5179_v61, %v4714_v58  ;;  %v5176_v9 = vld [vmem:[#allocation7 + $0x2a8] sm:$0xf0] }
  0x53   : > { %v5131_v3 = vld [vmem:[#allocation7 + $0x140] sm:$0xf0]  ;;  %v4619_v5 = vor.u32 %v5155_v63, %v4618_v62  ;;  %v4810_v7 = vld [vmem:[#allocation7 + $0x378] sm:$0xf]  ;;  %v4606_v10 = vld [vmem:[#allocation7 + $0x1e0] sm:$0xf]  ;;  %v4703_v18 = vor.u32 %v5176_v9, %v4702_v6 }
  0x54   : > { %v5203_v8 = vld [vmem:[#allocation7 + $0x380] sm:$0xf0]  ;;  %v5152_v11 = vld [vmem:[#allocation7 + $0x1e8] sm:$0xf0]  ;;  %v4523_v12 = vor.u32 %v5131_v3, %v4522_v2  ;;  %v4510_v13 = vld [vmem:[#allocation7 + $0x120] sm:$0xf] }
  0x55   : > { %5272 = vmatpush.bf16.msra.mxu1 %v4403_v16  ;;  %5273 = vmatpush.bf16.msra.mxu2 %v4403_v16  ;;  %v4811_v14 = vor.u32 %v5203_v8, %v4810_v7  ;;  %v5128_v15 = vld [vmem:[#allocation7 + $0x128] sm:$0xf0]  ;;  %v5173_v17 = vld [vmem:[#allocation7 + $0x290] sm:$0xf0]  ;;  %v4798_v20 = vld [vmem:[#allocation7 + $0x360] sm:$0xf] }
  0x56   : > { %5274 = vmatpush.bf16.msra.mxu3 %v4403_v16  ;;  %1696 = vmatpush.bf16.msra.mxu0 %v4403_v16  ;;  %v4690_v16 = vld [vmem:[#allocation7 + $0x288] sm:$0xf]  ;;  %v5200_v21 = vld [vmem:[#allocation7 + $0x368] sm:$0xf0]  ;;  %v5066_v23 = vld [vmem:[%s5700_s29 + $0xc0] sm:$0xf0]  ;;  %v4511_v26 = vor.u32 %v5128_v15, %v4510_v13 }
  0x57   : > { %v4594_v24 = vld [vmem:[#allocation7 + $0x1c8] sm:$0xf]  ;;  %v5149_v25 = vld [vmem:[#allocation7 + $0x1d0] sm:$0xf0]  ;;  %v5080_v28 = vld [vmem:[%s5700_s29 + $0x130] sm:$0xf0]  ;;  %v4799_v30 = vor.u32 %v5200_v21, %v4798_v20  ;;  %v4691_v34 = vor.u32 %v5173_v17, %v4690_v16 }
  0x58   : > { %v4310_v27 = vld [vmem:[%s5700_s29 + $0x118] sm:$0xf]  ;;  %v5125_v31 = vld [vmem:[#allocation7 + $0x110] sm:$0xf0]  ;;  %v4595_v35 = vor.u32 %v5149_v25, %v4594_v24  ;;  %v5146_v43 = vld [vmem:[#allocation7 + $0x1b8] sm:$0xf0] }
  0x59   : > { %5275 = vmatpush.bf16.msra.mxu1 %v4391_v19  ;;  %5276 = vmatpush.bf16.msra.mxu2 %v4391_v19  ;;  %v4498_v29 = vld [vmem:[#allocation7 + $0x108] sm:$0xf]  ;;  %v4678_v36 = vld [vmem:[#allocation7 + $0x270] sm:$0xf]  ;;  %v5197_v38 = vld [vmem:[#allocation7 + $0x350] sm:$0xf0] }
  0x5a   : > { %5277 = vmatpush.bf16.msra.mxu3 %v4391_v19  ;;  %1697 = vmatpush.bf16.msra.mxu0 %v4391_v19  ;;  %v4607_v19 = vor.u32 %v5152_v11, %v4606_v10  ;;  %v4198_v32 = vld [vmem:[%s5700_s29 + $0x38] sm:$0xf]  ;;  %v4499_v44 = vor.u32 %v5125_v31, %v4498_v29  ;;  %v4666_v54 = vld [vmem:[#allocation7 + $0x258] sm:$0xf]  ;;  %v5167_v58 = vld [vmem:[#allocation7 + $0x260] sm:$0xf0] }
  0x5b   : > { %v4786_v37 = vld [vmem:[#allocation7 + $0x348] sm:$0xf]  ;;  %v4582_v42 = vld [vmem:[#allocation7 + $0x1b0] sm:$0xf]  ;;  %v4570_v59 = vld [vmem:[#allocation7 + $0x198] sm:$0xf] }
  0x5c   : > { %v4787_v48 = vor.u32 %v5197_v38, %v4786_v37  ;;  %v4486_v49 = vld [vmem:[#allocation7 + $0xf0] sm:$0xf]  ;;  %v4583_v53 = vor.u32 %v5146_v43, %v4582_v42  ;;  %v5143_v60 = vld [vmem:[#allocation7 + $0x1a0] sm:$0xf0]  ;;  %v4474_v62 = vld [vmem:[#allocation7 + $0xd8] sm:$0xf] }
  0x5d   : > { %5278 = vmatpush.bf16.msra.mxu1 %v4379_v22  ;;  %5279 = vmatpush.bf16.msra.mxu2 %v4379_v22  ;;  %v5119_v63 = vld [vmem:[#allocation7 + $0xe0] sm:$0xf0]  ;;  %v5164_v2 = vld [vmem:[#allocation7 + $0x248] sm:$0xf0]  ;;  %v4762_v3 = vld [vmem:[#allocation7 + $0x318] sm:$0xf] }
  0x5e   : > { %5280 = vmatpush.bf16.msra.mxu3 %v4379_v22  ;;  %1698 = vmatpush.bf16.msra.mxu0 %v4379_v22  ;;  %v4254_v22 = vld [vmem:[%s5700_s29 + $0xa8] sm:$0xf]  ;;  %v5191_v6 = vld [vmem:[#allocation7 + $0x320] sm:$0xf0]  ;;  %v5140_v8 = vld [vmem:[#allocation7 + $0x188] sm:$0xf0] }
  0x5f   : > { %v5742_v39 = vor.u32 %v5066_v23, %v4254_v22  ;;  %v4558_v7 = vld [vmem:[#allocation7 + $0x180] sm:$0xf]  ;;  %v5116_v10 = vld [vmem:[#allocation7 + $0xc8] sm:$0xf0]  ;;  %v5026_v11 = vld [vmem:[#allocation7 + $0x528] sm:$0xf]  ;;  %v4763_v17 = vor.u32 %v5191_v6, %v4762_v3 }
  0x60   : > { %v4462_v9 = vld [vmem:[#allocation7 + $0xc0] sm:$0xf]  ;;  %v5043_v13 = vld [vmem:[%s5700_s29 + $0xc] sm:$0xf]  ;;  %v5112_v15 = vld [vmem:[#allocation7 + $0xac] sm:$0xf]  ;;  %v4559_v22 = vor.u32 %v5140_v8, %v4558_v7 }
  0x61   : > { %5281 = vmatpush.bf16.msra.mxu1 %v4367_v33  ;;  %5282 = vmatpush.bf16.msra.mxu2 %v4367_v33  ;;  %6996 = vst [vmem:[#allocation21_spill] sm:$0xff] %v5742_v39  ;;  %v4452_v16 = vld [vmem:[#allocation7 + $0xb4] sm:$0xf0]  ;;  %v5188_v20 = vld [vmem:[#allocation7 + $0x308] sm:$0xf0]  ;;  %v4463_v31 = vor.u32 %v5116_v10, %v4462_v9  ;;  %s6057_s30 = scalar_lea.vmem [#allocation12], %s5259_s28 }
  0x62   : > { %5283 = vmatpush.bf16.msra.mxu3 %v4367_v33  ;;  %1699 = vmatpush.bf16.msra.mxu0 %v4367_v33  ;;  %v5052_v33 = vld [vmem:[%s5700_s29 + $0x50] sm:$0xf0]  ;;  %v5042_v23 = vld [vmem:[%s5700_s29 + $0x4] sm:$0xf]  ;;  %v4172_v24 = vld [vmem:[%s5700_s29 + $0x1c] sm:$0xf0] }
  0x63   : > { %v5746_v47 = vor.u32 %v5052_v33, %v4198_v32  ;;  %v4930_v25 = vld [vmem:[#allocation7 + $0x468] sm:$0xf]  ;;  %v5136_v29 = vld [vmem:[#allocation7 + $0x16c] sm:$0xf]  ;;  %v4178_v32 = vld [vmem:[%s5700_s29 + $0x8] sm:$0xf] }
  0x64   : > { %1710 = vmatmul.bf16.vlgmr.msra.gmra.mxu1 %v5724_v45  ;;  %1720 = vmatmul.bf16.vlgmr.msra.gmra.mxu2 %v5726_v46  ;;  %v5046_v33 = vld [vmem:[%s5700_s29 + $0x20] sm:$0xf0]  ;;  %v5047_v37 = vld [vmem:[%s5700_s29 + $0x28] sm:$0xf0]  ;;  %v5014_v38 = vld [vmem:[#allocation7 + $0x510] sm:$0xf] }
  0x65   : > { %1780 = vmatpush.bf16.msrb.mxu2 %v4643_v41  ;;  %1736 = vmatpush.bf16.msrb.mxu1 %v4547_v50  ;;  %v5170_v41 = vld [vmem:[#allocation7 + $0x278] sm:$0xf0]  ;;  %6998 = vst [vmem:[#allocation23_spill] sm:$0xff] %v5746_v47  ;;  %v5227_v3 = vld [vmem:[#allocation7 + $0x440] sm:$0xf0]  ;;  %vm2729_vm2 = vcmask 1041408  }
  0x66   : > { %1824 = vmatpush.bf16.msrb.mxu3 %v4739_v40  ;;  %1700 = vmatmul.bf16.vlgmr.msra.gmra.mxu0 %v5728_v51  ;;  %v5744_v40 = vor.u32 %v5080_v28, %v4310_v27  ;;  %v5122_v50 = vld [vmem:[#allocation7 + $0xf8] sm:$0xf0]  ;;  %v4455_v27 = vor.u32 %v5112_v15, %v4452_v16  ;;  %v5233_v28 = vld [vmem:[#allocation7 + $0x470] sm:$0xf0]  ;;  %v4524_v6 = vld [vmem:[#allocation7 + $0x144] sm:$0xf0] }
  0x67   : > { %1868 = vmatpush.bf16.msrb.mxu0 %v4835_v52  ;;  %1730 = vmatmul.bf16.vlgmr.msra.gmra.mxu3 %v5730_v55  ;;  %v4679_v52 = vor.u32 %v5170_v41, %v4678_v36  ;;  %v4487_v61 = vor.u32 %v5122_v50, %v4486_v49  ;;  %v5254_v41 = vld [vmem:[#allocation7 + $0x518] sm:$0xf0]  ;;  %v4931_v42 = vor.u32 %v5233_v28, %v4930_v25  ;;  %v4918_v49 = vld [vmem:[#allocation7 + $0x450] sm:$0xf]  ;;  %v4990_v8 = vld [vmem:[#allocation7 + $0x4e0] sm:$0xf] }
  0x68   : > { %6997 = vst [vmem:[#allocation22_spill] sm:$0xff] %v5744_v40  ;;  %v5761_v50 = vor.u32 %v5042_v23, %v4172_v24  ;;  %v5248_v9 = vld [vmem:[#allocation7 + $0x4e8] sm:$0xf0]  ;;  %v5050_v16 = vld [vmem:[%s5700_s29 + $0x44] sm:$0xf]  ;;  %p5037_p1 = scmp.ne.s32.totalorder %s5625_s19, 6 }
  0x69   : > { %1781 = vmatpush.bf16.msrb.mxu2 %v4631_v57  ;;  %1737 = vmatpush.bf16.msrb.mxu1 %v4535_v0  ;;  %v5194_v57 = vld [vmem:[#allocation7 + $0x338] sm:$0xf0]  ;;  %v4214_v23 = vld [vmem:[%s5700_s29 + $0x48] sm:$0xf] }
  0x6a   : > { %1825 = vmatpush.bf16.msrb.mxu3 %v4727_v56  ;;  %v4774_v56 = vld [vmem:[#allocation7 + $0x330] sm:$0xf]  ;;  %6999 = vst [vmem:[#allocation24_spill] sm:$0xff] %v5761_v50  ;;  %v5054_v24 = vld [vmem:[%s5700_s29 + $0x60] sm:$0xf0] }
  0x6b   : > { %1869 = vmatpush.bf16.msrb.mxu0 %v4823_v1  ;;  %v4775_v0 = vor.u32 %v5194_v57, %v4774_v56  ;;  %v4654_v1 = vld [vmem:[#allocation7 + $0x240] sm:$0xf] }
  0x6c   : > { %v4655_v21 = vor.u32 %v5164_v2, %v4654_v1  ;;  %v4536_v56 = vld [vmem:[#allocation7 + $0x15c] sm:$0xf0]  ;;  %v4428_v1 = vld [vmem:[#allocation7 + $0x84] sm:$0xf0]  ;;  %v4906_v2 = vld [vmem:[#allocation7 + $0x438] sm:$0xf] }
  0x6d   : > { %1782 = vmatpush.bf16.msrb.mxu2 %v4619_v5  ;;  %1738 = vmatpush.bf16.msrb.mxu1 %v4523_v12  ;;  %v4571_v5 = vor.u32 %v5143_v60, %v4570_v59  ;;  %v4475_v12 = vor.u32 %v5119_v63, %v4474_v62  ;;  %v5002_v60 = vld [vmem:[#allocation7 + $0x4f8] sm:$0xf]  ;;  %v4907_v10 = vor.u32 %v5227_v3, %v4906_v2  ;;  %v4894_v28 = vld [vmem:[#allocation7 + $0x420] sm:$0xf]  ;;  %v5124_v2 = vld [vmem:[#allocation7 + $0x10c] sm:$0xf] }
  0x6e   : > { %1826 = vmatpush.bf16.msrb.mxu3 %v4715_v4  ;;  %v4667_v4 = vor.u32 %v5167_v58, %v4666_v54  ;;  %v5133_v54 = vld [vmem:[#allocation7 + $0x154] sm:$0xf]  ;;  %v5015_v58 = vor.u32 %v5254_v41, %v5014_v38  ;;  %v4404_v38 = vld [vmem:[#allocation7 + $0x54] sm:$0xf0] }
  0x6f   : > { %1870 = vmatpush.bf16.msrb.mxu0 %v4811_v14  ;;  %v5257_v14 = vld [vmem:[#allocation7 + $0x530] sm:$0xf0]  ;;  %v4539_v63 = vor.u32 %v5133_v54, %v4536_v56  ;;  %v5056_v54 = vld [vmem:[%s5700_s29 + $0x74] sm:$0xf]  ;;  %v4228_v56 = vld [vmem:[%s5700_s29 + $0x8c] sm:$0xf0] }
  0x70   : > { %v4500_v3 = vld [vmem:[#allocation7 + $0x114] sm:$0xf0] }
  0x71   : > { %1783 = vmatpush.bf16.msrb.mxu2 %v4607_v19  ;;  %1739 = vmatpush.bf16.msrb.mxu1 %v4511_v26  ;;  %v4750_v19 = vld [vmem:[#allocation7 + $0x300] sm:$0xf]  ;;  %v5027_v26 = vor.u32 %v5257_v14, %v5026_v11  ;;  %v4991_v14 = vor.u32 %v5248_v9, %v4990_v8 }
  0x72   : > { %1827 = vmatpush.bf16.msrb.mxu3 %v4703_v18  ;;  %v4180_v18 = vld [vmem:[%s5700_s29 + $0x24] sm:$0xf0]  ;;  %v4751_v36 = vor.u32 %v5188_v20, %v4750_v19  ;;  %v4200_v19 = vld [vmem:[%s5700_s29 + $0x54] sm:$0xf0]  ;;  %v4206_v20 = vld [vmem:[%s5700_s29 + $0x40] sm:$0xf] }
  0x73   : > { %1871 = vmatpush.bf16.msrb.mxu0 %v4799_v30  ;;  %v4548_v30 = vld [vmem:[#allocation7 + $0x174] sm:$0xf0]  ;;  %v4392_v8 = vld [vmem:[#allocation7 + $0x3c] sm:$0xf0] }
  0x74   : > { %1715 = vmatmul.bf16.gmra.mxu1 %v5742_v39  ;;  %1725 = vmatmul.bf16.gmra.mxu2 %v5744_v40  ;;  %v4551_v43 = vor.u32 %v5136_v29, %v4548_v30  ;;  %v5224_v29 = vld [vmem:[#allocation7 + $0x428] sm:$0xf0] }
  0x75   : > { %1784 = vmatpush.bf16.msrb.mxu2 %v4595_v35  ;;  %1740 = vmatpush.bf16.msrb.mxu1 %v4499_v44  ;;  %v5758_v35 = vor.u32 %v5043_v13, %v4180_v18  ;;  %v5109_v44 = vld [vmem:[#allocation7 + $0x94] sm:$0xf]  ;;  %v4416_v13 = vld [vmem:[#allocation7 + $0x6c] sm:$0xf0]  ;;  %v4895_v30 = vor.u32 %v5224_v29, %v4894_v28 }
  0x76   : > { %1828 = vmatpush.bf16.msrb.mxu3 %v4691_v34  ;;  %1705 = vmatmul.bf16.gmra.mxu0 %v5746_v47  ;;  %v4186_v34 = vld [vmem:[%s5700_s29 + $0x10] sm:$0xf]  ;;  %v5049_v18 = vld [vmem:[%s5700_s29 + $0x3c] sm:$0xf] }
  0x77   : > { %1872 = vmatpush.bf16.msrb.mxu0 %v4787_v48  ;;  %v4440_v48 = vld [vmem:[#allocation7 + $0x9c] sm:$0xf0]  ;;  %v5765_v57 = vor.u32 %v5047_v37, %v4186_v34  ;;  %v5781_v25 = vor.u32 %v5049_v18, %v4200_v19  ;;  %v5100_v37 = vld [vmem:[#allocation7 + $0x4c] sm:$0xf]  ;;  %v5067_v19 = vld [vmem:[%s5700_s29 + $0xc8] sm:$0xf0] }
  0x78   : > { %v4443_v59 = vor.u32 %v5109_v44, %v4440_v48  ;;  %v5221_v44 = vld [vmem:[#allocation7 + $0x410] sm:$0xf0]  ;;  %v4262_v18 = vld [vmem:[%s5700_s29 + $0xb0] sm:$0xf] }
  0x79   : > { %1785 = vmatpush.bf16.msrb.mxu2 %v4583_v53  ;;  %1741 = vmatpush.bf16.msrb.mxu1 %v4487_v61  ;;  %v5230_v53 = vld [vmem:[#allocation7 + $0x458] sm:$0xf0]  ;;  %v5251_v61 = vld [vmem:[#allocation7 + $0x500] sm:$0xf0]  ;;  %7000 = vst [vmem:[#allocation25_spill] sm:$0xff] %v5781_v25  ;;  %v5823_v28 = vor.u32 %v5067_v19, %v4262_v18 }
  0x7a   : > { %1829 = vmatpush.bf16.msrb.mxu3 %v4679_v52  ;;  %v5763_v52 = vor.u32 %v5046_v33, %v4178_v32  ;;  %v4919_v62 = vor.u32 %v5230_v53, %v4918_v49  ;;  %v4512_v32 = vld [vmem:[#allocation7 + $0x12c] sm:$0xf0]  ;;  %v4978_v33 = vld [vmem:[#allocation7 + $0x4c8] sm:$0xf]  ;;  %v5057_v49 = vld [vmem:[%s5700_s29 + $0x7c] sm:$0xf] }
  0x7b   : > { %1873 = vmatpush.bf16.msrb.mxu0 %v4775_v0  ;;  %v5106_v0 = vld [vmem:[#allocation7 + $0x7c] sm:$0xf]  ;;  %v4236_v53 = vld [vmem:[%s5700_s29 + $0x94] sm:$0xf0]  ;;  %v4320_v18 = vld [vmem:[%s5700_s29 + $0x13c] sm:$0xf0] }
  0x7c   : > { %v4431_v7 = vor.u32 %v5106_v0, %v4428_v1  ;;  %v5077_v19 = vld [vmem:[%s5700_s29 + $0x11c] sm:$0xf] }
  0x7d   : > { %1786 = vmatpush.bf16.msrb.mxu2 %v4571_v5  ;;  %1742 = vmatpush.bf16.msrb.mxu1 %v4475_v12  ;;  %v5130_v5 = vld [vmem:[#allocation7 + $0x13c] sm:$0xf]  ;;  %v5103_v12 = vld [vmem:[#allocation7 + $0x64] sm:$0xf] }
  0x7e   : > { %1830 = vmatpush.bf16.msrb.mxu3 %v4667_v4  ;;  %v5003_v4 = vor.u32 %v5251_v61, %v5002_v60  ;;  %v4527_v11 = vor.u32 %v5130_v5, %v4524_v6  ;;  %v4419_v15 = vor.u32 %v5103_v12, %v4416_v13  ;;  %v5797_v60 = vor.u32 %v5057_v49, %v4236_v53  ;;  %v4242_v61 = vld [vmem:[%s5700_s29 + $0x80] sm:$0xf]  ;;  %v5242_v6 = vld [vmem:[#allocation7 + $0x4b8] sm:$0xf0]  ;;  %v4292_v49 = vld [vmem:[%s5700_s29 + $0x104] sm:$0xf0] }
  0x7f   : > { %1874 = vmatpush.bf16.msrb.mxu0 %v4763_v17  ;;  %v4208_v17 = vld [vmem:[%s5700_s29 + $0x5c] sm:$0xf0]  ;;  %v4503_v5 = vor.u32 %v5124_v2, %v4500_v3  ;;  %v5218_v12 = vld [vmem:[#allocation7 + $0x3f8] sm:$0xf0] }
  0x80   : > { %v5070_v53 = vld [vmem:[%s5700_s29 + $0xe4] sm:$0xf] }
  0x81   : > { %1787 = vmatpush.bf16.msrb.mxu2 %v4559_v22  ;;  %1743 = vmatpush.bf16.msrb.mxu1 %v4463_v31  ;;  %v5777_v22 = vor.u32 %v5050_v16, %v4208_v17  ;;  %v5127_v31 = vld [vmem:[#allocation7 + $0x124] sm:$0xf]  ;;  %v4256_v17 = vld [vmem:[%s5700_s29 + $0xc4] sm:$0xf0] }
  0x82   : > { %1831 = vmatpush.bf16.msrb.mxu3 %v4655_v21  ;;  %v5053_v21 = vld [vmem:[%s5700_s29 + $0x58] sm:$0xf0]  ;;  %v4515_v34 = vor.u32 %v5127_v31, %v4512_v32  ;;  %v5063_v16 = vld [vmem:[%s5700_s29 + $0xac] sm:$0xf]  ;;  %v4488_v31 = vld [vmem:[#allocation7 + $0xfc] sm:$0xf0] }
  0x83   : > { %1875 = vmatpush.bf16.msrb.mxu0 %v4751_v36  ;;  %v5245_v36 = vld [vmem:[#allocation7 + $0x4d0] sm:$0xf0] }
  0x84   : > { %1744 = vmatmul.bf16.vlgmr.msrb.gmra.mxu1 %v5761_v50  ;;  %1788 = vmatmul.bf16.vlgmr.msrb.gmra.mxu2 %v5763_v52  ;;  %v4979_v41 = vor.u32 %v5245_v36, %v4978_v33  ;;  %v4954_v33 = vld [vmem:[#allocation7 + $0x498] sm:$0xf] }
  0x85   : > { %1956 = vmatpush.bf16.msra.mxu2 %v5027_v26  ;;  %1832 = vmatmul.bf16.vlgmr.msrb.gmra.mxu3 %v5758_v35  ;;  %v5783_v26 = vor.u32 %v5053_v21, %v4206_v20  ;;  %v4270_v21 = vld [vmem:[%s5700_s29 + $0xb8] sm:$0xf] }
  0x86   : > { %2000 = vmatpush.bf16.msra.mxu3 %v4455_v27  ;;  %1912 = vmatpush.bf16.msra.mxu1 %v4931_v42  ;;  %v5785_v27 = vor.u32 %v5054_v24, %v4214_v23  ;;  %v4407_v42 = vor.u32 %v5100_v37, %v4404_v38  ;;  %v5068_v23 = vld [vmem:[%s5700_s29 + $0xd0] sm:$0xf0]  ;;  %v5821_v24 = vor.u32 %v5063_v16, %v4256_v17  ;;  %v5094_v37 = vld [vmem:[#allocation7 + $0x1c] sm:$0xf]  ;;  %v4380_v38 = vld [vmem:[#allocation7 + $0x24] sm:$0xf0] }
  0x87   : > { %2044 = vmatpush.bf16.msra.mxu0 %v4551_v43  ;;  %v4882_v43 = vld [vmem:[#allocation7 + $0x408] sm:$0xf]  ;;  %v5825_v29 = vor.u32 %v5068_v23, %v4270_v21  ;;  %v5078_v17 = vld [vmem:[%s5700_s29 + $0x124] sm:$0xf]  ;;  %v4318_v23 = vld [vmem:[%s5700_s29 + $0x120] sm:$0xf] }
  0x88   : > { %1876 = vmatmul.bf16.vlgmr.msrb.gmra.mxu0 %v5765_v57  ;;  %v4883_v48 = vor.u32 %v5221_v44, %v4882_v43  ;;  %v5215_v43 = vld [vmem:[#allocation7 + $0x3e0] sm:$0xf0]  ;;  %v4312_v21 = vld [vmem:[%s5700_s29 + $0x134] sm:$0xf0] }
  0x89   : > { %1957 = vmatpush.bf16.msra.mxu2 %v5015_v58  ;;  %v4234_v58 = vld [vmem:[%s5700_s29 + $0x78] sm:$0xf] }
  0x8a   : > { %2001 = vmatpush.bf16.msra.mxu3 %v4443_v59  ;;  %1913 = vmatpush.bf16.msra.mxu1 %v4919_v62  ;;  %v5060_v59 = vld [vmem:[%s5700_s29 + $0x90] sm:$0xf0]  ;;  %v5061_v62 = vld [vmem:[%s5700_s29 + $0x98] sm:$0xf0] }
  0x8b   : > { %2045 = vmatpush.bf16.msra.mxu0 %v4539_v63  ;;  %v5801_v63 = vor.u32 %v5056_v54, %v4228_v56  ;;  %v5803_v0 = vor.u32 %v5060_v59, %v4234_v58  ;;  %v5805_v1 = vor.u32 %v5061_v62, %v4242_v61  ;;  %v4284_v54 = vld [vmem:[%s5700_s29 + $0xfc] sm:$0xf0]  ;;  %v4290_v56 = vld [vmem:[%s5700_s29 + $0xe8] sm:$0xf]  ;;  %v5074_v58 = vld [vmem:[%s5700_s29 + $0x100] sm:$0xf0] }
  0x8c   : > { %v4298_v61 = vld [vmem:[%s5700_s29 + $0xf0] sm:$0xf]  ;;  %v5075_v62 = vld [vmem:[%s5700_s29 + $0x108] sm:$0xf0]  ;;  %v5841_v2 = vor.u32 %v5070_v53, %v4284_v54  ;;  %v5843_v3 = vor.u32 %v5074_v58, %v4290_v56  ;;  %v4836_v53 = vld [vmem:[#allocation7 + $0x3b4] sm:$0xf0] }
  0x8d   : > { %1958 = vmatpush.bf16.msra.mxu2 %v5003_v4  ;;  %v4966_v4 = vld [vmem:[#allocation7 + $0x4b0] sm:$0xf]  ;;  %v5160_v56 = vld [vmem:[#allocation7 + $0x22c] sm:$0xf]  ;;  %v4644_v58 = vld [vmem:[#allocation7 + $0x234] sm:$0xf0] }
  0x8e   : > { %2002 = vmatpush.bf16.msra.mxu3 %v4431_v7  ;;  %1914 = vmatpush.bf16.msra.mxu1 %v4907_v10  ;;  %v5097_v7 = vld [vmem:[#allocation7 + $0x34] sm:$0xf]  ;;  %v4967_v9 = vor.u32 %v5242_v6, %v4966_v4  ;;  %v5845_v4 = vor.u32 %v5075_v62, %v4298_v61  ;;  %v4476_v6 = vld [vmem:[#allocation7 + $0xe4] sm:$0xf0]  ;;  %v4647_v61 = vor.u32 %v5160_v56, %v4644_v58  ;;  %v5232_v62 = vld [vmem:[#allocation7 + $0x46c] sm:$0xf] }
  0x8f   : > { %2046 = vmatpush.bf16.msra.mxu0 %v4527_v11  ;;  %v4395_v10 = vor.u32 %v5097_v7, %v4392_v8  ;;  %v4870_v11 = vld [vmem:[#allocation7 + $0x3f0] sm:$0xf]  ;;  %v4942_v8 = vld [vmem:[#allocation7 + $0x480] sm:$0xf] }
  0x90   : > { %v4871_v13 = vor.u32 %v5218_v12, %v4870_v11  ;;  %7002 = vst [vmem:[#allocation27_spill] sm:$0xff] %v5845_v4  ;;  %v5091_v11 = vld [vmem:[#allocation7 + $0x4] sm:$0xf]  ;;  %v4368_v12 = vld [vmem:[#allocation7 + $0xc] sm:$0xf0] }
  0x91   : > { %1959 = vmatpush.bf16.msra.mxu2 %v4991_v14  ;;  %v5064_v14 = vld [vmem:[%s5700_s29 + $0xb4] sm:$0xf]  ;;  %v4188_v56 = vld [vmem:[%s5700_s29 + $0x2c] sm:$0xf0]  ;;  %v4194_v58 = vld [vmem:[%s5700_s29 + $0x18] sm:$0xf] }
  0x92   : > { %2003 = vmatpush.bf16.msra.mxu3 %v4419_v15  ;;  %1915 = vmatpush.bf16.msra.mxu1 %v4895_v30  ;;  %v4264_v15 = vld [vmem:[%s5700_s29 + $0xcc] sm:$0xf0]  ;;  %v5121_v30 = vld [vmem:[#allocation7 + $0xf4] sm:$0xf] }
  0x93   : > { %2047 = vmatpush.bf16.msra.mxu0 %v4515_v34  ;;  %v5817_v20 = vor.u32 %v5064_v14, %v4264_v15  ;;  %v4491_v32 = vor.u32 %v5121_v30, %v4488_v31  ;;  %v5239_v34 = vld [vmem:[#allocation7 + $0x4a0] sm:$0xf0]  ;;  %v4846_v14 = vld [vmem:[#allocation7 + $0x3c0] sm:$0xf]  ;;  %v5212_v15 = vld [vmem:[#allocation7 + $0x3c8] sm:$0xf0]  ;;  %v5857_v31 = vor.u32 %v5078_v17, %v4320_v18 }
  0x94   : > { %1749 = vmatmul.bf16.gmra.mxu1 %v5781_v25  ;;  %1793 = vmatmul.bf16.gmra.mxu2 %v5783_v26  ;;  %v4955_v36 = vor.u32 %v5239_v34, %v4954_v33  ;;  %v4847_v16 = vor.u32 %v5212_v15, %v4846_v14  ;;  %v5081_v30 = vld [vmem:[%s5700_s29 + $0x138] sm:$0xf0]  ;;  %v5082_v33 = vld [vmem:[%s5700_s29 + $0x140] sm:$0xf0]  ;;  %v5115_v34 = vld [vmem:[#allocation7 + $0xc4] sm:$0xf] }
  0x95   : > { %1837 = vmatmul.bf16.gmra.mxu3 %v5777_v22  ;;  %1960 = vmatpush.bf16.msra.mxu2 %v4979_v41  ;;  %v4858_v41 = vld [vmem:[#allocation7 + $0x3d8] sm:$0xf]  ;;  %7003 = vst [vmem:[#allocation28_spill] sm:$0xff] %v5857_v31  ;;  %v5089_v15 = vld [vmem:[%s5700_s29 + $0x178] sm:$0xf0] }
  0x96   : > { %2004 = vmatpush.bf16.msra.mxu3 %v4407_v42  ;;  %1916 = vmatpush.bf16.msra.mxu1 %v4883_v48  ;;  %v4383_v42 = vor.u32 %v5094_v37, %v4380_v38  ;;  %v4859_v44 = vor.u32 %v5215_v43, %v4858_v41  ;;  %v5071_v48 = vld [vmem:[%s5700_s29 + $0xec] sm:$0xf]  ;;  %v5861_v37 = vor.u32 %v5077_v19, %v4312_v21  ;;  %v5184_v43 = vld [vmem:[#allocation7 + $0x2ec] sm:$0xf]  ;;  %v4354_v14 = vld [vmem:[%s5700_s29 + $0x160] sm:$0xf] }
  0x97   : > { %2048 = vmatpush.bf16.msra.mxu0 %v4503_v5  ;;  %v5837_v59 = vor.u32 %v5071_v48, %v4292_v49  ;;  %v5118_v5 = vld [vmem:[#allocation7 + $0xdc] sm:$0xf]  ;;  %v5863_v38 = vor.u32 %v5081_v30, %v4318_v23  ;;  %v5208_v49 = vld [vmem:[#allocation7 + $0x3ac] sm:$0xf]  ;;  %v5887_v19 = vor.u32 %v5089_v15, %v4354_v14  ;;  %v5181_v23 = vld [vmem:[#allocation7 + $0x2d4] sm:$0xf] }
  0x98   : > { %1881 = vmatmul.bf16.gmra.mxu0 %v5785_v27  ;;  %v4479_v7 = vor.u32 %v5118_v5, %v4476_v6  ;;  %7004 = vst [vmem:[#allocation29_spill] sm:$0xff] %v5861_v37  ;;  %v4839_v54 = vor.u32 %v5208_v49, %v4836_v53  ;;  %v4932_v5 = vld [vmem:[#allocation7 + $0x474] sm:$0xf0]  ;;  %v5085_v6 = vld [vmem:[%s5700_s29 + $0x15c] sm:$0xf] }
  0x99   : > { %1961 = vmatpush.bf16.msra.mxu2 %v4967_v9  ;;  %7001 = vst [vmem:[#allocation26_spill] sm:$0xff] %v5837_v59  ;;  %v5236_v9 = vld [vmem:[#allocation7 + $0x488] sm:$0xf0]  ;;  %v4728_v30 = vld [vmem:[#allocation7 + $0x2dc] sm:$0xf0] }
  0x9a   : > { %2005 = vmatpush.bf16.msra.mxu3 %v4395_v10  ;;  %1917 = vmatpush.bf16.msra.mxu1 %v4871_v13  ;;  %v4943_v10 = vor.u32 %v5236_v9, %v4942_v8  ;;  %v4371_v13 = vor.u32 %v5091_v11, %v4368_v12  ;;  %7005 = vst [vmem:[#allocation30_spill] sm:$0xff] %v5863_v38  ;;  %v5084_v9 = vld [vmem:[%s5700_s29 + $0x154] sm:$0xf]  ;;  %v4346_v11 = vld [vmem:[%s5700_s29 + $0x158] sm:$0xf] }
  0x9b   : > { %2049 = vmatpush.bf16.msra.mxu0 %v4491_v32  ;;  %v4326_v32 = vld [vmem:[%s5700_s29 + $0x128] sm:$0xf]  ;;  %v4935_v8 = vor.u32 %v5232_v62, %v4932_v5  ;;  %v5088_v12 = vld [vmem:[%s5700_s29 + $0x170] sm:$0xf0]  ;;  %7009 = vst [vmem:[#allocation34_spill] sm:$0xff] %v5887_v19 }
  0x9c   : > { %v5883_v17 = vor.u32 %v5088_v12, %v4346_v11  ;;  %v5229_v62 = vld [vmem:[#allocation7 + $0x454] sm:$0xf]  ;;  %v4920_v5 = vld [vmem:[#allocation7 + $0x45c] sm:$0xf0]  ;;  %v5178_v12 = vld [vmem:[#allocation7 + $0x2bc] sm:$0xf] }
  0x9d   : > { %1962 = vmatpush.bf16.msra.mxu2 %v4955_v36  ;;  %v4464_v36 = vld [vmem:[#allocation7 + $0xcc] sm:$0xf0]  ;;  %v4716_v14 = vld [vmem:[#allocation7 + $0x2c4] sm:$0xf0]  ;;  %v5202_v15 = vld [vmem:[#allocation7 + $0x37c] sm:$0xf] }
  0x9e   : > { %2006 = vmatpush.bf16.msra.mxu3 %v4383_v42  ;;  %1918 = vmatpush.bf16.msra.mxu1 %v4859_v44  ;;  %v4467_v41 = vor.u32 %v5115_v34, %v4464_v36  ;;  %v5865_v42 = vor.u32 %v5082_v33, %v4326_v32  ;;  %v4740_v44 = vld [vmem:[#allocation7 + $0x2f4] sm:$0xf0]  ;;  %7008 = vst [vmem:[#allocation33_spill] sm:$0xff] %v5883_v17  ;;  %v5205_v33 = vld [vmem:[#allocation7 + $0x394] sm:$0xf] }
  0x9f   : > { %2050 = vmatpush.bf16.msra.mxu0 %v4479_v7  ;;  %v4743_v48 = vor.u32 %v5184_v43, %v4740_v44  ;;  %v4348_v7 = vld [vmem:[%s5700_s29 + $0x174] sm:$0xf0]  ;;  %v4731_v32 = vor.u32 %v5181_v23, %v4728_v30  ;;  %v4824_v34 = vld [vmem:[#allocation7 + $0x39c] sm:$0xf0]  ;;  %v5157_v36 = vld [vmem:[#allocation7 + $0x214] sm:$0xf]  ;;  %v4719_v30 = vor.u32 %v5178_v12, %v4716_v14 }
  0xa0   : > { %7006 = vst [vmem:[#allocation31_spill] sm:$0xff] %v5865_v42  ;;  %v4632_v43 = vld [vmem:[#allocation7 + $0x21c] sm:$0xf0]  ;;  %v5055_v14 = vld [vmem:[%s5700_s29 + $0x68] sm:$0xf0] }
  0xa1   : > { %1963 = vmatpush.bf16.msra.mxu2 %v4943_v10  ;;  %v4340_v10 = vld [vmem:[%s5700_s29 + $0x16c] sm:$0xf0] }
  0xa2   : > { %2007 = vmatpush.bf16.msra.mxu3 %v4371_v13  ;;  %1919 = vmatpush.bf16.msra.mxu1 %v4847_v16  ;;  %v5877_v13 = vor.u32 %v5085_v6, %v4348_v7  ;;  %v5881_v16 = vor.u32 %v5084_v9, %v4340_v10  ;;  %v4923_v6 = vor.u32 %v5229_v62, %v4920_v5  ;;  %v5051_v62 = vld [vmem:[%s5700_s29 + $0x4c] sm:$0xf]  ;;  %v4216_v5 = vld [vmem:[%s5700_s29 + $0x64] sm:$0xf0] }
  0xa3   : > { %2051 = vmatpush.bf16.msra.mxu0 %v4467_v41  ;;  %v4827_v41 = vor.u32 %v5205_v33, %v4824_v34  ;;  %v5154_v34 = vld [vmem:[#allocation7 + $0x1fc] sm:$0xf] }
  0xa4   : > { %1754 = vmatmul.bf16.gmra.mxu1 %v5801_v63  ;;  %1798 = vmatmul.bf16.gmra.mxu2 %v5803_v0  ;;  %7007 = vst [vmem:[#allocation32_spill] sm:$0xff] %v5877_v13 }
  0xa5   : > { %1842 = vmatmul.bf16.gmra.mxu3 %v5797_v60  ;;  %2132 = vmatpush.bf16.msrb.mxu2 %v4743_v48  ;;  %v4635_v48 = vor.u32 %v5157_v36, %v4632_v43  ;;  %v4620_v36 = vld [vmem:[#allocation7 + $0x204] sm:$0xf0] }
  0xa6   : > { %2176 = vmatpush.bf16.msrb.mxu3 %v4839_v54  ;;  %2088 = vmatpush.bf16.msrb.mxu1 %v4647_v61  ;;  %v5044_v54 = vld [vmem:[%s5700_s29 + $0x14] sm:$0xf] }
  0xa7   : > { %2220 = vmatpush.bf16.msrb.mxu0 %v4935_v8  ;;  %v5048_v61 = vld [vmem:[%s5700_s29 + $0x30] sm:$0xf0]  ;;  %v5907_v8 = vor.u32 %v5044_v54, %v4188_v56  ;;  %v5226_v56 = vld [vmem:[#allocation7 + $0x43c] sm:$0xf] }
  0xa8   : > { %1886 = vmatmul.bf16.gmra.mxu0 %v5805_v1  ;;  %v5909_v9 = vor.u32 %v5048_v61, %v4194_v58  ;;  %v4908_v58 = vld [vmem:[#allocation7 + $0x444] sm:$0xf0] }
  0xa9   : > { %2133 = vmatpush.bf16.msrb.mxu2 %v4731_v32  ;;  %v4812_v32 = vld [vmem:[#allocation7 + $0x384] sm:$0xf0]  ;;  %v4911_v61 = vor.u32 %v5226_v56, %v4908_v58 }
  0xaa   : > { %2177 = vmatpush.bf16.msrb.mxu3 %v4827_v41  ;;  %2089 = vmatpush.bf16.msrb.mxu1 %v4635_v48  ;;  %7010 = vst [vmem:[#allocation35_spill] sm:$0xff] %v5909_v9  ;;  %v4815_v33 = vor.u32 %v5202_v15, %v4812_v32  ;;  %v4623_v41 = vor.u32 %v5154_v34, %v4620_v36  ;;  %v5175_v15 = vld [vmem:[#allocation7 + $0x2a4] sm:$0xf] }
  0xab   : > { %2221 = vmatpush.bf16.msrb.mxu0 %v4923_v6  ;;  %v4222_v6 = vld [vmem:[%s5700_s29 + $0x50] sm:$0xf]  ;;  %v5935_v34 = vor.u32 %v5051_v62, %v4216_v5 }
  0xac   : > { %v5937_v36 = vor.u32 %v5055_v14, %v4222_v6 }
  0xad   : > { %2134 = vmatpush.bf16.msrb.mxu2 %v4719_v30  ;;  %v4704_v30 = vld [vmem:[#allocation7 + $0x2ac] sm:$0xf0] }
  0xae   : > { %2178 = vmatpush.bf16.msrb.mxu3 %v4815_v33  ;;  %2090 = vmatpush.bf16.msrb.mxu1 %v4623_v41  ;;  %v4707_v32 = vor.u32 %v5175_v15, %v4704_v30  ;;  %7011 = vst [vmem:[#allocation36_spill] sm:$0xff] %v5937_v36  ;;  %v5223_v30 = vld [vmem:[#allocation7 + $0x424] sm:$0xf] }
  0xaf   : > { %2222 = vmatpush.bf16.msrb.mxu0 %v4911_v61 }
  0xb1   : > { %2135 = vmatpush.bf16.msrb.mxu2 %v4707_v32  ;;  %v4896_v32 = vld [vmem:[#allocation7 + $0x42c] sm:$0xf0] }
  0xb4   : > { %1759 = vmatmul.bf16.gmra.mxu1 %v5821_v24  ;;  %1803 = vmatmul.bf16.gmra.mxu2 %v5823_v28 }
  0xb5   : > { %1847 = vmatmul.bf16.gmra.mxu3 %v5817_v20 }
  0xb8   : > { %1891 = vmatmul.bf16.gmra.mxu0 %v5825_v29 }
  0xc4   : > { %1764 = vmatmul.bf16.gmra.mxu1 %v5841_v2  ;;  %1808 = vmatmul.bf16.gmra.mxu2 %v5843_v3 }
  0xc5   : > { %1852 = vmatmul.bf16.gmra.mxu3 %v5837_v59 }
  0xc8   : > { %1896 = vmatmul.bf16.gmra.mxu0 %v5845_v4 }
  0xd4   : > { %1769 = vmatmul.bf16.gmra.mxu1 %v5861_v37  ;;  %1813 = vmatmul.bf16.gmra.mxu2 %v5863_v38  ;;  %v4596_v38 = vld [vmem:[#allocation7 + $0x1d4] sm:$0xf0] }
  0xd5   : > { %1857 = vmatmul.bf16.gmra.mxu3 %v5857_v31 }
  0xd8   : > { %1901 = vmatmul.bf16.gmra.mxu0 %v5865_v42 }
  0xe1   : > { %v5885_v18 = vpop.f32.mrf.mxu1 }
  0xe3   : > { %v5890_v21 = vpop.f32.mrf.mxu0 }
  0xe4   : > { %1774 = vmatmul.bf16.gmra.mxu1 %v5881_v16  ;;  %1818 = vmatmul.bf16.gmra.mxu2 %v5883_v17 }
  0xe5   : > { %1862 = vmatmul.bf16.gmra.mxu3 %v5877_v13  ;;  %v4608_v13 = vld [vmem:[#allocation7 + $0x1ec] sm:$0xf0] }
  0xe7   : > { %v5895_v44 = vpop.f32.mrf.mxu2 }
  0xe8   : > { %1906 = vmatmul.bf16.gmra.mxu0 %v5887_v19 }
  0xe9   : > { %v5897_v49 = vpop.f32.mrf.mxu1 }
  0xea   : > { %v5916_v23 = vpop.f32.mrf.mxu3 }
  0xeb   : > { %v5899_v53 = vpop.f32.mrf.mxu0 }
  0xef   : > { %v5905_v7 = vpop.f32.mrf.mxu2 }
  0xf1   : > { %v5911_v10 = vpop.f32.mrf.mxu1 }
  0xf2   : > { %v5930_v12 = vpop.f32.mrf.mxu3 }
  0xf3   : > { %v5914_v11 = vpop.f32.mrf.mxu0 }
  0xf4   : > { %1920 = vmatmul.bf16.vlgmr.msra.gmra.mxu1 %v5907_v8  ;;  %1964 = vmatmul.bf16.vlgmr.msra.gmra.mxu2 %v5909_v9  ;;  %v4800_v9 = vld [vmem:[#allocation7 + $0x36c] sm:$0xf0] }
  0xf5   : > { %2008 = vmatmul.bf16.vlgmr.msra.gmra.mxu3 %v5728_v51  ;;  %v5199_v51 = vld [vmem:[#allocation7 + $0x364] sm:$0xf] }
  0xf6   : > { %v4803_v61 = vor.u32 %v5199_v51, %v4800_v9 }
  0xf7   : > { %v5921_v43 = vpop.f32.mrf.mxu2 }
  0xf8   : > { %2052 = vmatmul.bf16.vlgmr.msra.gmra.mxu0 %v5761_v50  ;;  %v5151_v50 = vld [vmem:[#allocation7 + $0x1e4] sm:$0xf]  ;;  %2179 = vmatpush.bf16.msrb.mxu3 %v4803_v61  ;;  %v5172_v61 = vld [vmem:[#allocation7 + $0x28c] sm:$0xf] }
  0xf9   : > { %v5923_v48 = vpop.f32.mrf.mxu1  ;;  %v4611_v62 = vor.u32 %v5151_v50, %v4608_v13  ;;  %v4250_v50 = vld [vmem:[%s5700_s29 + $0x88] sm:$0xf]  ;;  %v5062_v13 = vld [vmem:[%s5700_s29 + $0xa0] sm:$0xf0] }
  0xfa   : > { %v5953_v31 = vor.u32 %v5062_v13, %v4250_v50 }
  0xfb   : > { %v5925_v54 = vpop.f32.mrf.mxu0  ;;  %2091 = vmatpush.bf16.msrb.mxu1 %v4611_v62  ;;  %v4692_v62 = vld [vmem:[#allocation7 + $0x294] sm:$0xf0] }
  0xff   : > { %v5933_v33 = vpop.f32.mrf.mxu2 }
 0x101   : > { %v1745_v41 = vpop.f32.mrf.mxu1 }
 0x102   : > { %v1746_v56 = vadd.f32 %v1745_v41, %v5890_v21  ;;  %v5058_v41 = vld [vmem:[%s5700_s29 + $0x84] sm:$0xf] }
 0x104   : > { %1925 = vmatmul.bf16.gmra.mxu1 %v5935_v34  ;;  %1969 = vmatmul.bf16.gmra.mxu2 %v5937_v36  ;;  %v4244_v36 = vld [vmem:[%s5700_s29 + $0x9c] sm:$0xf0] }
 0x105   : > { %2013 = vmatmul.bf16.gmra.mxu3 %v5746_v47  ;;  %v1877_v58 = vpop.f32.mrf.mxu0  ;;  %v4899_v47 = vor.u32 %v5223_v30, %v4896_v32 }
 0x107   : > { %v1789_v21 = vpop.f32.mrf.mxu2  ;;  %2223 = vmatpush.bf16.msrb.mxu0 %v4899_v47 }
 0x108   : > { %v1833_v5 = vpop.f32.mrf.mxu3  ;;  %2057 = vmatmul.bf16.gmra.mxu0 %v5781_v25  ;;  %v1790_v6 = vadd.f32 %v1789_v21, %v1746_v56  ;;  %v5196_v25 = vld [vmem:[#allocation7 + $0x34c] sm:$0xf]  ;;  %v4695_v56 = vor.u32 %v5172_v61, %v4692_v62  ;;  %v4788_v21 = vld [vmem:[#allocation7 + $0x354] sm:$0xf0] }
 0x109   : > { %v1747_v14 = vpop.f32.mrf.mxu1 }
 0x10a   : > { %v1834_v15 = vadd.f32 %v1833_v5, %v1790_v6  ;;  %v1748_v51 = vadd.f32 %v1747_v14, %v5899_v53  ;;  %v4791_v6 = vor.u32 %v5196_v25, %v4788_v21  ;;  %v5951_v14 = vor.u32 %v5058_v41, %v4244_v36  ;;  %2136 = vmatpush.bf16.msrb.mxu2 %v4695_v56  ;;  %v5169_v56 = vld [vmem:[#allocation7 + $0x274] sm:$0xf]  ;;  %v4680_v21 = vld [vmem:[#allocation7 + $0x27c] sm:$0xf0] }
 0x10c   : > { %v5949_v17 = vadd.f32 %v1877_v58, %v1834_v15  ;;  %2180 = vmatpush.bf16.msrb.mxu3 %v4791_v6  ;;  %v5148_v15 = vld [vmem:[#allocation7 + $0x1cc] sm:$0xf]  ;;  %v4683_v6 = vor.u32 %v5169_v56, %v4680_v21 }
 0x10d   : > { %v1879_v9 = vpop.f32.mrf.mxu0  ;;  %v4599_v61 = vor.u32 %v5148_v15, %v4596_v38 }
 0x10e   : > { %2137 = vmatpush.bf16.msrb.mxu2 %v4683_v6 }
 0x10f   : > { %v1791_v5 = vpop.f32.mrf.mxu2  ;;  %2092 = vmatpush.bf16.msrb.mxu1 %v4599_v61 }
 0x110   : > { %v1835_v19 = vpop.f32.mrf.mxu3  ;;  %v1792_v53 = vadd.f32 %v1791_v5, %v1748_v51  ;;  %v5065_v5 = vld [vmem:[%s5700_s29 + $0xbc] sm:$0xf] }
 0x111   : > { %v1750_v30 = vpop.f32.mrf.mxu1 }
 0x112   : > { %v1836_v32 = vadd.f32 %v1835_v19, %v1792_v53  ;;  %v1751_v58 = vadd.f32 %v1750_v30, %v5914_v11  ;;  %v5220_v19 = vld [vmem:[#allocation7 + $0x40c] sm:$0xf]  ;;  %v4884_v11 = vld [vmem:[#allocation7 + $0x414] sm:$0xf0]  ;;  %v4272_v53 = vld [vmem:[%s5700_s29 + $0xd4] sm:$0xf0] }
 0x113   : > { %v4887_v51 = vor.u32 %v5220_v19, %v4884_v11  ;;  %v4278_v30 = vld [vmem:[%s5700_s29 + $0xc0] sm:$0xf]  ;;  %v5193_v19 = vld [vmem:[#allocation7 + $0x334] sm:$0xf]  ;;  %v4776_v11 = vld [vmem:[#allocation7 + $0x33c] sm:$0xf0] }
 0x114   : > { %1930 = vmatmul.bf16.gmra.mxu1 %v5951_v14  ;;  %1974 = vmatmul.bf16.gmra.mxu2 %v5953_v31  ;;  %v5959_v25 = vadd.f32 %v1879_v9, %v1836_v32  ;;  %v5069_v32 = vld [vmem:[%s5700_s29 + $0xd8] sm:$0xf0] }
 0x115   : > { %2018 = vmatmul.bf16.gmra.mxu3 %v5724_v45  ;;  %v1882_v47 = vpop.f32.mrf.mxu0  ;;  %2224 = vmatpush.bf16.msrb.mxu0 %v4887_v51  ;;  %v4779_v51 = vor.u32 %v5193_v19, %v4776_v11  ;;  %v5971_v45 = vor.u32 %v5069_v32, %v4278_v30 }
 0x117   : > { %v1794_v41 = vpop.f32.mrf.mxu2  ;;  %7012 = vst [vmem:[#allocation37_spill] sm:$0xff] %v5971_v45  ;;  %2181 = vmatpush.bf16.msrb.mxu3 %v4779_v51  ;;  %v4668_v51 = vld [vmem:[#allocation7 + $0x264] sm:$0xf0] }
 0x118   : > { %v1838_v36 = vpop.f32.mrf.mxu3  ;;  %2062 = vmatmul.bf16.gmra.mxu0 %v5801_v63  ;;  %v1795_v50 = vadd.f32 %v1794_v41, %v1751_v58  ;;  %v5145_v58 = vld [vmem:[#allocation7 + $0x1b4] sm:$0xf]  ;;  %v4584_v41 = vld [vmem:[#allocation7 + $0x1bc] sm:$0xf0] }
 0x119   : > { %v1752_v38 = vpop.f32.mrf.mxu1 }
 0x11a   : > { %v1839_v13 = vadd.f32 %v1838_v36, %v1795_v50  ;;  %v1753_v62 = vadd.f32 %v1752_v38, %v5925_v54  ;;  %v4587_v50 = vor.u32 %v5145_v58, %v4584_v41  ;;  %v5969_v38 = vor.u32 %v5065_v5, %v4272_v53  ;;  %v5217_v5 = vld [vmem:[#allocation7 + $0x3f4] sm:$0xf]  ;;  %v4872_v53 = vld [vmem:[#allocation7 + $0x3fc] sm:$0xf0]  ;;  %v5190_v41 = vld [vmem:[#allocation7 + $0x31c] sm:$0xf] }
 0x11b   : > { %v4875_v30 = vor.u32 %v5217_v5, %v4872_v53  ;;  %v5142_v53 = vld [vmem:[#allocation7 + $0x19c] sm:$0xf] }
 0x11c   : > { %v5967_v15 = vadd.f32 %v1882_v47, %v1839_v13  ;;  %2093 = vmatpush.bf16.msrb.mxu1 %v4587_v50  ;;  %v4764_v50 = vld [vmem:[#allocation7 + $0x324] sm:$0xf0] }
 0x11d   : > { %v1884_v9 = vpop.f32.mrf.mxu0  ;;  %2225 = vmatpush.bf16.msrb.mxu0 %v4875_v30  ;;  %v4572_v30 = vld [vmem:[#allocation7 + $0x1a4] sm:$0xf0] }
 0x11f   : > { %v1796_v36 = vpop.f32.mrf.mxu2 }
 0x120   : > { %v1840_v61 = vpop.f32.mrf.mxu3  ;;  %v1797_v54 = vadd.f32 %v1796_v36, %v1753_v62 }
 0x121   : > { %v1755_v56 = vpop.f32.mrf.mxu1 }
 0x122   : > { %v1841_v21 = vadd.f32 %v1840_v61, %v1797_v54  ;;  %v1756_v47 = vadd.f32 %v1755_v56, %v5885_v18  ;;  %v5072_v54 = vld [vmem:[%s5700_s29 + $0xf4] sm:$0xf]  ;;  %v4300_v56 = vld [vmem:[%s5700_s29 + $0x10c] sm:$0xf0] }
 0x124   : > { %1935 = vmatmul.bf16.gmra.mxu1 %v5969_v38  ;;  %1979 = vmatmul.bf16.gmra.mxu2 %v5971_v45  ;;  %v5977_v6 = vadd.f32 %v1884_v9, %v1841_v21  ;;  %v5166_v9 = vld [vmem:[#allocation7 + $0x25c] sm:$0xf]  ;;  %v4306_v21 = vld [vmem:[%s5700_s29 + $0xf8] sm:$0xf] }
 0x125   : > { %2023 = vmatmul.bf16.gmra.mxu3 %v5742_v39  ;;  %v1887_v13 = vpop.f32.mrf.mxu0  ;;  %v4671_v36 = vor.u32 %v5166_v9, %v4668_v51  ;;  %v4767_v39 = vor.u32 %v5190_v41, %v4764_v50 }
 0x127   : > { %v1799_v32 = vpop.f32.mrf.mxu2  ;;  %2138 = vmatpush.bf16.msrb.mxu2 %v4671_v36  ;;  %2182 = vmatpush.bf16.msrb.mxu3 %v4767_v39  ;;  %v4860_v36 = vld [vmem:[#allocation7 + $0x3e4] sm:$0xf0] }
 0x128   : > { %v1843_v62 = vpop.f32.mrf.mxu3  ;;  %2067 = vmatmul.bf16.gmra.mxu0 %v5821_v24  ;;  %v1800_v18 = vadd.f32 %v1799_v32, %v1756_v47  ;;  %v5076_v47 = vld [vmem:[%s5700_s29 + $0x110] sm:$0xf0] }
 0x129   : > { %v1757_v61 = vpop.f32.mrf.mxu1 }
 0x12a   : > { %v1844_v19 = vadd.f32 %v1843_v62, %v1800_v18  ;;  %v1758_v11 = vadd.f32 %v1757_v61, %v5897_v49  ;;  %v4575_v62 = vor.u32 %v5142_v53, %v4572_v30  ;;  %v5987_v18 = vor.u32 %v5072_v54, %v4300_v56  ;;  %v5163_v54 = vld [vmem:[#allocation7 + $0x244] sm:$0xf]  ;;  %v4656_v56 = vld [vmem:[#allocation7 + $0x24c] sm:$0xf0] }
 0x12b   : > { %v5989_v61 = vor.u32 %v5076_v47, %v4306_v21 }
 0x12c   : > { %v5984_v45 = vadd.f32 %v1887_v13, %v1844_v19  ;;  %2094 = vmatpush.bf16.msrb.mxu1 %v4575_v62  ;;  %v5214_v19 = vld [vmem:[#allocation7 + $0x3dc] sm:$0xf]  ;;  %v5187_v62 = vld [vmem:[#allocation7 + $0x304] sm:$0xf] }
 0x12d   : > { %v1889_v58 = vpop.f32.mrf.mxu0  ;;  %7013 = vst [vmem:[#allocation38_spill] sm:$0xff] %v5989_v61  ;;  %v4863_v50 = vor.u32 %v5214_v19, %v4860_v36  ;;  %v5079_v19 = vld [vmem:[%s5700_s29 + $0x12c] sm:$0xf] }
 0x12f   : > { %v1801_v49 = vpop.f32.mrf.mxu2  ;;  %2226 = vmatpush.bf16.msrb.mxu0 %v4863_v50 }
 0x130   : > { %v1845_v5 = vpop.f32.mrf.mxu3  ;;  %v1802_v32 = vadd.f32 %v1801_v49, %v1758_v11  ;;  %v4752_v49 = vld [vmem:[#allocation7 + $0x30c] sm:$0xf0] }
 0x131   : > { %v1760_v9 = vpop.f32.mrf.mxu1 }
 0x132   : > { %v1846_v51 = vadd.f32 %v1845_v5, %v1802_v32  ;;  %v1761_v41 = vadd.f32 %v1760_v9, %v5911_v10  ;;  %v4659_v10 = vor.u32 %v5163_v54, %v4656_v56  ;;  %v5139_v32 = vld [vmem:[#allocation7 + $0x184] sm:$0xf]  ;;  %v4755_v9 = vor.u32 %v5187_v62, %v4752_v49  ;;  %v4328_v56 = vld [vmem:[%s5700_s29 + $0x144] sm:$0xf0]  ;;  %v4848_v62 = vld [vmem:[#allocation7 + $0x3cc] sm:$0xf0] }
 0x134   : > { %1940 = vmatmul.bf16.gmra.mxu1 %v5987_v18  ;;  %1984 = vmatmul.bf16.gmra.mxu2 %v5989_v61  ;;  %v5995_v39 = vadd.f32 %v1889_v58, %v1846_v51  ;;  %v4560_v51 = vld [vmem:[#allocation7 + $0x18c] sm:$0xf0]  ;;  %v5162_v61 = vld [vmem:[#allocation7 + $0x238] sm:$0xf0] }
 0x135   : > { %2028 = vmatmul.bf16.gmra.mxu3 %v5726_v46  ;;  %v1892_v13 = vpop.f32.mrf.mxu0  ;;  %2139 = vmatpush.bf16.msrb.mxu2 %v4659_v10  ;;  %v4563_v36 = vor.u32 %v5139_v32, %v4560_v51  ;;  %v5211_v46 = vld [vmem:[#allocation7 + $0x3c4] sm:$0xf]  ;;  %v5114_v51 = vld [vmem:[#allocation7 + $0xb8] sm:$0xf0] }
 0x136   : > { %2183 = vmatpush.bf16.msrb.mxu3 %v4755_v9 }
 0x137   : > { %v1804_v21 = vpop.f32.mrf.mxu2  ;;  %2095 = vmatpush.bf16.msrb.mxu1 %v4563_v36 }
 0x138   : > { %v1848_v11 = vpop.f32.mrf.mxu3  ;;  %2072 = vmatmul.bf16.gmra.mxu0 %v5841_v2  ;;  %v1805_v5 = vadd.f32 %v1804_v21, %v1761_v41  ;;  %v4334_v41 = vld [vmem:[%s5700_s29 + $0x130] sm:$0xf]  ;;  %v5083_v21 = vld [vmem:[%s5700_s29 + $0x148] sm:$0xf0] }
 0x139   : > { %v1762_v47 = vpop.f32.mrf.mxu1 }
 0x13a   : > { %v1849_v53 = vadd.f32 %v1848_v11, %v1805_v5  ;;  %v1763_v30 = vadd.f32 %v1762_v47, %v5923_v48  ;;  %v6005_v5 = vor.u32 %v5079_v19, %v4328_v56  ;;  %v6007_v48 = vor.u32 %v5083_v21, %v4334_v41  ;;  %v4554_v19 = vld [vmem:[#allocation7 + $0x170] sm:$0xf] }
 0x13c   : > { %v6000_v50 = vadd.f32 %v1892_v13, %v1849_v53  ;;  %7014 = vst [vmem:[#allocation39_spill] sm:$0xff] %v6005_v5  ;;  %v4851_v53 = vor.u32 %v5211_v46, %v4848_v62  ;;  %v5138_v46 = vld [vmem:[#allocation7 + $0x178] sm:$0xf0]  ;;  %v5256_v62 = vld [vmem:[#allocation7 + $0x52c] sm:$0xf] }
 0x13d   : > { %v1894_v58 = vpop.f32.mrf.mxu0  ;;  %7015 = vst [vmem:[#allocation40_spill] sm:$0xff] %v6007_v48  ;;  %v4555_v41 = vor.u32 %v5138_v46, %v4554_v19 }
 0x13e   : > { %2227 = vmatpush.bf16.msrb.mxu0 %v4851_v53 }
 0x13f   : > { %v1806_v10 = vpop.f32.mrf.mxu2  ;;  %2352 = vmatpush.bf16.msra.mxu3 %v4555_v41 }
 0x140   : > { %v1850_v54 = vpop.f32.mrf.mxu3  ;;  %v1807_v11 = vadd.f32 %v1806_v10, %v1763_v30  ;;  %v4458_v30 = vld [vmem:[#allocation7 + $0xb0] sm:$0xf] }
 0x141   : > { %v1765_v47 = vpop.f32.mrf.mxu1 }
 0x142   : > { %v1851_v49 = vadd.f32 %v1850_v54, %v1807_v11  ;;  %v1766_v36 = vadd.f32 %v1765_v47, %v5895_v44  ;;  %v4459_v54 = vor.u32 %v5114_v51, %v4458_v30  ;;  %v4362_v44 = vld [vmem:[%s5700_s29 + $0x168] sm:$0xf]  ;;  %v5090_v30 = vld [vmem:[%s5700_s29 + $0x180] sm:$0xf0]  ;;  %v4650_v51 = vld [vmem:[#allocation7 + $0x230] sm:$0xf] }
 0x144   : > { %1945 = vmatmul.bf16.gmra.mxu1 %v6005_v5  ;;  %1989 = vmatmul.bf16.gmra.mxu2 %v6007_v48  ;;  %v6012_v32 = vadd.f32 %v1894_v58, %v1851_v49  ;;  %v5028_v49 = vld [vmem:[#allocation7 + $0x534] sm:$0xf0]  ;;  %v5086_v48 = vld [vmem:[%s5700_s29 + $0x164] sm:$0xf] }
 0x145   : > { %2033 = vmatmul.bf16.gmra.mxu3 %v5744_v40  ;;  %v1897_v13 = vpop.f32.mrf.mxu0  ;;  %2308 = vmatpush.bf16.msra.mxu2 %v4459_v54  ;;  %v5031_v40 = vor.u32 %v5256_v62, %v5028_v49  ;;  %v5111_v62 = vld [vmem:[#allocation7 + $0xa0] sm:$0xf0]  ;;  %v5253_v49 = vld [vmem:[#allocation7 + $0x514] sm:$0xf] }
 0x147   : > { %v1809_v56 = vpop.f32.mrf.mxu2  ;;  %2264 = vmatpush.bf16.msra.mxu1 %v5031_v40 }
 0x148   : > { %v1853_v9 = vpop.f32.mrf.mxu3  ;;  %2077 = vmatmul.bf16.gmra.mxu0 %v5861_v37  ;;  %v1810_v21 = vadd.f32 %v1809_v56, %v1766_v36  ;;  %v4356_v37 = vld [vmem:[%s5700_s29 + $0x17c] sm:$0xf0]  ;;  %v4651_v36 = vor.u32 %v5162_v61, %v4650_v51  ;;  %v6025_v56 = vor.u32 %v5090_v30, %v4362_v44  ;;  %v5016_v30 = vld [vmem:[#allocation7 + $0x51c] sm:$0xf0] }
 0x149   : > { %v1767_v58 = vpop.f32.mrf.mxu1 }
 0x14a   : > { %v1854_v10 = vadd.f32 %v1853_v9, %v1810_v21  ;;  %v1768_v19 = vadd.f32 %v1767_v58, %v5905_v7  ;;  %v6023_v9 = vor.u32 %v5086_v48, %v4356_v37  ;;  %7017 = vst [vmem:[#allocation42_spill] sm:$0xff] %v6025_v56  ;;  %2396 = vmatpush.bf16.msra.mxu0 %v4651_v36  ;;  %v4542_v48 = vld [vmem:[#allocation7 + $0x158] sm:$0xf]  ;;  %v5135_v58 = vld [vmem:[#allocation7 + $0x160] sm:$0xf0] }
 0x14c   : > { %v6019_v47 = vadd.f32 %v1897_v13, %v1854_v10  ;;  %7016 = vst [vmem:[#allocation41_spill] sm:$0xff] %v6023_v9  ;;  %v4446_v10 = vld [vmem:[#allocation7 + $0x98] sm:$0xf] }
 0x14d   : > { %v1899_v11 = vpop.f32.mrf.mxu0  ;;  %v4447_v40 = vor.u32 %v5111_v62, %v4446_v10  ;;  %v4638_v62 = vld [vmem:[#allocation7 + $0x218] sm:$0xf] }
 0x14f   : > { %v1811_v54 = vpop.f32.mrf.mxu2  ;;  %2309 = vmatpush.bf16.msra.mxu2 %v4447_v40 }
 0x150   : > { %v1855_v53 = vpop.f32.mrf.mxu3  ;;  %v1812_v46 = vadd.f32 %v1811_v54, %v1768_v19  ;;  %v5019_v19 = vor.u32 %v5253_v49, %v5016_v30 }
 0x151   : > { %v1770_v41 = vpop.f32.mrf.mxu1 }
 0x152   : > { %v1856_v21 = vadd.f32 %v1855_v53, %v1812_v46  ;;  %v1771_v37 = vadd.f32 %v1770_v41, %v5921_v43  ;;  %v4543_v53 = vor.u32 %v5135_v58, %v4542_v48  ;;  %2265 = vmatpush.bf16.msra.mxu1 %v5019_v19  ;;  %v5159_v43 = vld [vmem:[#allocation7 + $0x220] sm:$0xf0]  ;;  %v4530_v58 = vld [vmem:[#allocation7 + $0x140] sm:$0xf]  ;;  %v5004_v19 = vld [vmem:[#allocation7 + $0x504] sm:$0xf0] }
 0x153   : > { %v4639_v40 = vor.u32 %v5159_v43, %v4638_v62  ;;  %v4626_v43 = vld [vmem:[#allocation7 + $0x200] sm:$0xf] }
 0x154   : > { %1950 = vmatmul.bf16.gmra.mxu1 %v6023_v9  ;;  %1994 = vmatmul.bf16.gmra.mxu2 %v6025_v56  ;;  %v6030_v7 = vadd.f32 %v1899_v11, %v1856_v21 }
 0x155   : > { %2038 = vmatmul.bf16.gmra.mxu3 %v5730_v55  ;;  %v1902_v13 = vpop.f32.mrf.mxu0  ;;  %2397 = vmatpush.bf16.msra.mxu0 %v4639_v40 }
 0x156   : > { %2353 = vmatpush.bf16.msra.mxu3 %v4543_v53  ;;  %v5132_v53 = vld [vmem:[#allocation7 + $0x148] sm:$0xf0] }
 0x157   : > { %v1814_v44 = vpop.f32.mrf.mxu2  ;;  %v4531_v30 = vor.u32 %v5132_v53, %v4530_v58 }
 0x158   : > { %v1858_v61 = vpop.f32.mrf.mxu3  ;;  %2082 = vmatmul.bf16.gmra.mxu0 %v5881_v16  ;;  %v1815_v51 = vadd.f32 %v1814_v44, %v1771_v37 }
 0x159   : > { %v1772_v36 = vpop.f32.mrf.mxu1 }
 0x15a   : > { %v1859_v54 = vadd.f32 %v1858_v61, %v1815_v51  ;;  %v1773_v10 = vadd.f32 %v1772_v36, %v5933_v33  ;;  %v5108_v61 = vld [vmem:[#allocation7 + $0x88] sm:$0xf0]  ;;  %v5250_v51 = vld [vmem:[#allocation7 + $0x4fc] sm:$0xf]  ;;  %2354 = vmatpush.bf16.msra.mxu3 %v4531_v30 }
 0x15c   : > { %v6034_v11 = vadd.f32 %v1902_v13, %v1859_v54  ;;  %v4434_v13 = vld [vmem:[#allocation7 + $0x80] sm:$0xf]  ;;  %v5007_v54 = vor.u32 %v5250_v51, %v5004_v19  ;;  %v5247_v51 = vld [vmem:[#allocation7 + $0x4e4] sm:$0xf] }
 0x15d   : > { %v1904_v46 = vpop.f32.mrf.mxu0  ;;  %v4435_v44 = vor.u32 %v5108_v61, %v4434_v13  ;;  %v5105_v61 = vld [vmem:[#allocation7 + $0x70] sm:$0xf0] }
 0x15e   : > { %2266 = vmatpush.bf16.msra.mxu1 %v5007_v54 }
 0x15f   : > { %v1816_v41 = vpop.f32.mrf.mxu2  ;;  %2310 = vmatpush.bf16.msra.mxu2 %v4435_v44 }
 0x160   : > { %v1860_v21 = vpop.f32.mrf.mxu3  ;;  %v1817_v55 = vadd.f32 %v1816_v41, %v1773_v10  ;;  %v5156_v41 = vld [vmem:[#allocation7 + $0x208] sm:$0xf0] }
 0x161   : > { %v1775_v56 = vpop.f32.mrf.mxu1  ;;  %v4627_v13 = vor.u32 %v5156_v41, %v4626_v43 }
 0x162   : > { %v1861_v48 = vadd.f32 %v1860_v21, %v1817_v55  ;;  %v1776_v55 = vadd.f32 %v1775_v56, %v5916_v23  ;;  %v4422_v56 = vld [vmem:[#allocation7 + $0x68] sm:$0xf] }
 0x163   : > { %2398 = vmatpush.bf16.msra.mxu0 %v4627_v13  ;;  %v4423_v44 = vor.u32 %v5105_v61, %v4422_v56  ;;  %v5153_v56 = vld [vmem:[#allocation7 + $0x1f0] sm:$0xf0] }
 0x164   : > { %2096 = vmatmul.bf16.vlgmr.msrb.gmra.mxu1 %v5763_v52  ;;  %2140 = vmatmul.bf16.vlgmr.msrb.gmra.mxu2 %v5758_v35  ;;  %v6040_v49 = vadd.f32 %v1904_v46, %v1861_v48 }
 0x165   : > { %2184 = vmatmul.bf16.vlgmr.msrb.gmra.mxu3 %v5765_v57  ;;  %v1907_v37 = vpop.f32.mrf.mxu0  ;;  %2311 = vmatpush.bf16.msra.mxu2 %v4423_v44 }
 0x167   : > { %v1819_v36 = vpop.f32.mrf.mxu2 }
 0x168   : > { %v1863_v33 = vpop.f32.mrf.mxu3  ;;  %2228 = vmatmul.bf16.vlgmr.msrb.gmra.mxu0 %v5907_v8  ;;  %v1820_v21 = vadd.f32 %v1819_v36, %v1776_v55 }
 0x169   : > { %v1777_v10 = vpop.f32.mrf.mxu1 }
 0x16a   : > { %v1864_v46 = vadd.f32 %v1863_v33, %v1820_v21  ;;  %v1778_v23 = vadd.f32 %v1777_v10, %v5930_v12  ;;  %v5129_v12 = vld [vmem:[#allocation7 + $0x130] sm:$0xf0]  ;;  %v4992_v21 = vld [vmem:[#allocation7 + $0x4ec] sm:$0xf0] }
 0x16b   : > { %v4995_v43 = vor.u32 %v5247_v51, %v4992_v21 }
 0x16c   : > { %v6045_v40 = vadd.f32 %v1907_v37, %v1864_v46  ;;  %v4518_v37 = vld [vmem:[#allocation7 + $0x128] sm:$0xf] }
 0x16d   : > { %v1909_v62 = vpop.f32.mrf.mxu0  ;;  %v4519_v54 = vor.u32 %v5129_v12, %v4518_v37  ;;  %2267 = vmatpush.bf16.msra.mxu1 %v4995_v43  ;;  %v5126_v12 = vld [vmem:[#allocation7 + $0x118] sm:$0xf0] }
 0x16f   : > { %v1821_v58 = vpop.f32.mrf.mxu2  ;;  %2355 = vmatpush.bf16.msra.mxu3 %v4519_v54 }
 0x170   : > { %v1865_v48 = vpop.f32.mrf.mxu3  ;;  %v1822_v53 = vadd.f32 %v1821_v58, %v1778_v23  ;;  %v4614_v23 = vld [vmem:[#allocation7 + $0x1e8] sm:$0xf] }
 0x171   : > { %v1921_v55 = vpop.f32.mrf.mxu1  ;;  %v4615_v58 = vor.u32 %v5153_v56, %v4614_v23 }
 0x172   : > { %v1866_v33 = vadd.f32 %v1865_v48, %v1822_v53  ;;  %v1922_v10 = vadd.f32 %v1921_v55, %v5949_v17  ;;  %v4410_v53 = vld [vmem:[#allocation7 + $0x50] sm:$0xf]  ;;  %v5102_v55 = vld [vmem:[#allocation7 + $0x58] sm:$0xf0] }
 0x173   : > { %2399 = vmatpush.bf16.msra.mxu0 %v4615_v58  ;;  %v4411_v37 = vor.u32 %v5102_v55, %v4410_v53  ;;  %v4602_v58 = vld [vmem:[#allocation7 + $0x1d0] sm:$0xf] }
 0x174   : > { %2101 = vmatmul.bf16.gmra.mxu1 %v5783_v26  ;;  %2145 = vmatmul.bf16.gmra.mxu2 %v5777_v22  ;;  %v6051_v19 = vadd.f32 %v1909_v62, %v1866_v33  ;;  %v4506_v33 = vld [vmem:[#allocation7 + $0x110] sm:$0xf] }
 0x175   : > { %2189 = vmatmul.bf16.gmra.mxu3 %v5785_v27  ;;  %v2053_v30 = vpop.f32.mrf.mxu0  ;;  %2312 = vmatpush.bf16.msra.mxu2 %v4411_v37 }
 0x177   : > { %v1965_v41 = vpop.f32.mrf.mxu2 }
 0x178   : > { %v2009_v36 = vpop.f32.mrf.mxu3  ;;  %2233 = vmatmul.bf16.gmra.mxu0 %v5935_v34  ;;  %v1966_v48 = vadd.f32 %v1965_v41, %v1922_v10 }
 0x179   : > { %v6055_v46 = vadd.f32 %v2053_v30, %v2009_v36  ;;  %v1923_v13 = vpop.f32.mrf.mxu1  ;;  %v4507_v36 = vor.u32 %v5126_v12, %v4506_v33 }
 0x17a   : > { %2622 = vst [vmem:[%s6057_s30] sm:$0xff] %v1966_v48  ;;  %v1924_v17 = vadd.f32 %v1923_v13, %v5959_v25  ;;  %v2739_v21 = vmul.f32 %v1966_v48, %v1966_v48  ;;  %v5244_v13 = vld [vmem:[#allocation7 + $0x4cc] sm:$0xf] }
 0x17b   : > { %2356 = vmatpush.bf16.msra.mxu3 %v4507_v36 }
 0x17d   : > { %v2055_v62 = vpop.f32.mrf.mxu0 }
 0x17f   : > { %v1967_v30 = vpop.f32.mrf.mxu2 }
 0x180   : > { %v2011_v61 = vpop.f32.mrf.mxu3  ;;  %v1968_v51 = vadd.f32 %v1967_v30, %v1924_v17  ;;  %v5150_v17 = vld [vmem:[#allocation7 + $0x1d8] sm:$0xf0] }
 0x181   : > { %v6061_v44 = vadd.f32 %v2055_v62, %v2011_v61  ;;  %v1926_v54 = vpop.f32.mrf.mxu1  ;;  %v4980_v62 = vld [vmem:[#allocation7 + $0x4d4] sm:$0xf0]  ;;  %v4603_v55 = vor.u32 %v5150_v17, %v4602_v58  ;;  %v4968_v17 = vld [vmem:[#allocation7 + $0x4bc] sm:$0xf0] }
 0x182   : > { %2625 = vst [vmem:[%s6057_s30 + $0x18] sm:$0xff] %v1968_v51  ;;  %v2665_v10 = vadd.f32 %v1968_v51, %v1966_v48  ;;  %v2742_v43 = vmul.f32 %v1968_v51, %v1968_v51  ;;  %v4983_v56 = vor.u32 %v5244_v13, %v4980_v62  ;;  %v1927_v61 = vadd.f32 %v1926_v54, %v5967_v15  ;;  %v4494_v62 = vld [vmem:[#allocation7 + $0xf8] sm:$0xf] }
 0x183   : > { %2400 = vmatpush.bf16.msra.mxu0 %v4603_v55 }
 0x184   : > { %v2781_v41 = vadd.f32 %v2742_v43, %v2739_v21  ;;  %2106 = vmatmul.bf16.gmra.mxu1 %v5803_v0  ;;  %2150 = vmatmul.bf16.gmra.mxu2 %v5797_v60  ;;  %v4398_v21 = vld [vmem:[#allocation7 + $0x38] sm:$0xf]  ;;  %v5099_v43 = vld [vmem:[#allocation7 + $0x40] sm:$0xf0] }
 0x185   : > { %2194 = vmatmul.bf16.gmra.mxu3 %v5805_v1  ;;  %v2058_v25 = vpop.f32.mrf.mxu0  ;;  %2268 = vmatpush.bf16.msra.mxu1 %v4983_v56  ;;  %v4399_v15 = vor.u32 %v5099_v43, %v4398_v21  ;;  %v5241_v56 = vld [vmem:[#allocation7 + $0x4b4] sm:$0xf]  ;;  %v4590_v43 = vld [vmem:[#allocation7 + $0x1b8] sm:$0xf] }
 0x187   : > { %v1970_v53 = vpop.f32.mrf.mxu2  ;;  %2313 = vmatpush.bf16.msra.mxu2 %v4399_v15 }
 0x188   : > { %v2014_v23 = vpop.f32.mrf.mxu3  ;;  %2238 = vmatmul.bf16.gmra.mxu0 %v5951_v14  ;;  %v1971_v33 = vadd.f32 %v1970_v53, %v1927_v61  ;;  %v4971_v53 = vor.u32 %v5241_v56, %v4968_v17  ;;  %v5096_v17 = vld [vmem:[#allocation7 + $0x28] sm:$0xf0] }
 0x189   : > { %v6069_v48 = vadd.f32 %v2058_v25, %v2014_v23  ;;  %v1928_v30 = vpop.f32.mrf.mxu1  ;;  %v5123_v23 = vld [vmem:[#allocation7 + $0x100] sm:$0xf0] }
 0x18a   : > { %2628 = vst [vmem:[%s6057_s30 + $0x30] sm:$0xff] %v1971_v33  ;;  %v2666_v37 = vadd.f32 %v2665_v10, %v1971_v33  ;;  %v2745_v12 = vmul.f32 %v1971_v33, %v1971_v33  ;;  %v1929_v54 = vadd.f32 %v1928_v30, %v5977_v6  ;;  %v4495_v58 = vor.u32 %v5123_v23, %v4494_v62 }
 0x18b   : > { %2269 = vmatpush.bf16.msra.mxu1 %v4971_v53 }
 0x18c   : > { %v2782_v36 = vadd.f32 %v2781_v41, %v2745_v12  ;;  %2357 = vmatpush.bf16.msra.mxu3 %v4495_v58  ;;  %v4386_v58 = vld [vmem:[#allocation7 + $0x20] sm:$0xf] }
 0x18d   : > { %v2060_v51 = vpop.f32.mrf.mxu0 }
 0x18f   : > { %v1972_v61 = vpop.f32.mrf.mxu2 }
 0x190   : > { %v2016_v13 = vpop.f32.mrf.mxu3  ;;  %v1973_v10 = vadd.f32 %v1972_v61, %v1929_v54 }
 0x191   : > { %v6073_v25 = vadd.f32 %v2060_v51, %v2016_v13  ;;  %v1931_v55 = vpop.f32.mrf.mxu1 }
 0x192   : > { %2631 = vst [vmem:[%s6057_s30 + $0x48] sm:$0xff] %v1973_v10  ;;  %v2667_v41 = vadd.f32 %v2666_v37, %v1973_v10  ;;  %v2748_v33 = vmul.f32 %v1973_v10, %v1973_v10  ;;  %v1932_v51 = vadd.f32 %v1931_v55, %v5984_v45  ;;  %v5147_v37 = vld [vmem:[#allocation7 + $0x1c0] sm:$0xf0]  ;;  %v4482_v10 = vld [vmem:[#allocation7 + $0xe0] sm:$0xf]  ;;  %v4387_v45 = vor.u32 %v5096_v17, %v4386_v58 }
 0x193   : > { %v4591_v15 = vor.u32 %v5147_v37, %v4590_v43  ;;  %v5120_v55 = vld [vmem:[#allocation7 + $0xe8] sm:$0xf0]  ;;  %v4956_v43 = vld [vmem:[#allocation7 + $0x4a4] sm:$0xf0] }
 0x194   : > { %v2783_v6 = vadd.f32 %v2782_v36, %v2748_v33  ;;  %2111 = vmatmul.bf16.gmra.mxu1 %v5823_v28  ;;  %2155 = vmatmul.bf16.gmra.mxu2 %v5817_v20 }
 0x195   : > { %2199 = vmatmul.bf16.gmra.mxu3 %v5825_v29  ;;  %v2063_v12 = vpop.f32.mrf.mxu0  ;;  %2401 = vmatpush.bf16.msra.mxu0 %v4591_v15 }
 0x196   : > { %2314 = vmatpush.bf16.msra.mxu2 %v4387_v45  ;;  %v5093_v45 = vld [vmem:[#allocation7 + $0x10] sm:$0xf0] }
 0x197   : > { %v1975_v13 = vpop.f32.mrf.mxu2 }
 0x198   : > { %v2019_v30 = vpop.f32.mrf.mxu3  ;;  %2243 = vmatmul.bf16.gmra.mxu0 %v5969_v38  ;;  %v1976_v54 = vadd.f32 %v1975_v13, %v1932_v51  ;;  %v5238_v51 = vld [vmem:[#allocation7 + $0x49c] sm:$0xf] }
 0x199   : > { %v6081_v21 = vadd.f32 %v2063_v12, %v2019_v30  ;;  %v1933_v62 = vpop.f32.mrf.mxu1  ;;  %v4483_v30 = vor.u32 %v5120_v55, %v4482_v10 }
 0x19a   : > { %2634 = vst [vmem:[%s6057_s30 + $0x60] sm:$0xff] %v1976_v54  ;;  %v2668_v36 = vadd.f32 %v2667_v41, %v1976_v54  ;;  %v2751_v23 = vmul.f32 %v1976_v54, %v1976_v54  ;;  %v1934_v33 = vadd.f32 %v1933_v62, %v5995_v39  ;;  %v4959_v41 = vor.u32 %v5238_v51, %v4956_v43  ;;  %v4578_v39 = vld [vmem:[#allocation7 + $0x1a0] sm:$0xf]  ;;  %v5144_v62 = vld [vmem:[#allocation7 + $0x1a8] sm:$0xf0] }
 0x19b   : > { %2358 = vmatpush.bf16.msra.mxu3 %v4483_v30  ;;  %v4579_v17 = vor.u32 %v5144_v62, %v4578_v39  ;;  %v5235_v39 = vld [vmem:[#allocation7 + $0x484] sm:$0xf] }
 0x19c   : > { %v2784_v61 = vadd.f32 %v2783_v6, %v2751_v23  ;;  %2270 = vmatpush.bf16.msra.mxu1 %v4959_v41 }
 0x19d   : > { %v2065_v56 = vpop.f32.mrf.mxu0  ;;  %2402 = vmatpush.bf16.msra.mxu0 %v4579_v17 }
 0x19f   : > { %v1977_v37 = vpop.f32.mrf.mxu2 }
 0x1a0   : > { %v2021_v53 = vpop.f32.mrf.mxu3  ;;  %v1978_v13 = vadd.f32 %v1977_v37, %v1934_v33 }
 0x1a1   : > { %v6085_v12 = vadd.f32 %v2065_v56, %v2021_v53  ;;  %v1936_v6 = vpop.f32.mrf.mxu1 }
 0x1a2   : > { %2637 = vst [vmem:[%s6057_s30 + $0x78] sm:$0xff] %v1978_v13  ;;  %v2669_v15 = vadd.f32 %v2668_v36, %v1978_v13  ;;  %v2754_v54 = vmul.f32 %v1978_v13, %v1978_v13  ;;  %v1937_v10 = vadd.f32 %v1936_v6, %v6000_v50  ;;  %v4374_v36 = vld [vmem:[#allocation7 + $0x8] sm:$0xf] }
 0x1a3   : > { %v4470_v13 = vld [vmem:[#allocation7 + $0xc8] sm:$0xf] }
 0x1a4   : > { %v2785_v58 = vadd.f32 %v2784_v61, %v2754_v54  ;;  %2116 = vmatmul.bf16.gmra.mxu1 %v5843_v3  ;;  %2160 = vmatmul.bf16.gmra.mxu2 %v5837_v59  ;;  %v4375_v61 = vor.u32 %v5093_v45, %v4374_v36  ;;  %v5117_v54 = vld [vmem:[#allocation7 + $0xd0] sm:$0xf0]  ;;  %v4566_v45 = vld [vmem:[#allocation7 + $0x188] sm:$0xf] }
 0x1a5   : > { %2204 = vmatmul.bf16.gmra.mxu3 %v5845_v4  ;;  %v2068_v23 = vpop.f32.mrf.mxu0  ;;  %v4471_v6 = vor.u32 %v5117_v54, %v4470_v13  ;;  %v7018_v54 = vld [vmem:[#allocation30_spill] sm:$0xff] }
 0x1a6   : > { %2315 = vmatpush.bf16.msra.mxu2 %v4375_v61 }
 0x1a7   : > { %v1980_v55 = vpop.f32.mrf.mxu2  ;;  %2359 = vmatpush.bf16.msra.mxu3 %v4471_v6  ;;  %v4938_v6 = vld [vmem:[#allocation7 + $0x470] sm:$0xf] }
 0x1a8   : > { %v2024_v56 = vpop.f32.mrf.mxu3  ;;  %2248 = vmatmul.bf16.gmra.mxu0 %v5987_v18  ;;  %v1981_v33 = vadd.f32 %v1980_v55, %v1937_v10  ;;  %v5141_v55 = vld [vmem:[#allocation7 + $0x190] sm:$0xf0] }
 0x1a9   : > { %v6093_v53 = vadd.f32 %v2068_v23, %v2024_v56  ;;  %v1938_v30 = vpop.f32.mrf.mxu1  ;;  %v4944_v23 = vld [vmem:[#allocation7 + $0x48c] sm:$0xf0] }
 0x1aa   : > { %2640 = vst [vmem:[%s6057_s30 + $0x90] sm:$0xff] %v1981_v33  ;;  %v2670_v51 = vadd.f32 %v2669_v15, %v1981_v33  ;;  %v2757_v43 = vmul.f32 %v1981_v33, %v1981_v33  ;;  %v1939_v62 = vadd.f32 %v1938_v30, %v6012_v32  ;;  %v4947_v17 = vor.u32 %v5235_v39, %v4944_v23  ;;  %v7019_v32 = vld [vmem:[#allocation28_spill] sm:$0xff] }
 0x1ac   : > { %v2786_v41 = vadd.f32 %v2785_v58, %v2757_v43  ;;  %2271 = vmatpush.bf16.msra.mxu1 %v4947_v17  ;;  %v4567_v43 = vor.u32 %v5141_v55, %v4566_v45  ;;  %v5234_v17 = vld [vmem:[#allocation7 + $0x478] sm:$0xf0] }
 0x1ad   : > { %v2070_v37 = vpop.f32.mrf.mxu0 }
 0x1ae   : > { %2403 = vmatpush.bf16.msra.mxu0 %v4567_v43 }
 0x1af   : > { %v1982_v10 = vpop.f32.mrf.mxu2 }
 0x1b0   : > { %v2026_v50 = vpop.f32.mrf.mxu3  ;;  %v1983_v36 = vadd.f32 %v1982_v10, %v1939_v62  ;;  %v4939_v10 = vor.u32 %v5234_v17, %v4938_v6  ;;  %v7020_v17 = vld [vmem:[#allocation34_spill] sm:$0xff] }
 0x1b1   : > { %v6097_v56 = vadd.f32 %v2070_v37, %v2026_v50  ;;  %v1941_v15 = vpop.f32.mrf.mxu1  ;;  %v5210_v50 = vld [vmem:[#allocation7 + $0x3b8] sm:$0xf0] }
 0x1b2   : > { %2643 = vst [vmem:[%s6057_s30 + $0xa8] sm:$0xff] %v1983_v36  ;;  %v2671_v58 = vadd.f32 %v2670_v51, %v1983_v36  ;;  %v2760_v61 = vmul.f32 %v1983_v36, %v1983_v36  ;;  %v1942_v37 = vadd.f32 %v1941_v15, %v6019_v47  ;;  %v4842_v51 = vld [vmem:[#allocation7 + $0x3b0] sm:$0xf]  ;;  %2528 = vmatpush.bf16.msrb.mxu3 %v4939_v10 }
 0x1b3   : > { %v4843_v62 = vor.u32 %v5210_v50, %v4842_v51  ;;  %v4746_v15 = vld [vmem:[#allocation7 + $0x2f0] sm:$0xf] }
 0x1b4   : > { %v2787_v13 = vadd.f32 %v2786_v41, %v2760_v61  ;;  %2121 = vmatmul.bf16.gmra.mxu1 %v7018_v54  ;;  %2165 = vmatmul.bf16.gmra.mxu2 %v7019_v32  ;;  %v5034_v51 = vld [vmem:[#allocation7 + $0x530] sm:$0xf] }
 0x1b5   : > { %2209 = vmatmul.bf16.gmra.mxu3 %v5865_v42  ;;  %v2073_v33 = vpop.f32.mrf.mxu0  ;;  %2484 = vmatpush.bf16.msrb.mxu2 %v4843_v62 }
 0x1b7   : > { %v1985_v23 = vpop.f32.mrf.mxu2 }
 0x1b8   : > { %v2029_v30 = vpop.f32.mrf.mxu3  ;;  %2253 = vmatmul.bf16.gmra.mxu0 %v6005_v5  ;;  %v1986_v41 = vadd.f32 %v1985_v23, %v1942_v37  ;;  %v5258_v37 = vld [vmem:[#allocation7 + $0x538] sm:$0xf0]  ;;  %v4914_v5 = vld [vmem:[#allocation7 + $0x440] sm:$0xf] }
 0x1b9   : > { %v6105_v39 = vadd.f32 %v2073_v33, %v2029_v30  ;;  %v1943_v36 = vpop.f32.mrf.mxu1  ;;  %v5186_v33 = vld [vmem:[#allocation7 + $0x2f8] sm:$0xf0]  ;;  %v5035_v6 = vor.u32 %v5258_v37, %v5034_v51 }
 0x1ba   : > { %2646 = vst [vmem:[%s6057_s30 + $0xc0] sm:$0xff] %v1986_v41  ;;  %v2672_v45 = vadd.f32 %v2671_v58, %v1986_v41  ;;  %v2763_v55 = vmul.f32 %v1986_v41, %v1986_v41  ;;  %v4747_v30 = vor.u32 %v5186_v33, %v4746_v15  ;;  %v1944_v42 = vadd.f32 %v1943_v36, %v6030_v7  ;;  %v7022_v7 = vld [vmem:[#allocation32_spill] sm:$0xff] }
 0x1bb   : > { %2572 = vmatpush.bf16.msrb.mxu0 %v5035_v6 }
 0x1bc   : > { %v2788_v47 = vadd.f32 %v2787_v13, %v2763_v55  ;;  %2440 = vmatpush.bf16.msrb.mxu1 %v4747_v30  ;;  %v7021_v55 = vld [vmem:[#allocation33_spill] sm:$0xff] }
 0x1bd   : > { %v2075_v61 = vpop.f32.mrf.mxu0 }
 0x1bf   : > { %v1987_v50 = vpop.f32.mrf.mxu2 }
 0x1c0   : > { %v2031_v43 = vpop.f32.mrf.mxu3  ;;  %v1988_v23 = vadd.f32 %v1987_v50, %v1944_v42 }
 0x1c1   : > { %v6109_v32 = vadd.f32 %v2075_v61, %v2031_v43  ;;  %v1946_v58 = vpop.f32.mrf.mxu1 }
 0x1c2   : > { %2649 = vst [vmem:[%s6057_s30 + $0xd8] sm:$0xff] %v1988_v23  ;;  %v2673_v62 = vadd.f32 %v2672_v45, %v1988_v23  ;;  %v2766_v13 = vmul.f32 %v1988_v23, %v1988_v23  ;;  %v1947_v61 = vadd.f32 %v1946_v58, %v6034_v11  ;;  %v5207_v11 = vld [vmem:[#allocation7 + $0x3a0] sm:$0xf0]  ;;  %v4926_v58 = vld [vmem:[#allocation7 + $0x458] sm:$0xf] }
 0x1c4   : > { %v2789_v10 = vadd.f32 %v2788_v47, %v2766_v13  ;;  %2126 = vmatmul.bf16.gmra.mxu1 %v7021_v55  ;;  %2170 = vmatmul.bf16.gmra.mxu2 %v7022_v7  ;;  %v5183_v7 = vld [vmem:[#allocation7 + $0x2e0] sm:$0xf0] }
 0x1c5   : > { %2214 = vmatmul.bf16.gmra.mxu3 %v7020_v17  ;;  %v2078_v41 = vpop.f32.mrf.mxu0  ;;  %v4830_v17 = vld [vmem:[#allocation7 + $0x398] sm:$0xf] }
 0x1c7   : > { %v1990_v15 = vpop.f32.mrf.mxu2 }
 0x1c8   : > { %v2034_v36 = vpop.f32.mrf.mxu3  ;;  %2258 = vmatmul.bf16.gmra.mxu0 %v6023_v9  ;;  %v1991_v33 = vadd.f32 %v1990_v15, %v1947_v61  ;;  %v5231_v61 = vld [vmem:[#allocation7 + $0x460] sm:$0xf0]  ;;  %v4734_v15 = vld [vmem:[#allocation7 + $0x2d8] sm:$0xf]  ;;  %v7023_v9 = vld [vmem:[#allocation24_spill] sm:$0xff] }
 0x1c9   : > { %v6117_v42 = vadd.f32 %v2078_v41, %v2034_v36  ;;  %v1948_v43 = vpop.f32.mrf.mxu1  ;;  %v4831_v36 = vor.u32 %v5207_v11, %v4830_v17  ;;  %v7024_v17 = vld [vmem:[#allocation35_spill] sm:$0xff] }
 0x1ca   : > { %2652 = vst [vmem:[%s6057_s30 + $0xf0] sm:$0xff] %v1991_v33  ;;  %v2674_v45 = vadd.f32 %v2673_v62, %v1991_v33  ;;  %v2769_v30 = vmul.f32 %v1991_v33, %v1991_v33  ;;  %v1949_v50 = vadd.f32 %v1948_v43, %v6040_v49  ;;  %v5255_v49 = vld [vmem:[#allocation7 + $0x520] sm:$0xf0]  ;;  %v4927_v43 = vor.u32 %v5231_v61, %v4926_v58  ;;  %v7025_v11 = vld [vmem:[#allocation19_spill] sm:$0xff] }
 0x1cb   : > { %2485 = vmatpush.bf16.msrb.mxu2 %v4831_v36  ;;  %v4722_v36 = vld [vmem:[#allocation7 + $0x2c0] sm:$0xf]  ;;  %v5180_v58 = vld [vmem:[#allocation7 + $0x2c8] sm:$0xf0] }
 0x1cc   : > { %v2790_v47 = vadd.f32 %v2789_v10, %v2769_v30  ;;  %v5022_v30 = vld [vmem:[#allocation7 + $0x518] sm:$0xf]  ;;  %2529 = vmatpush.bf16.msrb.mxu3 %v4927_v43  ;;  %v5252_v43 = vld [vmem:[#allocation7 + $0x508] sm:$0xf0] }
 0x1cd   : > { %v2080_v51 = vpop.f32.mrf.mxu0 }
 0x1cf   : > { %v1992_v23 = vpop.f32.mrf.mxu2 }
 0x1d0   : > { %v2036_v37 = vpop.f32.mrf.mxu3  ;;  %v1993_v13 = vadd.f32 %v1992_v23, %v1949_v50  ;;  %v4818_v50 = vld [vmem:[#allocation7 + $0x380] sm:$0xf]  ;;  %v5204_v23 = vld [vmem:[#allocation7 + $0x388] sm:$0xf0] }
 0x1d1   : > { %v6121_v6 = vadd.f32 %v2080_v51, %v2036_v37  ;;  %v1951_v41 = vpop.f32.mrf.mxu1  ;;  %v4735_v51 = vor.u32 %v5183_v7, %v4734_v15  ;;  %v5023_v37 = vor.u32 %v5255_v49, %v5022_v30  ;;  %v4819_v59 = vor.u32 %v5204_v23, %v4818_v50 }
 0x1d2   : > { %2655 = vst [vmem:[%s6057_s30 + $0x108] sm:$0xff] %v1993_v13  ;;  %v2675_v62 = vadd.f32 %v2674_v45, %v1993_v13  ;;  %v2772_v33 = vmul.f32 %v1993_v13, %v1993_v13  ;;  %v5228_v45 = vld [vmem:[#allocation7 + $0x448] sm:$0xf0]  ;;  %v1952_v7 = vadd.f32 %v1951_v41, %v6045_v40 }
 0x1d3   : > { %2441 = vmatpush.bf16.msrb.mxu1 %v4735_v51  ;;  %2573 = vmatpush.bf16.msrb.mxu0 %v5023_v37  ;;  %v5201_v51 = vld [vmem:[#allocation7 + $0x370] sm:$0xf0] }
 0x1d4   : > { %v2791_v4 = vadd.f32 %v2790_v47, %v2772_v33  ;;  %2272 = vmatmul.bf16.vlgmr.msra.gmra.mxu1 %v7024_v17  ;;  %2316 = vmatmul.bf16.vlgmr.msra.gmra.mxu2 %v7025_v11  ;;  %v4723_v47 = vor.u32 %v5180_v58, %v4722_v36 }
 0x1d5   : > { %2360 = vmatmul.bf16.vlgmr.msra.gmra.mxu3 %v7023_v9  ;;  %v2083_v10 = vpop.f32.mrf.mxu0  ;;  %v4915_v9 = vor.u32 %v5228_v45, %v4914_v5  ;;  %2486 = vmatpush.bf16.msrb.mxu2 %v4819_v59  ;;  %v5010_v5 = vld [vmem:[#allocation7 + $0x500] sm:$0xf] }
 0x1d6   : > { %v5011_v23 = vor.u32 %v5252_v43, %v5010_v5  ;;  %v7028_v5 = vld [vmem:[#allocation23_spill] sm:$0xff] }
 0x1d7   : > { %v1995_v15 = vpop.f32.mrf.mxu2  ;;  %2530 = vmatpush.bf16.msrb.mxu3 %v4915_v9  ;;  %2442 = vmatpush.bf16.msrb.mxu1 %v4723_v47  ;;  %v4902_v47 = vld [vmem:[#allocation7 + $0x428] sm:$0xf] }
 0x1d8   : > { %v2039_v13 = vpop.f32.mrf.mxu3  ;;  %2404 = vmatmul.bf16.vlgmr.msra.gmra.mxu0 %v5763_v52  ;;  %v1996_v33 = vadd.f32 %v1995_v15, %v1952_v7  ;;  %v5225_v15 = vld [vmem:[#allocation7 + $0x430] sm:$0xf0] }
 0x1d9   : > { %v6129_v61 = vadd.f32 %v2083_v10, %v2039_v13  ;;  %v1953_v30 = vpop.f32.mrf.mxu1  ;;  %2574 = vmatpush.bf16.msrb.mxu0 %v5011_v23  ;;  %v4806_v10 = vld [vmem:[#allocation7 + $0x368] sm:$0xf] }
 0x1da   : > { %2658 = vst [vmem:[%s6057_s30 + $0x120] sm:$0xff] %v1996_v33  ;;  %v2676_v49 = vadd.f32 %v2675_v62, %v1996_v33  ;;  %v2775_v50 = vmul.f32 %v1996_v33, %v1996_v33  ;;  %v1954_v37 = vadd.f32 %v1953_v30, %v6051_v19  ;;  %v4807_v11 = vor.u32 %v5201_v51, %v4806_v10  ;;  %v4710_v19 = vld [vmem:[#allocation7 + $0x2a8] sm:$0xf]  ;;  %v5177_v30 = vld [vmem:[#allocation7 + $0x2b0] sm:$0xf0] }
 0x1db   : > { %v4903_v33 = vor.u32 %v5225_v15, %v4902_v47  ;;  %v4711_v43 = vor.u32 %v5177_v30, %v4710_v19  ;;  %v4890_v47 = vld [vmem:[#allocation7 + $0x410] sm:$0xf]  ;;  %v5222_v15 = vld [vmem:[#allocation7 + $0x418] sm:$0xf0] }
 0x1dc   : > { %v2792_v40 = vadd.f32 %v2791_v4, %v2775_v50  ;;  %2487 = vmatpush.bf16.msrb.mxu2 %v4807_v11  ;;  %v7026_v4 = vld [vmem:[#allocation25_spill] sm:$0xff]  ;;  %v4998_v11 = vld [vmem:[#allocation7 + $0x4e8] sm:$0xf]  ;;  %v4891_v19 = vor.u32 %v5222_v15, %v4890_v47 }
 0x1dd   : > { %v2085_v52 = vpop.f32.mrf.mxu0  ;;  %2531 = vmatpush.bf16.msrb.mxu3 %v4903_v33  ;;  %2443 = vmatpush.bf16.msrb.mxu1 %v4711_v43  ;;  %v4698_v43 = vld [vmem:[#allocation7 + $0x290] sm:$0xf]  ;;  %v4782_v47 = vld [vmem:[#allocation7 + $0x338] sm:$0xf] }
 0x1df   : > { %v1997_v45 = vpop.f32.mrf.mxu2 }
 0x1e0   : > { %v2041_v41 = vpop.f32.mrf.mxu3  ;;  %v1998_v13 = vadd.f32 %v1997_v45, %v1954_v37 }
 0x1e1   : > { %v6133_v59 = vadd.f32 %v2085_v52, %v2041_v41  ;;  %v2097_v62 = vpop.f32.mrf.mxu1  ;;  %v7027_v52 = vld [vmem:[#allocation36_spill] sm:$0xff]  ;;  %2532 = vmatpush.bf16.msrb.mxu3 %v4891_v19  ;;  %v5219_v19 = vld [vmem:[#allocation7 + $0x400] sm:$0xf0] }
 0x1e2   : > { %2661 = vst [vmem:[%s6057_s30 + $0x138] sm:$0xff] %v1998_v13  ;;  %v6136_v9 = vadd.f32 %v2676_v49, %v1998_v13  ;;  %v2778_v36 = vmul.f32 %v1998_v13, %v1998_v13  ;;  %v2098_v58 = vadd.f32 %v2097_v62, %v6055_v46 }
 0x1e4   : > { %v6140_v50 = vadd.f32 %v2792_v40, %v2778_v36  ;;  %2277 = vmatmul.bf16.gmra.mxu1 %v7027_v52  ;;  %2321 = vmatmul.bf16.gmra.mxu2 %v7028_v5  ;;  %v5249_v40 = vld [vmem:[#allocation7 + $0x4f0] sm:$0xf0]  ;;  %v4794_v36 = vld [vmem:[#allocation7 + $0x350] sm:$0xf] }
 0x1e5   : > { %2365 = vmatmul.bf16.gmra.mxu3 %v7026_v4  ;;  %v2229_v7 = vpop.f32.mrf.mxu0  ;;  %v4999_v45 = vor.u32 %v5249_v40, %v4998_v11  ;;  %v5198_v4 = vld [vmem:[#allocation7 + $0x358] sm:$0xf0] }
 0x1e6   : > { %v5246_v11 = vld [vmem:[#allocation7 + $0x4d8] sm:$0xf0] }
 0x1e7   : > { %v2141_v46 = vpop.f32.mrf.mxu2  ;;  %2575 = vmatpush.bf16.msrb.mxu0 %v4999_v45 }
 0x1e8   : > { %v2185_v49 = vpop.f32.mrf.mxu3  ;;  %2409 = vmatmul.bf16.gmra.mxu0 %v5783_v26  ;;  %v2142_v23 = vadd.f32 %v2141_v46, %v2098_v58  ;;  %v4795_v26 = vor.u32 %v5198_v4, %v4794_v36 }
 0x1e9   : > { %v2099_v41 = vpop.f32.mrf.mxu1 }
 0x1ea   : > { %v2186_v10 = vadd.f32 %v2185_v49, %v2142_v23  ;;  %v2100_v51 = vadd.f32 %v2099_v41, %v6061_v44  ;;  %2488 = vmatpush.bf16.msrb.mxu2 %v4795_v26  ;;  %v5174_v49 = vld [vmem:[#allocation7 + $0x298] sm:$0xf0]  ;;  %v5195_v26 = vld [vmem:[#allocation7 + $0x340] sm:$0xf0] }
 0x1eb   : > { %v4699_v46 = vor.u32 %v5174_v49, %v4698_v43  ;;  %v7029_v23 = vld [vmem:[#allocation17_spill] sm:$0xff]  ;;  %v4783_v15 = vor.u32 %v5195_v26, %v4782_v47 }
 0x1ec   : > { %v6146_v13 = vadd.f32 %v2229_v7, %v2186_v10 }
 0x1ed   : > { %v2231_v37 = vpop.f32.mrf.mxu0  ;;  %2444 = vmatpush.bf16.msrb.mxu1 %v4699_v46 }
 0x1ee   : > { %2489 = vmatpush.bf16.msrb.mxu2 %v4783_v15  ;;  %v4770_v15 = vld [vmem:[#allocation7 + $0x320] sm:$0xf] }
 0x1ef   : > { %v2143_v33 = vpop.f32.mrf.mxu2 }
 0x1f0   : > { %v2187_v62 = vpop.f32.mrf.mxu3  ;;  %v2144_v58 = vadd.f32 %v2143_v33, %v2100_v51  ;;  %v4986_v51 = vld [vmem:[#allocation7 + $0x4d0] sm:$0xf] }
 0x1f1   : > { %v2102_v30 = vpop.f32.mrf.mxu1  ;;  %v4987_v40 = vor.u32 %v5246_v11, %v4986_v51  ;;  %v7031_v51 = vld [vmem:[#allocation21_spill] sm:$0xff] }
 0x1f2   : > { %v2188_v44 = vadd.f32 %v2187_v62, %v2144_v58  ;;  %v2103_v5 = vadd.f32 %v2102_v30, %v6069_v48  ;;  %v4686_v58 = vld [vmem:[#allocation7 + $0x278] sm:$0xf] }
 0x1f3   : > { %2576 = vmatpush.bf16.msrb.mxu0 %v4987_v40 }
 0x1f4   : > { %2282 = vmatmul.bf16.gmra.mxu1 %v5953_v31  ;;  %2326 = vmatmul.bf16.gmra.mxu2 %v7029_v23  ;;  %v6152_v41 = vadd.f32 %v2231_v37, %v2188_v44  ;;  %v5171_v44 = vld [vmem:[#allocation7 + $0x280] sm:$0xf0] }
 0x1f5   : > { %2370 = vmatmul.bf16.gmra.mxu3 %v5801_v63  ;;  %v2234_v7 = vpop.f32.mrf.mxu0 }
 0x1f7   : > { %v2146_v48 = vpop.f32.mrf.mxu2 }
 0x1f8   : > { %v2190_v10 = vpop.f32.mrf.mxu3  ;;  %2414 = vmatmul.bf16.gmra.mxu0 %v5803_v0  ;;  %v2147_v45 = vadd.f32 %v2146_v48, %v2103_v5  ;;  %v4878_v0 = vld [vmem:[#allocation7 + $0x3f8] sm:$0xf]  ;;  %v4687_v5 = vor.u32 %v5171_v44, %v4686_v58  ;;  %v4674_v44 = vld [vmem:[#allocation7 + $0x260] sm:$0xf] }
 0x1f9   : > { %v2104_v63 = vpop.f32.mrf.mxu1  ;;  %v4879_v30 = vor.u32 %v5219_v19, %v4878_v0  ;;  %v4974_v48 = vld [vmem:[#allocation7 + $0x4b8] sm:$0xf]  ;;  %v4866_v0 = vld [vmem:[#allocation7 + $0x3e0] sm:$0xf] }
 0x1fa   : > { %v2191_v62 = vadd.f32 %v2190_v10, %v2147_v45  ;;  %v2105_v36 = vadd.f32 %v2104_v63, %v6073_v25  ;;  %2445 = vmatpush.bf16.msrb.mxu1 %v4687_v5  ;;  %v7030_v10 = vld [vmem:[#allocation37_spill] sm:$0xff]  ;;  %v5243_v45 = vld [vmem:[#allocation7 + $0x4c0] sm:$0xf0] }
 0x1fb   : > { %2533 = vmatpush.bf16.msrb.mxu3 %v4879_v30  ;;  %v4975_v63 = vor.u32 %v5243_v45, %v4974_v48  ;;  %v5240_v48 = vld [vmem:[#allocation7 + $0x4a8] sm:$0xf0]  ;;  %v7032_v45 = vld [vmem:[#allocation38_spill] sm:$0xff] }
 0x1fc   : > { %v6156_v37 = vadd.f32 %v2234_v7, %v2191_v62 }
 0x1fd   : > { %v2236_v4 = vpop.f32.mrf.mxu0  ;;  %2577 = vmatpush.bf16.msrb.mxu0 %v4975_v63  ;;  %v7033_v63 = vld [vmem:[#allocation18_spill] sm:$0xff] }
 0x1ff   : > { %v2148_v43 = vpop.f32.mrf.mxu2 }
 0x200   : > { %v2192_v33 = vpop.f32.mrf.mxu3  ;;  %v2149_v49 = vadd.f32 %v2148_v43, %v2105_v36  ;;  %v5168_v43 = vld [vmem:[#allocation7 + $0x268] sm:$0xf0] }
 0x201   : > { %v2107_v46 = vpop.f32.mrf.mxu1  ;;  %v4675_v5 = vor.u32 %v5168_v43, %v4674_v44  ;;  %v5165_v44 = vld [vmem:[#allocation7 + $0x250] sm:$0xf0] }
 0x202   : > { %v2193_v25 = vadd.f32 %v2192_v33, %v2149_v49  ;;  %v2108_v23 = vadd.f32 %v2107_v46, %v6081_v21  ;;  %v5192_v33 = vld [vmem:[#allocation7 + $0x328] sm:$0xf0] }
 0x203   : > { %v4771_v19 = vor.u32 %v5192_v33, %v4770_v15  ;;  %2446 = vmatpush.bf16.msrb.mxu1 %v4675_v5 }
 0x204   : > { %2287 = vmatmul.bf16.gmra.mxu1 %v7030_v10  ;;  %2331 = vmatmul.bf16.gmra.mxu2 %v7031_v51  ;;  %v6162_v11 = vadd.f32 %v2236_v4, %v2193_v25  ;;  %v5216_v4 = vld [vmem:[#allocation7 + $0x3e8] sm:$0xf0] }
 0x205   : > { %2375 = vmatmul.bf16.gmra.mxu3 %v5821_v24  ;;  %v2239_v7 = vpop.f32.mrf.mxu0  ;;  %v4867_v58 = vor.u32 %v5216_v4, %v4866_v0  ;;  %2490 = vmatpush.bf16.msrb.mxu2 %v4771_v19  ;;  %v4854_v4 = vld [vmem:[#allocation7 + $0x3c8] sm:$0xf] }
 0x207   : > { %v2151_v62 = vpop.f32.mrf.mxu2  ;;  %2534 = vmatpush.bf16.msrb.mxu3 %v4867_v58  ;;  %v5213_v58 = vld [vmem:[#allocation7 + $0x3d0] sm:$0xf0] }
 0x208   : > { %v2195_v40 = vpop.f32.mrf.mxu3  ;;  %2419 = vmatmul.bf16.gmra.mxu0 %v5823_v28  ;;  %v2152_v36 = vadd.f32 %v2151_v62, %v2108_v23 }
 0x209   : > { %v2109_v47 = vpop.f32.mrf.mxu1 }
 0x20a   : > { %v2196_v21 = vadd.f32 %v2195_v40, %v2152_v36  ;;  %v2110_v24 = vadd.f32 %v2109_v47, %v6085_v12  ;;  %v4962_v40 = vld [vmem:[#allocation7 + $0x4a0] sm:$0xf]  ;;  %v4758_v47 = vld [vmem:[#allocation7 + $0x308] sm:$0xf] }
 0x20c   : > { %v6166_v30 = vadd.f32 %v2239_v7, %v2196_v21  ;;  %v4963_v7 = vor.u32 %v5240_v48, %v4962_v40  ;;  %v5189_v21 = vld [vmem:[#allocation7 + $0x310] sm:$0xf0]  ;;  %v7034_v48 = vld [vmem:[#allocation29_spill] sm:$0xff] }
 0x20d   : > { %v2241_v26 = vpop.f32.mrf.mxu0 }
 0x20e   : > { %2578 = vmatpush.bf16.msrb.mxu0 %v4963_v7 }
 0x20f   : > { %v2153_v49 = vpop.f32.mrf.mxu2 }
 0x210   : > { %v2197_v28 = vpop.f32.mrf.mxu3  ;;  %v2154_v46 = vadd.f32 %v2153_v49, %v2110_v24  ;;  %v4759_v24 = vor.u32 %v5189_v21, %v4758_v47  ;;  %v7036_v47 = vld [vmem:[#allocation22_spill] sm:$0xff] }
 0x211   : > { %v2112_v25 = vpop.f32.mrf.mxu1 }
 0x212   : > { %v2198_v12 = vadd.f32 %v2197_v28, %v2154_v46  ;;  %v2113_v23 = vadd.f32 %v2112_v25, %v6093_v53  ;;  %2491 = vmatpush.bf16.msrb.mxu2 %v4759_v24  ;;  %v4662_v28 = vld [vmem:[#allocation7 + $0x248] sm:$0xf] }
 0x213   : > { %v4663_v43 = vor.u32 %v5165_v44, %v4662_v28 }
 0x214   : > { %2292 = vmatmul.bf16.gmra.mxu1 %v7032_v45  ;;  %2336 = vmatmul.bf16.gmra.mxu2 %v7033_v63  ;;  %v6172_v62 = vadd.f32 %v2241_v26, %v2198_v12  ;;  %v4855_v26 = vor.u32 %v5213_v58, %v4854_v4  ;;  %v4950_v12 = vld [vmem:[#allocation7 + $0x488] sm:$0xf] }
 0x215   : > { %2380 = vmatmul.bf16.gmra.mxu3 %v5841_v2  ;;  %v2244_v51 = vpop.f32.mrf.mxu0  ;;  %2447 = vmatpush.bf16.msrb.mxu1 %v4663_v43  ;;  %v7037_v43 = vld [vmem:[#allocation42_spill] sm:$0xff] }
 0x216   : > { %2535 = vmatpush.bf16.msrb.mxu3 %v4855_v26 }
 0x217   : > { %v2156_v53 = vpop.f32.mrf.mxu2 }
 0x218   : > { %v2200_v36 = vpop.f32.mrf.mxu3  ;;  %2424 = vmatmul.bf16.gmra.mxu0 %v5843_v3  ;;  %v2157_v15 = vadd.f32 %v2156_v53, %v2113_v23  ;;  %v5237_v23 = vld [vmem:[#allocation7 + $0x490] sm:$0xf0] }
 0x219   : > { %v2114_v2 = vpop.f32.mrf.mxu1  ;;  %v4951_v63 = vor.u32 %v5237_v23, %v4950_v12 }
 0x21a   : > { %v2201_v33 = vadd.f32 %v2200_v36, %v2157_v15  ;;  %v2115_v0 = vadd.f32 %v2114_v2, %v6097_v56  ;;  %v7035_v36 = vld [vmem:[#allocation40_spill] sm:$0xff] }
 0x21b   : > { %2579 = vmatpush.bf16.msrb.mxu0 %v4951_v63 }
 0x21c   : > { %v6176_v5 = vadd.f32 %v2244_v51, %v2201_v33 }
 0x21d   : > { %v2246_v19 = vpop.f32.mrf.mxu0 }
 0x21f   : > { %v2158_v49 = vpop.f32.mrf.mxu2 }
 0x220   : > { %v2202_v3 = vpop.f32.mrf.mxu3  ;;  %v2159_v46 = vadd.f32 %v2158_v49, %v2115_v0 }
 0x221   : > { %v2117_v25 = vpop.f32.mrf.mxu1 }
 0x222   : > { %v2203_v40 = vadd.f32 %v2202_v3, %v2159_v46  ;;  %v2118_v56 = vadd.f32 %v2117_v25, %v6105_v39  ;;  %v7038_v3 = vld [vmem:[#allocation20_spill] sm:$0xff] }
 0x224   : > { %2297 = vmatmul.bf16.gmra.mxu1 %v7035_v36  ;;  %2341 = vmatmul.bf16.gmra.mxu2 %v7036_v47  ;;  %v6182_v51 = vadd.f32 %v2246_v19, %v2203_v40 }
 0x225   : > { %2385 = vmatmul.bf16.gmra.mxu3 %v7034_v48  ;;  %v2249_v7 = vpop.f32.mrf.mxu0 }
 0x227   : > { %v2161_v24 = vpop.f32.mrf.mxu2 }
 0x228   : > { %v2205_v21 = vpop.f32.mrf.mxu3  ;;  %2429 = vmatmul.bf16.gmra.mxu0 %v7018_v54  ;;  %v2162_v53 = vadd.f32 %v2161_v24, %v2118_v56 }
 0x229   : > { %v2119_v15 = vpop.f32.mrf.mxu1 }
 0x22a   : > { %v2206_v2 = vadd.f32 %v2205_v21, %v2162_v53  ;;  %v2120_v39 = vadd.f32 %v2119_v15, %v6109_v32 }
 0x22c   : > { %v6186_v0 = vadd.f32 %v2249_v7, %v2206_v2 }
 0x22d   : > { %v2251_v33 = vpop.f32.mrf.mxu0 }
 0x22f   : > { %v2163_v58 = vpop.f32.mrf.mxu2 }
 0x230   : > { %v2207_v4 = vpop.f32.mrf.mxu3  ;;  %v2164_v28 = vadd.f32 %v2163_v58, %v2120_v39 }
 0x231   : > { %v2122_v26 = vpop.f32.mrf.mxu1 }
 0x232   : > { %v2208_v44 = vadd.f32 %v2207_v4, %v2164_v28  ;;  %v2123_v19 = vadd.f32 %v2122_v26, %v6117_v42 }
 0x234   : > { %2302 = vmatmul.bf16.gmra.mxu1 %v7037_v43  ;;  %2346 = vmatmul.bf16.gmra.mxu2 %v7038_v3  ;;  %v6192_v49 = vadd.f32 %v2251_v33, %v2208_v44 }
 0x235   : > { %2390 = vmatmul.bf16.gmra.mxu3 %v5881_v16  ;;  %v2254_v54 = vpop.f32.mrf.mxu0 }
 0x237   : > { %v2166_v46 = vpop.f32.mrf.mxu2 }
 0x238   : > { %v2210_v32 = vpop.f32.mrf.mxu3  ;;  %2434 = vmatmul.bf16.gmra.mxu0 %v7021_v55  ;;  %v2167_v25 = vadd.f32 %v2166_v46, %v2123_v19 }
 0x239   : > { %v2124_v12 = vpop.f32.mrf.mxu1 }
 0x23a   : > { %v2211_v23 = vadd.f32 %v2210_v32, %v2167_v25  ;;  %v2125_v40 = vadd.f32 %v2124_v12, %v6121_v6 }
 0x23c   : > { %v6196_v42 = vadd.f32 %v2254_v54, %v2211_v23 }
 0x23d   : > { %v2256_v56 = vpop.f32.mrf.mxu0 }
 0x23f   : > { %v2168_v48 = vpop.f32.mrf.mxu2 }
 0x240   : > { %v2212_v16 = vpop.f32.mrf.mxu3  ;;  %v2169_v7 = vadd.f32 %v2168_v48, %v2125_v40 }
 0x241   : > { %v2127_v63 = vpop.f32.mrf.mxu1 }
 0x242   : > { %v2213_v47 = vadd.f32 %v2212_v16, %v2169_v7  ;;  %v2128_v21 = vadd.f32 %v2127_v63, %v6129_v61 }
 0x244   : > { %2448 = vmatmul.bf16.vlgmr.msrb.gmra.mxu1 %v5758_v35  ;;  %2492 = vmatmul.bf16.vlgmr.msrb.gmra.mxu2 %v5765_v57  ;;  %v6202_v55 = vadd.f32 %v2256_v56, %v2213_v47 }
 0x245   : > { %2536 = vmatmul.bf16.vlgmr.msrb.gmra.mxu3 %v5907_v8  ;;  %v2259_v24 = vpop.f32.mrf.mxu0 }
 0x247   : > { %v2171_v53 = vpop.f32.mrf.mxu2 }
 0x248   : > { %v2215_v6 = vpop.f32.mrf.mxu3  ;;  %2580 = vmatmul.bf16.vlgmr.msrb.gmra.mxu0 %v7024_v17  ;;  %v2172_v15 = vadd.f32 %v2171_v53, %v2128_v21 }
 0x249   : > { %v2129_v2 = vpop.f32.mrf.mxu1 }
 0x24a   : > { %v2216_v39 = vadd.f32 %v2215_v6, %v2172_v15  ;;  %v2130_v33 = vadd.f32 %v2129_v2, %v6133_v59 }
 0x24c   : > { %v6206_v4 = vadd.f32 %v2259_v24, %v2216_v39 }
 0x24d   : > { %v2261_v61 = vpop.f32.mrf.mxu0 }
 0x24f   : > { %v2173_v58 = vpop.f32.mrf.mxu2 }
 0x250   : > { %v2217_v8 = vpop.f32.mrf.mxu3  ;;  %v2174_v35 = vadd.f32 %v2173_v58, %v2130_v33 }
 0x251   : > { %v2273_v28 = vpop.f32.mrf.mxu1 }
 0x252   : > { %v2218_v57 = vadd.f32 %v2217_v8, %v2174_v35  ;;  %v2274_v26 = vadd.f32 %v2273_v28, %v6146_v13 }
 0x254   : > { %2623 = vst [vmem:[%s6057_s30 + $0x8] sm:$0xff] %v2274_v26  ;;  %2453 = vmatmul.bf16.gmra.mxu1 %v5777_v22  ;;  %2497 = vmatmul.bf16.gmra.mxu2 %v5785_v27  ;;  %v6213_v59 = vadd.f32 %v2261_v61, %v2218_v57 }
 0x255   : > { %2541 = vmatmul.bf16.gmra.mxu3 %v5935_v34  ;;  %v2405_v17 = vpop.f32.mrf.mxu0  ;;  %v2740_v34 = vmul.f32 %v2274_v26, %v2274_v26 }
 0x257   : > { %v2317_v19 = vpop.f32.mrf.mxu2 }
 0x258   : > { %v2361_v44 = vpop.f32.mrf.mxu3  ;;  %2585 = vmatmul.bf16.gmra.mxu0 %v7027_v52 }
 0x259   : > { %v2362_v54 = vadd.f32 %v2361_v44, %v2317_v19  ;;  %v2275_v3 = vpop.f32.mrf.mxu1 }
 0x25a   : > { %v2276_v32 = vadd.f32 %v2275_v3, %v6152_v41 }
 0x25b   : > { %v6217_v46 = vadd.f32 %v2405_v17, %v2362_v54 }
 0x25c   : > { %2626 = vst [vmem:[%s6057_s30 + $0x20] sm:$0xff] %v2276_v32  ;;  %v2684_v25 = vadd.f32 %v2276_v32, %v2274_v26  ;;  %v2743_v22 = vmul.f32 %v2276_v32, %v2276_v32 }
 0x25d   : > { %v2407_v13 = vpop.f32.mrf.mxu0 }
 0x25e   : > { %v2800_v27 = vadd.f32 %v2743_v22, %v2740_v34 }
 0x25f   : > { %v2319_v23 = vpop.f32.mrf.mxu2 }
 0x260   : > { %v2363_v12 = vpop.f32.mrf.mxu3 }
 0x261   : > { %v2364_v40 = vadd.f32 %v2363_v12, %v2319_v23  ;;  %v2278_v56 = vpop.f32.mrf.mxu1  ;;  %v7040_v23 = vld [vmem:[#allocation27_spill] sm:$0xff] }
 0x262   : > { %v2279_v52 = vadd.f32 %v2278_v56, %v6156_v37 }
 0x263   : > { %v6222_v41 = vadd.f32 %v2407_v13, %v2364_v40 }
 0x264   : > { %2629 = vst [vmem:[%s6057_s30 + $0x38] sm:$0xff] %v2279_v52  ;;  %v2685_v48 = vadd.f32 %v2684_v25, %v2279_v52  ;;  %v2746_v7 = vmul.f32 %v2279_v52, %v2279_v52  ;;  %2458 = vmatmul.bf16.gmra.mxu1 %v5797_v60  ;;  %2502 = vmatmul.bf16.gmra.mxu2 %v5805_v1 }
 0x265   : > { %2546 = vmatmul.bf16.gmra.mxu3 %v5951_v14  ;;  %v2410_v16 = vpop.f32.mrf.mxu0 }
 0x266   : > { %v2801_v47 = vadd.f32 %v2800_v27, %v2746_v7  ;;  %v7039_v27 = vld [vmem:[#allocation26_spill] sm:$0xff] }
 0x267   : > { %v2322_v21 = vpop.f32.mrf.mxu2 }
 0x268   : > { %v2366_v63 = vpop.f32.mrf.mxu3  ;;  %2590 = vmatmul.bf16.gmra.mxu0 %v5953_v31 }
 0x269   : > { %v2367_v24 = vadd.f32 %v2366_v63, %v2322_v21  ;;  %v2280_v37 = vpop.f32.mrf.mxu1 }
 0x26a   : > { %v2281_v14 = vadd.f32 %v2280_v37, %v6162_v11 }
 0x26b   : > { %v6229_v53 = vadd.f32 %v2410_v16, %v2367_v24 }
 0x26c   : > { %2632 = vst [vmem:[%s6057_s30 + $0x50] sm:$0xff] %v2281_v14  ;;  %v2686_v15 = vadd.f32 %v2685_v48, %v2281_v14  ;;  %v2749_v2 = vmul.f32 %v2281_v14, %v2281_v14 }
 0x26d   : > { %v2412_v6 = vpop.f32.mrf.mxu0 }
 0x26e   : > { %v2802_v60 = vadd.f32 %v2801_v47, %v2749_v2 }
 0x26f   : > { %v2324_v33 = vpop.f32.mrf.mxu2 }
 0x270   : > { %v2368_v39 = vpop.f32.mrf.mxu3 }
 0x271   : > { %v2369_v1 = vadd.f32 %v2368_v39, %v2324_v33  ;;  %v2283_v61 = vpop.f32.mrf.mxu1  ;;  %v7042_v33 = vld [vmem:[#allocation28_spill] sm:$0xff] }
 0x272   : > { %v2284_v31 = vadd.f32 %v2283_v61, %v6166_v30 }
 0x273   : > { %v6234_v58 = vadd.f32 %v2412_v6, %v2369_v1  ;;  %v7043_v1 = vld [vmem:[#allocation31_spill] sm:$0xff] }
 0x274   : > { %2635 = vst [vmem:[%s6057_s30 + $0x68] sm:$0xff] %v2284_v31  ;;  %v2687_v11 = vadd.f32 %v2686_v15, %v2284_v31  ;;  %v2752_v35 = vmul.f32 %v2284_v31, %v2284_v31  ;;  %2463 = vmatmul.bf16.gmra.mxu1 %v5817_v20  ;;  %2507 = vmatmul.bf16.gmra.mxu2 %v5825_v29  ;;  %v7041_v15 = vld [vmem:[#allocation39_spill] sm:$0xff] }
 0x275   : > { %2551 = vmatmul.bf16.gmra.mxu3 %v5969_v38  ;;  %v2415_v8 = vpop.f32.mrf.mxu0 }
 0x276   : > { %v2803_v57 = vadd.f32 %v2802_v60, %v2752_v35 }
 0x277   : > { %v2327_v26 = vpop.f32.mrf.mxu2 }
 0x278   : > { %v2371_v28 = vpop.f32.mrf.mxu3  ;;  %2595 = vmatmul.bf16.gmra.mxu0 %v7030_v10 }
 0x279   : > { %v2372_v17 = vadd.f32 %v2371_v28, %v2327_v26  ;;  %v2285_v30 = vpop.f32.mrf.mxu1 }
 0x27a   : > { %v2286_v38 = vadd.f32 %v2285_v30, %v6172_v62 }
 0x27b   : > { %v6241_v19 = vadd.f32 %v2415_v8, %v2372_v17 }
 0x27c   : > { %2638 = vst [vmem:[%s6057_s30 + $0x80] sm:$0xff] %v2286_v38  ;;  %v2688_v54 = vadd.f32 %v2687_v11, %v2286_v38  ;;  %v2755_v3 = vmul.f32 %v2286_v38, %v2286_v38 }
 0x27d   : > { %v2417_v44 = vpop.f32.mrf.mxu0 }
 0x27e   : > { %v2804_v20 = vadd.f32 %v2803_v57, %v2755_v3 }
 0x27f   : > { %v2329_v13 = vpop.f32.mrf.mxu2 }
 0x280   : > { %v2373_v32 = vpop.f32.mrf.mxu3 }
 0x281   : > { %v2374_v29 = vadd.f32 %v2373_v32, %v2329_v13  ;;  %v2288_v34 = vpop.f32.mrf.mxu1  ;;  %v7044_v32 = vld [vmem:[#allocation41_spill] sm:$0xff] }
 0x282   : > { %v2289_v10 = vadd.f32 %v2288_v34, %v6176_v5  ;;  %v7045_v34 = vld [vmem:[#allocation32_spill] sm:$0xff] }
 0x283   : > { %v6246_v22 = vadd.f32 %v2417_v44, %v2374_v29 }
 0x284   : > { %2641 = vst [vmem:[%s6057_s30 + $0x98] sm:$0xff] %v2289_v10  ;;  %v2689_v62 = vadd.f32 %v2688_v54, %v2289_v10  ;;  %v2758_v12 = vmul.f32 %v2289_v10, %v2289_v10  ;;  %2468 = vmatmul.bf16.gmra.mxu1 %v7039_v27  ;;  %2512 = vmatmul.bf16.gmra.mxu2 %v7040_v23  ;;  %v7046_v10 = vld [vmem:[#allocation34_spill] sm:$0xff] }
 0x285   : > { %2556 = vmatmul.bf16.gmra.mxu3 %v5987_v18  ;;  %v2420_v25 = vpop.f32.mrf.mxu0 }
 0x286   : > { %v2805_v56 = vadd.f32 %v2804_v20, %v2758_v12 }
 0x287   : > { %v2332_v52 = vpop.f32.mrf.mxu2 }
 0x288   : > { %v2376_v40 = vpop.f32.mrf.mxu3  ;;  %2600 = vmatmul.bf16.gmra.mxu0 %v7032_v45 }
 0x289   : > { %v2377_v16 = vadd.f32 %v2376_v40, %v2332_v52  ;;  %v2290_v5 = vpop.f32.mrf.mxu1 }
 0x28a   : > { %v2291_v18 = vadd.f32 %v2290_v5, %v6182_v51 }
 0x28b   : > { %v6253_v7 = vadd.f32 %v2420_v25, %v2377_v16 }
 0x28c   : > { %2644 = vst [vmem:[%s6057_s30 + $0xb0] sm:$0xff] %v2291_v18  ;;  %v2690_v63 = vadd.f32 %v2689_v62, %v2291_v18  ;;  %v2761_v47 = vmul.f32 %v2291_v18, %v2291_v18 }
 0x28d   : > { %v2422_v48 = vpop.f32.mrf.mxu0 }
 0x28e   : > { %v2806_v24 = vadd.f32 %v2805_v56, %v2761_v47 }
 0x28f   : > { %v2334_v37 = vpop.f32.mrf.mxu2 }
 0x290   : > { %v2378_v21 = vpop.f32.mrf.mxu3 }
 0x291   : > { %v2379_v14 = vadd.f32 %v2378_v21, %v2334_v37  ;;  %v2293_v6 = vpop.f32.mrf.mxu1 }
 0x292   : > { %v2294_v45 = vadd.f32 %v2293_v6, %v6186_v0  ;;  %v2678_v6 = vrot.slane %v6136_v9, 4 }
 0x293   : > { %v6258_v39 = vadd.f32 %v2422_v48, %v2379_v14 }
 0x294   : > { %2647 = vst [vmem:[%s6057_s30 + $0xc8] sm:$0xff] %v2294_v45  ;;  %v2691_v51 = vadd.f32 %v2690_v63, %v2294_v45  ;;  %v2764_v60 = vmul.f32 %v2294_v45, %v2294_v45  ;;  %2473 = vmatmul.bf16.gmra.mxu1 %v7042_v33  ;;  %2517 = vmatmul.bf16.gmra.mxu2 %v7043_v1 }
 0x295   : > { %2561 = vmatmul.bf16.gmra.mxu3 %v7041_v15  ;;  %v2425_v2 = vpop.f32.mrf.mxu0  ;;  %v2679_v33 = vadd.f32 %v2678_v6, %v6136_v9 }
 0x296   : > { %v2807_v31 = vadd.f32 %v2806_v24, %v2764_v60 }
 0x297   : > { %v2337_v8 = vpop.f32.mrf.mxu2 }
 0x298   : > { %v2381_v61 = vpop.f32.mrf.mxu3  ;;  %2605 = vmatmul.bf16.gmra.mxu0 %v7035_v36 }
 0x299   : > { %v2382_v11 = vadd.f32 %v2381_v61, %v2337_v8  ;;  %v2295_v0 = vpop.f32.mrf.mxu1 }
 0x29a   : > { %v2296_v35 = vadd.f32 %v2295_v0, %v6192_v49 }
 0x29b   : > { %v6265_v57 = vadd.f32 %v2425_v2, %v2382_v11  ;;  %v2794_v2 = vrot.slane %v6140_v50, 4 }
 0x29c   : > { %2650 = vst [vmem:[%s6057_s30 + $0xe0] sm:$0xff] %v2296_v35  ;;  %v2692_v26 = vadd.f32 %v2691_v51, %v2296_v35  ;;  %v2767_v17 = vmul.f32 %v2296_v35, %v2296_v35  ;;  %v2680_v35 = vrot.slane %v2679_v33, 2 }
 0x29d   : > { %v2427_v28 = vpop.f32.mrf.mxu0 }
 0x29e   : > { %v2808_v38 = vadd.f32 %v2807_v31, %v2767_v17  ;;  %v2795_v31 = vadd.f32 %v2794_v2, %v6140_v50 }
 0x29f   : > { %v2339_v44 = vpop.f32.mrf.mxu2 }
 0x2a0   : > { %v2383_v30 = vpop.f32.mrf.mxu3 }
 0x2a1   : > { %v2384_v54 = vadd.f32 %v2383_v30, %v2339_v44  ;;  %v2298_v3 = vpop.f32.mrf.mxu1  ;;  %v2796_v30 = vrot.slane %v2795_v31, 2 }
 0x2a2   : > { %v2299_v36 = vadd.f32 %v2298_v3, %v6196_v42  ;;  %v2681_v3 = vadd.f32 %v2680_v35, %v2679_v33 }
 0x2a3   : > { %v6270_v13 = vadd.f32 %v2427_v28, %v2384_v54  ;;  %v2797_v50 = vadd.f32 %v2796_v30, %v2795_v31 }
 0x2a4   : > { %2653 = vst [vmem:[%s6057_s30 + $0xf8] sm:$0xff] %v2299_v36  ;;  %v2693_v49 = vadd.f32 %v2692_v26, %v2299_v36  ;;  %v2770_v29 = vmul.f32 %v2299_v36, %v2299_v36  ;;  %2478 = vmatmul.bf16.gmra.mxu1 %v7045_v34  ;;  %2522 = vmatmul.bf16.gmra.mxu2 %v7046_v10  ;;  %v2682_v10 = vrot.slane %v2681_v3, 1 }
 0x2a5   : > { %2566 = vmatmul.bf16.gmra.mxu3 %v7044_v32  ;;  %v2430_v20 = vpop.f32.mrf.mxu0 }
 0x2a6   : > { %v2809_v62 = vadd.f32 %v2808_v38, %v2770_v29 }
 0x2a7   : > { %v2342_v12 = vpop.f32.mrf.mxu2 }
 0x2a8   : > { %v2386_v25 = vpop.f32.mrf.mxu3  ;;  %2610 = vmatmul.bf16.gmra.mxu0 %v7037_v43 }
 0x2a9   : > { %v2387_v27 = vadd.f32 %v2386_v25, %v2342_v12  ;;  %v2300_v42 = vpop.f32.mrf.mxu1 }
 0x2aa   : > { %v2301_v23 = vadd.f32 %v2300_v42, %v6202_v55  ;;  %v2798_v42 = vrot.slane %v2797_v50, 1 }
 0x2ab   : > { %v6277_v56 = vadd.f32 %v2430_v20, %v2387_v27 }
 0x2ac   : > { %2656 = vst [vmem:[%s6057_s30 + $0x110] sm:$0xff] %v2301_v23  ;;  %v2694_v52 = vadd.f32 %v2693_v49, %v2301_v23  ;;  %v2773_v16 = vmul.f32 %v2301_v23, %v2301_v23 }
 0x2ad   : > { %v2432_v40 = vpop.f32.mrf.mxu0 }
 0x2ae   : > { %v2810_v18 = vadd.f32 %v2809_v62, %v2773_v16 }
 0x2af   : > { %v2344_v48 = vpop.f32.mrf.mxu2 }
 0x2b0   : > { %v2388_v5 = vpop.f32.mrf.mxu3 }
 0x2b1   : > { %v2389_v63 = vadd.f32 %v2388_v5, %v2344_v48  ;;  %v2303_v47 = vpop.f32.mrf.mxu1  ;;  %v2683_v5 = vadd.f32 %v2682_v10, %v2681_v3 }
 0x2b2   : > { %v2304_v43 = vadd.f32 %v2303_v47, %v6206_v4 }
 0x2b3   : > { %v6281_v24 = vadd.f32 %v2432_v40, %v2389_v63 }
 0x2b4   : > { %2659 = vst [vmem:[%s6057_s30 + $0x128] sm:$0xff] %v2304_v43  ;;  %v2695_v37 = vadd.f32 %v2694_v52, %v2304_v43  ;;  %v2776_v55 = vmul.f32 %v2304_v43, %v2304_v43  ;;  %v2799_v43 = vadd.f32 %v2798_v42, %v2797_v50 }
 0x2b5   : > { %v2435_v21 = vpop.f32.mrf.mxu0 }
 0x2b6   : > { %v2811_v45 = vadd.f32 %v2810_v18, %v2776_v55 }
 0x2b7   : > { %v2347_v15 = vpop.f32.mrf.mxu2 }
 0x2b8   : > { %v2391_v14 = vpop.f32.mrf.mxu3 }
 0x2b9   : > { %v2392_v51 = vadd.f32 %v2391_v14, %v2347_v15  ;;  %v2305_v60 = vpop.f32.mrf.mxu1 }
 0x2ba   : > { %v2306_v4 = vadd.f32 %v2305_v60, %v6213_v59 }
 0x2bb   : > { %v6288_v61 = vadd.f32 %v2435_v21, %v2392_v51 }
 0x2bc   : > { %2662 = vst [vmem:[%s6057_s30 + $0x140] sm:$0xff] %v2306_v4  ;;  %v2696_v8 = vadd.f32 %v2695_v37, %v2306_v4  ;;  %v2779_v11 = vmul.f32 %v2306_v4, %v2306_v4 }
 0x2bd   : > { %v2437_v1 = vpop.f32.mrf.mxu0 }
 0x2be   : > { %v2697_v28 = vrot.slane %v2696_v8, 4  ;;  %v2812_v26 = vadd.f32 %v2811_v45, %v2779_v11 }
 0x2bf   : > { %v2349_v17 = vpop.f32.mrf.mxu2 }
 0x2c0   : > { %v2393_v0 = vpop.f32.mrf.mxu3  ;;  %v2698_v38 = vadd.f32 %v2697_v28, %v2696_v8  ;;  %v2813_v44 = vrot.slane %v2812_v26, 4 }
 0x2c1   : > { %v2394_v54 = vadd.f32 %v2393_v0, %v2349_v17  ;;  %v2449_v9 = vpop.f32.mrf.mxu1 }
 0x2c2   : > { %v2699_v59 = vrot.slane %v2698_v38, 2  ;;  %v2814_v36 = vadd.f32 %v2813_v44, %v2812_v26  ;;  %v2450_v12 = vadd.f32 %v2449_v9, %v6217_v46 }
 0x2c3   : > { %v6292_v20 = vadd.f32 %v2437_v1, %v2394_v54 }
 0x2c4   : > { %v2700_v49 = vadd.f32 %v2699_v59, %v2698_v38  ;;  %v2815_v29 = vrot.slane %v2814_v36, 2 }
 0x2c5   : > { %v2581_v32 = vpop.f32.mrf.mxu0 }
 0x2c6   : > { %v2701_v25 = vrot.slane %v2700_v49, 1  ;;  %v2816_v62 = vadd.f32 %v2815_v29, %v2814_v36 }
 0x2c7   : > { %v2493_v27 = vpop.f32.mrf.mxu2 }
 0x2c8   : > { %v2537_v34 = vpop.f32.mrf.mxu3  ;;  %v2702_v23 = vadd.f32 %v2701_v25, %v2700_v49  ;;  %v2817_v40 = vrot.slane %v2816_v62, 1  ;;  %v2494_v52 = vadd.f32 %v2493_v27, %v2450_v12 }
 0x2c9   : > { %v2451_v16 = vpop.f32.mrf.mxu1 }
 0x2ca   : > { %v2725_v18 = vrot.slane %v2702_v23, 7  ;;  %v2818_v48 = vadd.f32 %v2817_v40, %v2816_v62  ;;  %v2538_v63 = vadd.f32 %v2537_v34, %v2494_v52  ;;  %v2452_v6 = vadd.f32 %v2451_v16, %v6222_v41 }
 0x2cc   : > { %v6295_v21 = vsel %vm2727_vm1, %v2683_v5, %v2725_v18  ;;  %v2841_v37 = vrot.slane %v2818_v48, 7  ;;  %v2582_v55 = vadd.f32 %v2581_v32, %v2538_v63 }
 0x2cd   : > { %v2583_v47 = vpop.f32.mrf.mxu0 }
 0x2ce   : > { %v6297_v14 = vsel %vm2727_vm1, %v2799_v43, %v2841_v37  ;;  %2624 = vst [vmem:[%s6057_s30 + $0x10] sm:$0xff] %v2582_v55  ;;  %v2741_v1 = vmul.f32 %v2582_v55, %v2582_v55 }
 0x2cf   : > { %v2495_v45 = vpop.f32.mrf.mxu2 }
 0x2d0   : > { %v2539_v46 = vpop.f32.mrf.mxu3  ;;  %v2496_v15 = vadd.f32 %v2495_v45, %v2452_v6 }
 0x2d1   : > { %v2454_v2 = vpop.f32.mrf.mxu1 }
 0x2d2   : > { %v2540_v51 = vadd.f32 %v2539_v46, %v2496_v15  ;;  %v2455_v11 = vadd.f32 %v2454_v2, %v6229_v53 }
 0x2d4   : > { %v2584_v33 = vadd.f32 %v2583_v47, %v2540_v51 }
 0x2d5   : > { %v2586_v60 = vpop.f32.mrf.mxu0 }
 0x2d6   : > { %2627 = vst [vmem:[%s6057_s30 + $0x28] sm:$0xff] %v2584_v33  ;;  %v2703_v31 = vadd.f32 %v2584_v33, %v2582_v55  ;;  %v2744_v8 = vmul.f32 %v2584_v33, %v2584_v33 }
 0x2d7   : > { %v2498_v0 = vpop.f32.mrf.mxu2 }
 0x2d8   : > { %v2542_v4 = vpop.f32.mrf.mxu3  ;;  %v2819_v35 = vadd.f32 %v2744_v8, %v2741_v1  ;;  %v2499_v28 = vadd.f32 %v2498_v0, %v2455_v11 }
 0x2d9   : > { %v2456_v26 = vpop.f32.mrf.mxu1 }
 0x2da   : > { %v2543_v17 = vadd.f32 %v2542_v4, %v2499_v28  ;;  %v2457_v9 = vadd.f32 %v2456_v26, %v6234_v58 }
 0x2dc   : > { %v2587_v30 = vadd.f32 %v2586_v60, %v2543_v17 }
 0x2dd   : > { %v2588_v41 = vpop.f32.mrf.mxu0 }
 0x2de   : > { %2630 = vst [vmem:[%s6057_s30 + $0x40] sm:$0xff] %v2587_v30  ;;  %v2704_v44 = vadd.f32 %v2703_v31, %v2587_v30  ;;  %v2747_v54 = vmul.f32 %v2587_v30, %v2587_v30 }
 0x2df   : > { %v2500_v3 = vpop.f32.mrf.mxu2 }
 0x2e0   : > { %v2544_v38 = vpop.f32.mrf.mxu3  ;;  %v2820_v59 = vadd.f32 %v2819_v35, %v2747_v54  ;;  %v2501_v36 = vadd.f32 %v2500_v3, %v2457_v9 }
 0x2e1   : > { %v2459_v32 = vpop.f32.mrf.mxu1 }
 0x2e2   : > { %v2545_v50 = vadd.f32 %v2544_v38, %v2501_v36  ;;  %v2460_v25 = vadd.f32 %v2459_v32, %v6241_v19 }
 0x2e4   : > { %v2589_v49 = vadd.f32 %v2588_v41, %v2545_v50 }
 0x2e5   : > { %v2591_v53 = vpop.f32.mrf.mxu0 }
 0x2e6   : > { %2633 = vst [vmem:[%s6057_s30 + $0x58] sm:$0xff] %v2589_v49  ;;  %v2705_v34 = vadd.f32 %v2704_v44, %v2589_v49  ;;  %v2750_v10 = vmul.f32 %v2589_v49, %v2589_v49 }
 0x2e7   : > { %v2503_v62 = vpop.f32.mrf.mxu2 }
 0x2e8   : > { %v2547_v29 = vpop.f32.mrf.mxu3  ;;  %v2821_v12 = vadd.f32 %v2820_v59, %v2750_v10  ;;  %v2504_v27 = vadd.f32 %v2503_v62, %v2460_v25 }
 0x2e9   : > { %v2461_v42 = vpop.f32.mrf.mxu1 }
 0x2ea   : > { %v2548_v23 = vadd.f32 %v2547_v29, %v2504_v27  ;;  %v2462_v18 = vadd.f32 %v2461_v42, %v6246_v22 }
 0x2ec   : > { %v2592_v40 = vadd.f32 %v2591_v53, %v2548_v23 }
 0x2ed   : > { %v2593_v58 = vpop.f32.mrf.mxu0 }
 0x2ee   : > { %2636 = vst [vmem:[%s6057_s30 + $0x70] sm:$0xff] %v2592_v40  ;;  %v2706_v16 = vadd.f32 %v2705_v34, %v2592_v40  ;;  %v2753_v5 = vmul.f32 %v2592_v40, %v2592_v40 }
 0x2ef   : > { %v2505_v48 = vpop.f32.mrf.mxu2 }
 0x2f0   : > { %v2549_v52 = vpop.f32.mrf.mxu3  ;;  %v2822_v63 = vadd.f32 %v2821_v12, %v2753_v5  ;;  %v2506_v47 = vadd.f32 %v2505_v48, %v2462_v18 }
 0x2f1   : > { %v2464_v43 = vpop.f32.mrf.mxu1 }
 0x2f2   : > { %v2550_v37 = vadd.f32 %v2549_v52, %v2506_v47  ;;  %v2465_v15 = vadd.f32 %v2464_v43, %v6253_v7 }
 0x2f4   : > { %v2594_v55 = vadd.f32 %v2593_v58, %v2550_v37 }
 0x2f5   : > { %v2596_v19 = vpop.f32.mrf.mxu0 }
 0x2f6   : > { %2639 = vst [vmem:[%s6057_s30 + $0x88] sm:$0xff] %v2594_v55  ;;  %v2707_v6 = vadd.f32 %v2706_v16, %v2594_v55  ;;  %v2756_v45 = vmul.f32 %v2594_v55, %v2594_v55 }
 0x2f7   : > { %v2508_v2 = vpop.f32.mrf.mxu2 }
 0x2f8   : > { %v2552_v46 = vpop.f32.mrf.mxu3  ;;  %v2823_v51 = vadd.f32 %v2822_v63, %v2756_v45  ;;  %v2509_v60 = vadd.f32 %v2508_v2, %v2465_v15 }
 0x2f9   : > { %v2466_v33 = vpop.f32.mrf.mxu1 }
 0x2fa   : > { %v2553_v4 = vadd.f32 %v2552_v46, %v2509_v60  ;;  %v2467_v0 = vadd.f32 %v2466_v33, %v6258_v39 }
 0x2fc   : > { %v2597_v1 = vadd.f32 %v2596_v19, %v2553_v4 }
 0x2fd   : > { %v2598_v22 = vpop.f32.mrf.mxu0 }
 0x2fe   : > { %2642 = vst [vmem:[%s6057_s30 + $0xa0] sm:$0xff] %v2597_v1  ;;  %v2708_v8 = vadd.f32 %v2707_v6, %v2597_v1  ;;  %v2759_v11 = vmul.f32 %v2597_v1, %v2597_v1 }
 0x2ff   : > { %v2510_v35 = vpop.f32.mrf.mxu2 }
 0x300   : > { %v2554_v31 = vpop.f32.mrf.mxu3  ;;  %v2824_v28 = vadd.f32 %v2823_v51, %v2759_v11  ;;  %v2511_v26 = vadd.f32 %v2510_v35, %v2467_v0 }
 0x301   : > { %v2469_v17 = vpop.f32.mrf.mxu1 }
 0x302   : > { %v2555_v41 = vadd.f32 %v2554_v31, %v2511_v26  ;;  %v2470_v9 = vadd.f32 %v2469_v17, %v6265_v57 }
 0x304   : > { %v2599_v30 = vadd.f32 %v2598_v22, %v2555_v41 }
 0x305   : > { %v2601_v7 = vpop.f32.mrf.mxu0 }
 0x306   : > { %2645 = vst [vmem:[%s6057_s30 + $0xb8] sm:$0xff] %v2599_v30  ;;  %v2709_v44 = vadd.f32 %v2708_v8, %v2599_v30  ;;  %v2762_v54 = vmul.f32 %v2599_v30, %v2599_v30 }
 0x307   : > { %v2513_v3 = vpop.f32.mrf.mxu2 }
 0x308   : > { %v2557_v38 = vpop.f32.mrf.mxu3  ;;  %v2825_v59 = vadd.f32 %v2824_v28, %v2762_v54  ;;  %v2514_v36 = vadd.f32 %v2513_v3, %v2470_v9 }
 0x309   : > { %v2471_v32 = vpop.f32.mrf.mxu1 }
 0x30a   : > { %v2558_v50 = vadd.f32 %v2557_v38, %v2514_v36  ;;  %v2472_v10 = vadd.f32 %v2471_v32, %v6270_v13 }
 0x30c   : > { %v2602_v53 = vadd.f32 %v2601_v7, %v2558_v50 }
 0x30d   : > { %v2603_v39 = vpop.f32.mrf.mxu0 }
 0x30e   : > { %2648 = vst [vmem:[%s6057_s30 + $0xd0] sm:$0xff] %v2602_v53  ;;  %v2710_v29 = vadd.f32 %v2709_v44, %v2602_v53  ;;  %v2765_v34 = vmul.f32 %v2602_v53, %v2602_v53 }
 0x30f   : > { %v2515_v25 = vpop.f32.mrf.mxu2 }
 0x310   : > { %v2559_v49 = vpop.f32.mrf.mxu3  ;;  %v2826_v62 = vadd.f32 %v2825_v59, %v2765_v34  ;;  %v2516_v12 = vadd.f32 %v2515_v25, %v2472_v10  ;;  %v2733_v25 = vlaneseq }
 0x311   : > { %v2474_v27 = vpop.f32.mrf.mxu1 }
 0x312   : > { %v2560_v57 = vadd.f32 %v2559_v49, %v2516_v12  ;;  %v2475_v16 = vadd.f32 %v2474_v27, %v6277_v56  ;;  %v2664_v12 = vld [vmem:[#allocation2] sm:$0x7]  ;;  %vm2735_vm3 = vcmp.lt.s32.totalorder %v2733_v25, 384 }
 0x314   : > { %v2604_v42 = vadd.f32 %v2603_v39, %v2560_v57 }
 0x315   : > { %v2606_v23 = vpop.f32.mrf.mxu0 }
 0x316   : > { %2651 = vst [vmem:[%s6057_s30 + $0xe8] sm:$0xff] %v2604_v42  ;;  %v2711_v40 = vadd.f32 %v2710_v29, %v2604_v42  ;;  %v2768_v52 = vmul.f32 %v2604_v42, %v2604_v42 }
 0x317   : > { %v2518_v5 = vpop.f32.mrf.mxu2 }
 0x318   : > { %v2562_v58 = vpop.f32.mrf.mxu3  ;;  %v2827_v18 = vadd.f32 %v2826_v62, %v2768_v52  ;;  %v2519_v48 = vadd.f32 %v2518_v5, %v2475_v16 }
 0x319   : > { %v2476_v63 = vpop.f32.mrf.mxu1 }
 0x31a   : > { %v2563_v13 = vadd.f32 %v2562_v58, %v2519_v48  ;;  %v2477_v55 = vadd.f32 %v2476_v63, %v6281_v24 }
 0x31c   : > { %v2607_v47 = vadd.f32 %v2606_v23, %v2563_v13  ;;  %v2738_v23 = vld [vmem:[#allocation3] sm:$0x7] }
 0x31d   : > { %v2608_v46 = vpop.f32.mrf.mxu0 }
 0x31e   : > { %2654 = vst [vmem:[%s6057_s30 + $0x100] sm:$0xff] %v2607_v47  ;;  %v2712_v37 = vadd.f32 %v2711_v40, %v2607_v47  ;;  %v2771_v19 = vmul.f32 %v2607_v47, %v2607_v47 }
 0x31f   : > { %v2520_v6 = vpop.f32.mrf.mxu2 }
 0x320   : > { %v2564_v43 = vpop.f32.mrf.mxu3  ;;  %v2828_v45 = vadd.f32 %v2827_v18, %v2771_v19  ;;  %v2521_v15 = vadd.f32 %v2520_v6, %v2477_v55 }
 0x321   : > { %v2479_v2 = vpop.f32.mrf.mxu1 }
 0x322   : > { %v2565_v56 = vadd.f32 %v2564_v43, %v2521_v15  ;;  %v2480_v4 = vadd.f32 %v2479_v2, %v6288_v61 }
 0x324   : > { %v2609_v51 = vadd.f32 %v2608_v46, %v2565_v56 }
 0x325   : > { %v2611_v11 = vpop.f32.mrf.mxu0 }
 0x326   : > { %2657 = vst [vmem:[%s6057_s30 + $0x118] sm:$0xff] %v2609_v51  ;;  %v2713_v60 = vadd.f32 %v2712_v37, %v2609_v51  ;;  %v2774_v33 = vmul.f32 %v2609_v51, %v2609_v51 }
 0x327   : > { %v2523_v1 = vpop.f32.mrf.mxu2 }
 0x328   : > { %v2567_v22 = vpop.f32.mrf.mxu3  ;;  %v2829_v31 = vadd.f32 %v2828_v45, %v2774_v33  ;;  %v2524_v8 = vadd.f32 %v2523_v1, %v2480_v4 }
 0x329   : > { %v2481_v0 = vpop.f32.mrf.mxu1 }
 0x32a   : > { %v2568_v24 = vadd.f32 %v2567_v22, %v2524_v8  ;;  %v2482_v17 = vadd.f32 %v2481_v0, %v6292_v20 }
 0x32c   : > { %v2612_v35 = vadd.f32 %v2611_v11, %v2568_v24 }
 0x32d   : > { %v2613_v61 = vpop.f32.mrf.mxu0 }
 0x32e   : > { %2660 = vst [vmem:[%s6057_s30 + $0x130] sm:$0xff] %v2612_v35  ;;  %v2714_v28 = vadd.f32 %v2713_v60, %v2612_v35  ;;  %v2777_v26 = vmul.f32 %v2612_v35, %v2612_v35 }
 0x32f   : > { %v2525_v41 = vpop.f32.mrf.mxu2 }
 0x330   : > { %v2830_v7 = vadd.f32 %v2829_v31, %v2777_v26  ;;  %v2526_v30 = vadd.f32 %v2525_v41, %v2482_v17  ;;  %v2569_v38 = vpop.f32.mrf.mxu3 }
 0x332   : > { %v2570_v44 = vadd.f32 %v2569_v38, %v2526_v30 }
 0x334   : > { %v2614_v54 = vadd.f32 %v2613_v61, %v2570_v44 }
 0x336   : > { %2663 = vst [vmem:[%s6057_s30 + $0x148] sm:$0xff] %v2614_v54  ;;  %v2715_v9 = vadd.f32 %v2714_v28, %v2614_v54  ;;  %v2780_v3 = vmul.f32 %v2614_v54, %v2614_v54 }
 0x338   : > { %v2716_v59 = vrot.slane %v2715_v9, 4  ;;  %v2831_v36 = vadd.f32 %v2830_v7, %v2780_v3 }
 0x33a   : > { %v2717_v32 = vadd.f32 %v2716_v59, %v2715_v9  ;;  %v2832_v50 = vrot.slane %v2831_v36, 4 }
 0x33c   : > { %v2718_v39 = vrot.slane %v2717_v32, 2  ;;  %v2833_v53 = vadd.f32 %v2832_v50, %v2831_v36 }
 0x33e   : > { %v2719_v49 = vadd.f32 %v2718_v39, %v2717_v32  ;;  %v2834_v29 = vrot.slane %v2833_v53, 2 }
 0x340   : > { %v2720_v34 = vrot.slane %v2719_v49, 1  ;;  %v2835_v20 = vadd.f32 %v2834_v29, %v2833_v53 }
 0x342   : > { %v2721_v10 = vadd.f32 %v2720_v34, %v2719_v49  ;;  %v2836_v62 = vrot.slane %v2835_v20, 1 }
 0x344   : > { %v2726_v27 = vrot.slane %v2721_v10, 6  ;;  %v2837_v57 = vadd.f32 %v2836_v62, %v2835_v20 }
 0x346   : > { %v2730_v42 = vsel %vm2729_vm2, %v6295_v21, %v2726_v27  ;;  %v2842_v58 = vrot.slane %v2837_v57, 6 }
 0x347   : > { %v2732_v40 = vadd.f32 %v2730_v42, %v2664_v12  ;;  %2851 = sbr.rel (%p5037_p1) target bundleno = 1179 (0x49b), region = 60 }
 0x348   : > { %v2844_v52 = vsel %vm2729_vm2, %v6297_v14, %v2842_v58 }
 0x349   : > { %2737 = vst.msk [vmem:[#allocation2] sm:$0x7] %vm2735_vm3, %v2732_v40  ;;  %v2846_v16 = vadd.f32 %v2844_v52, %v2738_v23 }
 0x34b   : > { %2847 = vst.msk [vmem:[#allocation3] sm:$0x7] %vm2735_vm3, %v2846_v16 }
 0x34c   : > { %v2869_v6 = vld [vmem:[#allocation9] sm:$0x7]  ;;  %v2871_v2 = vld [vmem:[#allocation10] sm:$0x7]  ;;  %v2874_v56 = vld [vmem:[#allocation12] sm:$0xff] }
 0x34d   : > { %v2875_v51 = vld [vmem:[#allocation12 + $0x8] sm:$0xff]  ;;  %v2876_v60 = vld [vmem:[#allocation12 + $0x10] sm:$0xff]  ;;  %v2877_v31 = vld [vmem:[#allocation12 + $0x18] sm:$0xff] }
 0x34e   : > { %v2878_v8 = vld [vmem:[#allocation12 + $0x20] sm:$0xff]  ;;  %v2879_v28 = vld [vmem:[#allocation12 + $0x28] sm:$0xff]  ;;  %v2880_v17 = vld [vmem:[#allocation12 + $0x30] sm:$0xff] }
 0x34f   : > { %v2881_v44 = vld [vmem:[#allocation12 + $0x38] sm:$0xff]  ;;  %v2882_v54 = vld [vmem:[#allocation12 + $0x40] sm:$0xff]  ;;  %v2883_v32 = vld [vmem:[#allocation12 + $0x48] sm:$0xff] }
 0x350   : > { %v2852_v5 = vld [vmem:[#allocation2] sm:$0x7]  ;;  %v2884_v53 = vld [vmem:[#allocation12 + $0x50] sm:$0xff]  ;;  %v2885_v34 = vld [vmem:[#allocation12 + $0x58] sm:$0xff] }
 0x351   : > { %v2853_v48 = vmul.f32 0.0012755102, %v2852_v5  ;;  %v2886_v25 = vld [vmem:[#allocation12 + $0x60] sm:$0xff]  ;;  %v2887_v27 = vld [vmem:[#allocation12 + $0x68] sm:$0xff]  ;;  %v2888_v23 = vld [vmem:[#allocation12 + $0x70] sm:$0xff] }
 0x352   : > { %v2854_v18 = vld [vmem:[#allocation3] sm:$0x7]  ;;  %v2889_v52 = vld [vmem:[#allocation12 + $0x78] sm:$0xff] }
 0x353   : > { %v2855_v63 = vmul.f32 0.0012755102, %v2854_v18  ;;  %v2856_v13 = vmul.f32 %v2853_v48, %v2853_v48  ;;  %v2890_v18 = vld [vmem:[#allocation12 + $0x80] sm:$0xff] }
 0x355   : > { %v2857_v47 = vsub.f32 %v2855_v63, %v2856_v13  ;;  %v2891_v13 = vld [vmem:[#allocation12 + $0x88] sm:$0xff] }
 0x357   : > { %v2858_v43 = vadd.f32 0.001, %v2857_v47 }
 0x359   : > { %5372 = vrsqrt.f32 %v2858_v43  ;;  %vm2865_vm4 = vweird.f32 %v2858_v43 }
 0x35f   : > { %v5373_v21 = vpop.eup %5372 }
 0x360   : > { %v2860_v37 = vmul.f32 %v5373_v21, %v2858_v43  ;;  %vm2866_vm5 = vweird.f32 %v5373_v21 }
 0x361   : > { %vm2867_vm6 = vmor %vm2865_vm4, %vm2866_vm5 }
 0x362   : > { %v2861_v19 = vmul.f32 %v5373_v21, %v2860_v37 }
 0x364   : > { %v2862_v55 = vmul.f32 0.5, %v2861_v19 }
 0x366   : > { %v2863_v14 = vsub.f32 1.5, %v2862_v55  ;;  %v2893_v55 = vld [vmem:[#allocation12 + $0x98] sm:$0xff] }
 0x368   : > { %v2864_v46 = vmul.f32 %v5373_v21, %v2863_v14 }
 0x36a   : > { %v2868_v45 = vsel %vm2867_vm6, %v5373_v21, %v2864_v46  ;;  %v2892_v21 = vld [vmem:[#allocation12 + $0x90] sm:$0xff] }
 0x36b   : > { %v2870_v15 = vmul.f32 %v2869_v6, %v2868_v45  ;;  %v2894_v6 = vld [vmem:[#allocation12 + $0xa0] sm:$0xff] }
 0x36d   : > { %v2872_v33 = vmul.f32 %v2870_v15, %v2853_v48  ;;  %v6329_v4 = vperm.slane %v2870_v15, 0  ;;  %v6331_v22 = vperm.slane %v2870_v15, 1  ;;  %v6333_v1 = vperm.slane %v2870_v15, 2 }
 0x36f   : > { %v2873_v11 = vsub.f32 %v2871_v2, %v2872_v33  ;;  %v3175_v24 = vmul.f32 %v6329_v4, %v2874_v56  ;;  %v3176_v0 = vmul.f32 %v6331_v22, %v2875_v51  ;;  %v3177_v35 = vmul.f32 %v6333_v1, %v2876_v60  ;;  %v2895_v2 = vld [vmem:[#allocation12 + $0xa8] sm:$0xff]  ;;  %v2896_v60 = vld [vmem:[#allocation12 + $0xb0] sm:$0xff] }
 0x370   : > { %v3178_v26 = vmul.f32 %v6329_v4, %v2877_v31  ;;  %v3179_v38 = vmul.f32 %v6331_v22, %v2878_v8  ;;  %v3180_v61 = vmul.f32 %v6333_v1, %v2879_v28  ;;  %v3181_v36 = vmul.f32 %v6329_v4, %v2880_v17  ;;  %v2897_v8 = vld [vmem:[#allocation12 + $0xb8] sm:$0xff] }
 0x371   : > { %v6339_v41 = vperm.slane %v2873_v11, 0  ;;  %v6341_v7 = vperm.slane %v2873_v11, 1  ;;  %v6343_v30 = vperm.slane %v2873_v11, 2  ;;  %v3182_v39 = vmul.f32 %v6331_v22, %v2881_v44  ;;  %v2900_v44 = vld [vmem:[#allocation12 + $0xd0] sm:$0xff] }
 0x372   : > { %v3183_v29 = vmul.f32 %v6333_v1, %v2882_v54  ;;  %v3184_v10 = vmul.f32 %v6329_v4, %v2883_v32  ;;  %v3185_v12 = vmul.f32 %v6331_v22, %v2884_v53  ;;  %v3186_v42 = vmul.f32 %v6333_v1, %v2885_v34 }
 0x373   : > { %v3476_v9 = vadd.f32 %v6339_v41, %v3175_v24  ;;  %v3477_v3 = vadd.f32 %v6341_v7, %v3176_v0  ;;  %v3478_v59 = vadd.f32 %v6343_v30, %v3177_v35  ;;  %v3479_v50 = vadd.f32 %v6339_v41, %v3178_v26  ;;  %v2898_v0 = vld [vmem:[#allocation12 + $0xc0] sm:$0xff]  ;;  %v2899_v26 = vld [vmem:[#allocation12 + $0xc8] sm:$0xff] }
 0x374   : > { %v3480_v49 = vadd.f32 %v6341_v7, %v3179_v38  ;;  %v3481_v20 = vadd.f32 %v6343_v30, %v3180_v61  ;;  %v3482_v62 = vadd.f32 %v6339_v41, %v3181_v36  ;;  %v3483_v57 = vadd.f32 %v6341_v7, %v3182_v39  ;;  %v2902_v36 = vld [vmem:[#allocation12 + $0xe0] sm:$0xff]  ;;  %v2903_v39 = vld [vmem:[#allocation12 + $0xe8] sm:$0xff] }
 0x375   : > { %3770 = vst [vmem:[#allocation12] sm:$0xff] %v3476_v9  ;;  %v3484_v58 = vadd.f32 %v6343_v30, %v3183_v29  ;;  %v3187_v40 = vmul.f32 %v6329_v4, %v2886_v25  ;;  %v3485_v16 = vadd.f32 %v6339_v41, %v3184_v10  ;;  %v3188_v5 = vmul.f32 %v6331_v22, %v2887_v27  ;;  %v2901_v9 = vld [vmem:[#allocation12 + $0xd8] sm:$0xff]  ;;  %v2904_v29 = vld [vmem:[#allocation12 + $0xf0] sm:$0xff] }
 0x376   : > { %3771 = vst [vmem:[#allocation12 + $0x8] sm:$0xff] %v3477_v3  ;;  %v3486_v48 = vadd.f32 %v6341_v7, %v3185_v12  ;;  %v3189_v63 = vmul.f32 %v6333_v1, %v2888_v23  ;;  %v3487_v47 = vadd.f32 %v6343_v30, %v3186_v42  ;;  %v3190_v43 = vmul.f32 %v6329_v4, %v2889_v52  ;;  %v2905_v10 = vld [vmem:[#allocation12 + $0xf8] sm:$0xff]  ;;  %v2906_v12 = vld [vmem:[#allocation12 + $0x100] sm:$0xff]  ;;  %v2907_v42 = vld [vmem:[#allocation12 + $0x108] sm:$0xff] }
 0x377   : > { %3772 = vst [vmem:[#allocation12 + $0x10] sm:$0xff] %v3478_v59  ;;  %v3488_v37 = vadd.f32 %v6339_v41, %v3187_v40  ;;  %v3191_v19 = vmul.f32 %v6331_v22, %v2890_v18  ;;  %v3489_v14 = vadd.f32 %v6341_v7, %v3188_v5  ;;  %v3192_v46 = vmul.f32 %v6333_v1, %v2891_v13  ;;  %v2908_v40 = vld [vmem:[#allocation12 + $0x110] sm:$0xff]  ;;  %v2909_v5 = vld [vmem:[#allocation12 + $0x118] sm:$0xff] }
 0x378   : > { %3773 = vst [vmem:[#allocation12 + $0x18] sm:$0xff] %v3479_v50  ;;  %v3490_v45 = vadd.f32 %v6343_v30, %v3189_v63  ;;  %v3193_v15 = vmul.f32 %v6329_v4, %v2892_v21  ;;  %v3491_v56 = vadd.f32 %v6339_v41, %v3190_v43  ;;  %v3194_v51 = vmul.f32 %v6331_v22, %v2893_v55  ;;  %v2910_v63 = vld [vmem:[#allocation12 + $0x120] sm:$0xff]  ;;  %v2911_v43 = vld [vmem:[#allocation12 + $0x128] sm:$0xff] }
 0x379   : > { %3774 = vst [vmem:[#allocation12 + $0x20] sm:$0xff] %v3480_v49  ;;  %v3492_v33 = vadd.f32 %v6341_v7, %v3191_v19  ;;  %v3195_v31 = vmul.f32 %v6333_v1, %v2894_v6  ;;  %v3493_v11 = vadd.f32 %v6343_v30, %v3192_v46  ;;  %v3196_v24 = vmul.f32 %v6329_v4, %v2895_v2  ;;  %v2912_v19 = vld [vmem:[#allocation12 + $0x130] sm:$0xff]  ;;  %v2913_v46 = vld [vmem:[#allocation12 + $0x138] sm:$0xff] }
 0x37a   : > { %3775 = vst [vmem:[#allocation12 + $0x28] sm:$0xff] %v3481_v20  ;;  %v3494_v35 = vadd.f32 %v6339_v41, %v3193_v15  ;;  %v3197_v28 = vmul.f32 %v6331_v22, %v2896_v60  ;;  %v3495_v17 = vadd.f32 %v6341_v7, %v3194_v51  ;;  %v3198_v38 = vmul.f32 %v6333_v1, %v2897_v8  ;;  %v2914_v15 = vld [vmem:[#allocation12 + $0x140] sm:$0xff]  ;;  %v2915_v51 = vld [vmem:[#allocation12 + $0x148] sm:$0xff] }
 0x37b   : > { %3776 = vst [vmem:[#allocation12 + $0x30] sm:$0xff] %v3482_v62  ;;  %v3496_v61 = vadd.f32 %v6343_v30, %v3195_v31  ;;  %v3199_v54 = vmul.f32 %v6329_v4, %v2898_v0  ;;  %v3497_v3 = vadd.f32 %v6339_v41, %v3196_v24  ;;  %v3200_v59 = vmul.f32 %v6331_v22, %v2899_v26  ;;  %v2916_v31 = vld [vmem:[#allocation12 + $0x150] sm:$0xff]  ;;  %v2917_v24 = vld [vmem:[#allocation12 + $0x158] sm:$0xff] }
 0x37c   : > { %3777 = vst [vmem:[#allocation12 + $0x38] sm:$0xff] %v3483_v57  ;;  %v3498_v32 = vadd.f32 %v6341_v7, %v3197_v28  ;;  %v3201_v50 = vmul.f32 %v6333_v1, %v2900_v44  ;;  %v3499_v53 = vadd.f32 %v6343_v30, %v3198_v38  ;;  %v3202_v49 = vmul.f32 %v6329_v4, %v2901_v9  ;;  %v2918_v28 = vld [vmem:[#allocation12 + $0x160] sm:$0xff]  ;;  %v2919_v38 = vld [vmem:[#allocation12 + $0x168] sm:$0xff] }
 0x37d   : > { %3778 = vst [vmem:[#allocation12 + $0x40] sm:$0xff] %v3484_v58  ;;  %v3500_v34 = vadd.f32 %v6339_v41, %v3199_v54  ;;  %v3203_v20 = vmul.f32 %v6331_v22, %v2902_v36  ;;  %v3501_v25 = vadd.f32 %v6341_v7, %v3200_v59  ;;  %v3204_v62 = vmul.f32 %v6333_v1, %v2903_v39  ;;  %v2920_v54 = vld [vmem:[#allocation12 + $0x170] sm:$0xff]  ;;  %v2921_v59 = vld [vmem:[#allocation12 + $0x178] sm:$0xff] }
 0x37e   : > { %3779 = vst [vmem:[#allocation12 + $0x48] sm:$0xff] %v3485_v16  ;;  %v3502_v27 = vadd.f32 %v6343_v30, %v3201_v50  ;;  %v3205_v57 = vmul.f32 %v6329_v4, %v2904_v29  ;;  %v3503_v23 = vadd.f32 %v6339_v41, %v3202_v49  ;;  %v3206_v58 = vmul.f32 %v6331_v22, %v2905_v10  ;;  %v2922_v50 = vld [vmem:[#allocation12 + $0x180] sm:$0xff]  ;;  %v2923_v49 = vld [vmem:[#allocation12 + $0x188] sm:$0xff] }
 0x37f   : > { %3780 = vst [vmem:[#allocation12 + $0x50] sm:$0xff] %v3486_v48  ;;  %v3504_v52 = vadd.f32 %v6341_v7, %v3203_v20  ;;  %v3207_v16 = vmul.f32 %v6333_v1, %v2906_v12  ;;  %v3505_v18 = vadd.f32 %v6343_v30, %v3204_v62  ;;  %v3208_v48 = vmul.f32 %v6329_v4, %v2907_v42  ;;  %v2924_v20 = vld [vmem:[#allocation12 + $0x190] sm:$0xff]  ;;  %v2925_v62 = vld [vmem:[#allocation12 + $0x198] sm:$0xff] }
 0x380   : > { %3781 = vst [vmem:[#allocation12 + $0x58] sm:$0xff] %v3487_v47  ;;  %v3506_v13 = vadd.f32 %v6339_v41, %v3205_v57  ;;  %v3209_v47 = vmul.f32 %v6331_v22, %v2908_v40  ;;  %v3507_v21 = vadd.f32 %v6341_v7, %v3206_v58  ;;  %v2926_v57 = vld [vmem:[#allocation12 + $0x1a0] sm:$0xff]  ;;  %v2927_v58 = vld [vmem:[#allocation12 + $0x1a8] sm:$0xff] }
 0x381   : > { %3782 = vst [vmem:[#allocation12 + $0x60] sm:$0xff] %v3488_v37  ;;  %v3210_v37 = vmul.f32 %v6333_v1, %v2909_v5  ;;  %v3508_v55 = vadd.f32 %v6343_v30, %v3207_v16  ;;  %v3509_v6 = vadd.f32 %v6339_v41, %v3208_v48  ;;  %v2928_v16 = vld [vmem:[#allocation12 + $0x1b0] sm:$0xff]  ;;  %v2929_v48 = vld [vmem:[#allocation12 + $0x1b8] sm:$0xff] }
 0x382   : > { %3783 = vst [vmem:[#allocation12 + $0x68] sm:$0xff] %v3489_v14  ;;  %v3211_v14 = vmul.f32 %v6329_v4, %v2910_v63  ;;  %v3510_v2 = vadd.f32 %v6341_v7, %v3209_v47  ;;  %v2930_v47 = vld [vmem:[#allocation12 + $0x1c0] sm:$0xff] }
 0x383   : > { %3784 = vst [vmem:[#allocation12 + $0x70] sm:$0xff] %v3490_v45  ;;  %v3212_v45 = vmul.f32 %v6331_v22, %v2911_v43  ;;  %v3511_v60 = vadd.f32 %v6343_v30, %v3210_v37  ;;  %v2931_v37 = vld [vmem:[#allocation12 + $0x1c8] sm:$0xff] }
 0x384   : > { %3785 = vst [vmem:[#allocation12 + $0x78] sm:$0xff] %v3491_v56  ;;  %v3213_v56 = vmul.f32 %v6333_v1, %v2912_v19  ;;  %v3512_v8 = vadd.f32 %v6339_v41, %v3211_v14  ;;  %v2932_v14 = vld [vmem:[#allocation12 + $0x1d0] sm:$0xff] }
 0x385   : > { %3786 = vst [vmem:[#allocation12 + $0x80] sm:$0xff] %v3492_v33  ;;  %v3214_v33 = vmul.f32 %v6329_v4, %v2913_v46  ;;  %v3513_v0 = vadd.f32 %v6341_v7, %v3212_v45  ;;  %v2933_v45 = vld [vmem:[#allocation12 + $0x1d8] sm:$0xff] }
 0x386   : > { %3787 = vst [vmem:[#allocation12 + $0x88] sm:$0xff] %v3493_v11  ;;  %v3215_v11 = vmul.f32 %v6331_v22, %v2914_v15  ;;  %v3514_v26 = vadd.f32 %v6343_v30, %v3213_v56  ;;  %v2934_v56 = vld [vmem:[#allocation12 + $0x1e0] sm:$0xff] }
 0x387   : > { %3788 = vst [vmem:[#allocation12 + $0x90] sm:$0xff] %v3494_v35  ;;  %v3216_v35 = vmul.f32 %v6333_v1, %v2915_v51  ;;  %v3515_v44 = vadd.f32 %v6339_v41, %v3214_v33  ;;  %v2935_v33 = vld [vmem:[#allocation12 + $0x1e8] sm:$0xff] }
 0x388   : > { %3789 = vst [vmem:[#allocation12 + $0x98] sm:$0xff] %v3495_v17  ;;  %v3217_v17 = vmul.f32 %v6329_v4, %v2916_v31  ;;  %v3516_v9 = vadd.f32 %v6341_v7, %v3215_v11  ;;  %v2936_v11 = vld [vmem:[#allocation12 + $0x1f0] sm:$0xff] }
 0x389   : > { %3790 = vst [vmem:[#allocation12 + $0xa0] sm:$0xff] %v3496_v61  ;;  %v3218_v61 = vmul.f32 %v6331_v22, %v2917_v24  ;;  %v3517_v36 = vadd.f32 %v6343_v30, %v3216_v35  ;;  %v2937_v35 = vld [vmem:[#allocation12 + $0x1f8] sm:$0xff] }
 0x38a   : > { %3791 = vst [vmem:[#allocation12 + $0xa8] sm:$0xff] %v3497_v3  ;;  %v3219_v3 = vmul.f32 %v6333_v1, %v2918_v28  ;;  %v3518_v39 = vadd.f32 %v6339_v41, %v3217_v17  ;;  %v2938_v17 = vld [vmem:[#allocation12 + $0x200] sm:$0xff] }
 0x38b   : > { %3792 = vst [vmem:[#allocation12 + $0xb0] sm:$0xff] %v3498_v32  ;;  %v3220_v32 = vmul.f32 %v6329_v4, %v2919_v38  ;;  %v3519_v29 = vadd.f32 %v6341_v7, %v3218_v61  ;;  %v2939_v61 = vld [vmem:[#allocation12 + $0x208] sm:$0xff] }
 0x38c   : > { %3793 = vst [vmem:[#allocation12 + $0xb8] sm:$0xff] %v3499_v53  ;;  %v3221_v53 = vmul.f32 %v6331_v22, %v2920_v54  ;;  %v3520_v10 = vadd.f32 %v6343_v30, %v3219_v3  ;;  %v2940_v3 = vld [vmem:[#allocation12 + $0x210] sm:$0xff] }
 0x38d   : > { %3794 = vst [vmem:[#allocation12 + $0xc0] sm:$0xff] %v3500_v34  ;;  %v3222_v34 = vmul.f32 %v6333_v1, %v2921_v59  ;;  %v3521_v12 = vadd.f32 %v6339_v41, %v3220_v32  ;;  %v2941_v32 = vld [vmem:[#allocation12 + $0x218] sm:$0xff] }
 0x38e   : > { %3795 = vst [vmem:[#allocation12 + $0xc8] sm:$0xff] %v3501_v25  ;;  %v3223_v25 = vmul.f32 %v6329_v4, %v2922_v50  ;;  %v3522_v42 = vadd.f32 %v6341_v7, %v3221_v53  ;;  %v2942_v53 = vld [vmem:[#allocation12 + $0x220] sm:$0xff] }
 0x38f   : > { %3796 = vst [vmem:[#allocation12 + $0xd0] sm:$0xff] %v3502_v27  ;;  %v3224_v27 = vmul.f32 %v6331_v22, %v2923_v49  ;;  %v3523_v40 = vadd.f32 %v6343_v30, %v3222_v34  ;;  %v2943_v34 = vld [vmem:[#allocation12 + $0x228] sm:$0xff] }
 0x390   : > { %3797 = vst [vmem:[#allocation12 + $0xd8] sm:$0xff] %v3503_v23  ;;  %v3225_v23 = vmul.f32 %v6333_v1, %v2924_v20  ;;  %v3524_v5 = vadd.f32 %v6339_v41, %v3223_v25  ;;  %v2944_v25 = vld [vmem:[#allocation12 + $0x230] sm:$0xff] }
 0x391   : > { %3798 = vst [vmem:[#allocation12 + $0xe0] sm:$0xff] %v3504_v52  ;;  %v3226_v52 = vmul.f32 %v6329_v4, %v2925_v62  ;;  %v3525_v63 = vadd.f32 %v6341_v7, %v3224_v27  ;;  %v2945_v27 = vld [vmem:[#allocation12 + $0x238] sm:$0xff] }
 0x392   : > { %3799 = vst [vmem:[#allocation12 + $0xe8] sm:$0xff] %v3505_v18  ;;  %v3227_v18 = vmul.f32 %v6331_v22, %v2926_v57  ;;  %v3526_v43 = vadd.f32 %v6343_v30, %v3225_v23  ;;  %v2946_v23 = vld [vmem:[#allocation12 + $0x240] sm:$0xff] }
 0x393   : > { %3800 = vst [vmem:[#allocation12 + $0xf0] sm:$0xff] %v3506_v13  ;;  %v3228_v13 = vmul.f32 %v6333_v1, %v2927_v58  ;;  %v3527_v19 = vadd.f32 %v6339_v41, %v3226_v52  ;;  %v2947_v52 = vld [vmem:[#allocation12 + $0x248] sm:$0xff] }
 0x394   : > { %3801 = vst [vmem:[#allocation12 + $0xf8] sm:$0xff] %v3507_v21  ;;  %v3229_v21 = vmul.f32 %v6329_v4, %v2928_v16  ;;  %v3528_v46 = vadd.f32 %v6341_v7, %v3227_v18  ;;  %v2948_v18 = vld [vmem:[#allocation12 + $0x250] sm:$0xff] }
 0x395   : > { %3802 = vst [vmem:[#allocation12 + $0x100] sm:$0xff] %v3508_v55  ;;  %v3230_v55 = vmul.f32 %v6331_v22, %v2929_v48  ;;  %v3529_v15 = vadd.f32 %v6343_v30, %v3228_v13  ;;  %v2949_v13 = vld [vmem:[#allocation12 + $0x258] sm:$0xff] }
 0x396   : > { %3803 = vst [vmem:[#allocation12 + $0x108] sm:$0xff] %v3509_v6  ;;  %v3231_v6 = vmul.f32 %v6333_v1, %v2930_v47  ;;  %v3530_v51 = vadd.f32 %v6339_v41, %v3229_v21  ;;  %v2950_v21 = vld [vmem:[#allocation12 + $0x260] sm:$0xff] }
 0x397   : > { %3804 = vst [vmem:[#allocation12 + $0x110] sm:$0xff] %v3510_v2  ;;  %v3232_v2 = vmul.f32 %v6329_v4, %v2931_v37  ;;  %v3531_v31 = vadd.f32 %v6341_v7, %v3230_v55  ;;  %v2951_v55 = vld [vmem:[#allocation12 + $0x268] sm:$0xff] }
 0x398   : > { %3805 = vst [vmem:[#allocation12 + $0x118] sm:$0xff] %v3511_v60  ;;  %v3233_v60 = vmul.f32 %v6331_v22, %v2932_v14  ;;  %v3532_v24 = vadd.f32 %v6343_v30, %v3231_v6  ;;  %v2952_v6 = vld [vmem:[#allocation12 + $0x270] sm:$0xff] }
 0x399   : > { %3806 = vst [vmem:[#allocation12 + $0x120] sm:$0xff] %v3512_v8  ;;  %v3234_v8 = vmul.f32 %v6333_v1, %v2933_v45  ;;  %v3533_v28 = vadd.f32 %v6339_v41, %v3232_v2  ;;  %v2953_v2 = vld [vmem:[#allocation12 + $0x278] sm:$0xff] }
 0x39a   : > { %3807 = vst [vmem:[#allocation12 + $0x128] sm:$0xff] %v3513_v0  ;;  %v3235_v0 = vmul.f32 %v6329_v4, %v2934_v56  ;;  %v3534_v38 = vadd.f32 %v6341_v7, %v3233_v60  ;;  %v2954_v60 = vld [vmem:[#allocation12 + $0x280] sm:$0xff] }
 0x39b   : > { %3808 = vst [vmem:[#allocation12 + $0x130] sm:$0xff] %v3514_v26  ;;  %v3236_v26 = vmul.f32 %v6331_v22, %v2935_v33  ;;  %v3535_v54 = vadd.f32 %v6343_v30, %v3234_v8  ;;  %v2955_v8 = vld [vmem:[#allocation12 + $0x288] sm:$0xff] }
 0x39c   : > { %3809 = vst [vmem:[#allocation12 + $0x138] sm:$0xff] %v3515_v44  ;;  %v3237_v44 = vmul.f32 %v6333_v1, %v2936_v11  ;;  %v3536_v59 = vadd.f32 %v6339_v41, %v3235_v0  ;;  %v2956_v0 = vld [vmem:[#allocation12 + $0x290] sm:$0xff] }
 0x39d   : > { %3810 = vst [vmem:[#allocation12 + $0x140] sm:$0xff] %v3516_v9  ;;  %v3238_v9 = vmul.f32 %v6329_v4, %v2937_v35  ;;  %v3537_v50 = vadd.f32 %v6341_v7, %v3236_v26  ;;  %v2957_v26 = vld [vmem:[#allocation12 + $0x298] sm:$0xff] }
 0x39e   : > { %3811 = vst [vmem:[#allocation12 + $0x148] sm:$0xff] %v3517_v36  ;;  %v3239_v36 = vmul.f32 %v6331_v22, %v2938_v17  ;;  %v3538_v49 = vadd.f32 %v6343_v30, %v3237_v44  ;;  %v2958_v44 = vld [vmem:[#allocation12 + $0x2a0] sm:$0xff] }
 0x39f   : > { %3812 = vst [vmem:[#allocation12 + $0x150] sm:$0xff] %v3518_v39  ;;  %v3240_v39 = vmul.f32 %v6333_v1, %v2939_v61  ;;  %v3539_v20 = vadd.f32 %v6339_v41, %v3238_v9  ;;  %v2959_v9 = vld [vmem:[#allocation12 + $0x2a8] sm:$0xff] }
 0x3a0   : > { %3813 = vst [vmem:[#allocation12 + $0x158] sm:$0xff] %v3519_v29  ;;  %v3241_v29 = vmul.f32 %v6329_v4, %v2940_v3  ;;  %v3540_v62 = vadd.f32 %v6341_v7, %v3239_v36  ;;  %v2960_v36 = vld [vmem:[#allocation12 + $0x2b0] sm:$0xff] }
 0x3a1   : > { %3814 = vst [vmem:[#allocation12 + $0x160] sm:$0xff] %v3520_v10  ;;  %v3242_v10 = vmul.f32 %v6331_v22, %v2941_v32  ;;  %v3541_v57 = vadd.f32 %v6343_v30, %v3240_v39  ;;  %v2961_v39 = vld [vmem:[#allocation12 + $0x2b8] sm:$0xff] }
 0x3a2   : > { %3815 = vst [vmem:[#allocation12 + $0x168] sm:$0xff] %v3521_v12  ;;  %v3243_v12 = vmul.f32 %v6333_v1, %v2942_v53  ;;  %v3542_v58 = vadd.f32 %v6339_v41, %v3241_v29  ;;  %v2962_v29 = vld [vmem:[#allocation12 + $0x2c0] sm:$0xff] }
 0x3a3   : > { %3816 = vst [vmem:[#allocation12 + $0x170] sm:$0xff] %v3522_v42  ;;  %v3244_v42 = vmul.f32 %v6329_v4, %v2943_v34  ;;  %v3543_v16 = vadd.f32 %v6341_v7, %v3242_v10  ;;  %v2963_v10 = vld [vmem:[#allocation12 + $0x2c8] sm:$0xff] }
 0x3a4   : > { %3817 = vst [vmem:[#allocation12 + $0x178] sm:$0xff] %v3523_v40  ;;  %v3245_v40 = vmul.f32 %v6331_v22, %v2944_v25  ;;  %v3544_v48 = vadd.f32 %v6343_v30, %v3243_v12  ;;  %v2964_v12 = vld [vmem:[#allocation12 + $0x2d0] sm:$0xff] }
 0x3a5   : > { %3818 = vst [vmem:[#allocation12 + $0x180] sm:$0xff] %v3524_v5  ;;  %v3246_v5 = vmul.f32 %v6333_v1, %v2945_v27  ;;  %v3545_v47 = vadd.f32 %v6339_v41, %v3244_v42  ;;  %v2965_v42 = vld [vmem:[#allocation12 + $0x2d8] sm:$0xff] }
 0x3a6   : > { %3819 = vst [vmem:[#allocation12 + $0x188] sm:$0xff] %v3525_v63  ;;  %v3247_v63 = vmul.f32 %v6329_v4, %v2946_v23  ;;  %v3546_v37 = vadd.f32 %v6341_v7, %v3245_v40  ;;  %v2966_v40 = vld [vmem:[#allocation12 + $0x2e0] sm:$0xff] }
 0x3a7   : > { %3820 = vst [vmem:[#allocation12 + $0x190] sm:$0xff] %v3526_v43  ;;  %v3248_v43 = vmul.f32 %v6331_v22, %v2947_v52  ;;  %v3547_v14 = vadd.f32 %v6343_v30, %v3246_v5  ;;  %v2967_v5 = vld [vmem:[#allocation12 + $0x2e8] sm:$0xff] }
 0x3a8   : > { %3821 = vst [vmem:[#allocation12 + $0x198] sm:$0xff] %v3527_v19  ;;  %v3249_v19 = vmul.f32 %v6333_v1, %v2948_v18  ;;  %v3548_v45 = vadd.f32 %v6339_v41, %v3247_v63  ;;  %v2968_v63 = vld [vmem:[#allocation12 + $0x2f0] sm:$0xff] }
 0x3a9   : > { %3822 = vst [vmem:[#allocation12 + $0x1a0] sm:$0xff] %v3528_v46  ;;  %v3250_v46 = vmul.f32 %v6329_v4, %v2949_v13  ;;  %v3549_v56 = vadd.f32 %v6341_v7, %v3248_v43  ;;  %v2969_v43 = vld [vmem:[#allocation12 + $0x2f8] sm:$0xff] }
 0x3aa   : > { %3823 = vst [vmem:[#allocation12 + $0x1a8] sm:$0xff] %v3529_v15  ;;  %v3251_v15 = vmul.f32 %v6331_v22, %v2950_v21  ;;  %v3550_v33 = vadd.f32 %v6343_v30, %v3249_v19  ;;  %v2970_v19 = vld [vmem:[#allocation12 + $0x300] sm:$0xff] }
 0x3ab   : > { %3824 = vst [vmem:[#allocation12 + $0x1b0] sm:$0xff] %v3530_v51  ;;  %v3252_v51 = vmul.f32 %v6333_v1, %v2951_v55  ;;  %v3551_v11 = vadd.f32 %v6339_v41, %v3250_v46  ;;  %v2971_v46 = vld [vmem:[#allocation12 + $0x308] sm:$0xff] }
 0x3ac   : > { %3825 = vst [vmem:[#allocation12 + $0x1b8] sm:$0xff] %v3531_v31  ;;  %v3253_v31 = vmul.f32 %v6329_v4, %v2952_v6  ;;  %v3552_v35 = vadd.f32 %v6341_v7, %v3251_v15  ;;  %v2972_v15 = vld [vmem:[#allocation12 + $0x310] sm:$0xff] }
 0x3ad   : > { %3826 = vst [vmem:[#allocation12 + $0x1c0] sm:$0xff] %v3532_v24  ;;  %v3254_v24 = vmul.f32 %v6331_v22, %v2953_v2  ;;  %v3553_v17 = vadd.f32 %v6343_v30, %v3252_v51  ;;  %v2973_v51 = vld [vmem:[#allocation12 + $0x318] sm:$0xff] }
 0x3ae   : > { %3827 = vst [vmem:[#allocation12 + $0x1c8] sm:$0xff] %v3533_v28  ;;  %v3255_v28 = vmul.f32 %v6333_v1, %v2954_v60  ;;  %v3554_v61 = vadd.f32 %v6339_v41, %v3253_v31  ;;  %v2974_v31 = vld [vmem:[#allocation12 + $0x320] sm:$0xff] }
 0x3af   : > { %3828 = vst [vmem:[#allocation12 + $0x1d0] sm:$0xff] %v3534_v38  ;;  %v3256_v38 = vmul.f32 %v6329_v4, %v2955_v8  ;;  %v3555_v3 = vadd.f32 %v6341_v7, %v3254_v24  ;;  %v2975_v24 = vld [vmem:[#allocation12 + $0x328] sm:$0xff] }
 0x3b0   : > { %3829 = vst [vmem:[#allocation12 + $0x1d8] sm:$0xff] %v3535_v54  ;;  %v3257_v54 = vmul.f32 %v6331_v22, %v2956_v0  ;;  %v3556_v32 = vadd.f32 %v6343_v30, %v3255_v28  ;;  %v2976_v28 = vld [vmem:[#allocation12 + $0x330] sm:$0xff] }
 0x3b1   : > { %3830 = vst [vmem:[#allocation12 + $0x1e0] sm:$0xff] %v3536_v59  ;;  %v3258_v59 = vmul.f32 %v6333_v1, %v2957_v26  ;;  %v3557_v53 = vadd.f32 %v6339_v41, %v3256_v38  ;;  %v2977_v38 = vld [vmem:[#allocation12 + $0x338] sm:$0xff] }
 0x3b2   : > { %3831 = vst [vmem:[#allocation12 + $0x1e8] sm:$0xff] %v3537_v50  ;;  %v3259_v50 = vmul.f32 %v6329_v4, %v2958_v44  ;;  %v3558_v34 = vadd.f32 %v6341_v7, %v3257_v54  ;;  %v2978_v54 = vld [vmem:[#allocation12 + $0x340] sm:$0xff] }
 0x3b3   : > { %3832 = vst [vmem:[#allocation12 + $0x1f0] sm:$0xff] %v3538_v49  ;;  %v3260_v49 = vmul.f32 %v6331_v22, %v2959_v9  ;;  %v3559_v25 = vadd.f32 %v6343_v30, %v3258_v59  ;;  %v2979_v59 = vld [vmem:[#allocation12 + $0x348] sm:$0xff] }
 0x3b4   : > { %3833 = vst [vmem:[#allocation12 + $0x1f8] sm:$0xff] %v3539_v20  ;;  %v3261_v20 = vmul.f32 %v6333_v1, %v2960_v36  ;;  %v3560_v27 = vadd.f32 %v6339_v41, %v3259_v50  ;;  %v2980_v50 = vld [vmem:[#allocation12 + $0x350] sm:$0xff] }
 0x3b5   : > { %3834 = vst [vmem:[#allocation12 + $0x200] sm:$0xff] %v3540_v62  ;;  %v3262_v62 = vmul.f32 %v6329_v4, %v2961_v39  ;;  %v3561_v23 = vadd.f32 %v6341_v7, %v3260_v49  ;;  %v2981_v49 = vld [vmem:[#allocation12 + $0x358] sm:$0xff] }
 0x3b6   : > { %3835 = vst [vmem:[#allocation12 + $0x208] sm:$0xff] %v3541_v57  ;;  %v3263_v57 = vmul.f32 %v6331_v22, %v2962_v29  ;;  %v3562_v52 = vadd.f32 %v6343_v30, %v3261_v20  ;;  %v2982_v20 = vld [vmem:[#allocation12 + $0x360] sm:$0xff] }
 0x3b7   : > { %3836 = vst [vmem:[#allocation12 + $0x210] sm:$0xff] %v3542_v58  ;;  %v3264_v58 = vmul.f32 %v6333_v1, %v2963_v10  ;;  %v3563_v18 = vadd.f32 %v6339_v41, %v3262_v62  ;;  %v2983_v62 = vld [vmem:[#allocation12 + $0x368] sm:$0xff] }
 0x3b8   : > { %3837 = vst [vmem:[#allocation12 + $0x218] sm:$0xff] %v3543_v16  ;;  %v3265_v16 = vmul.f32 %v6329_v4, %v2964_v12  ;;  %v3564_v13 = vadd.f32 %v6341_v7, %v3263_v57  ;;  %v2984_v57 = vld [vmem:[#allocation12 + $0x370] sm:$0xff] }
 0x3b9   : > { %3838 = vst [vmem:[#allocation12 + $0x220] sm:$0xff] %v3544_v48  ;;  %v3266_v48 = vmul.f32 %v6331_v22, %v2965_v42  ;;  %v3565_v21 = vadd.f32 %v6343_v30, %v3264_v58  ;;  %v2985_v58 = vld [vmem:[#allocation12 + $0x378] sm:$0xff] }
 0x3ba   : > { %3839 = vst [vmem:[#allocation12 + $0x228] sm:$0xff] %v3545_v47  ;;  %v3267_v47 = vmul.f32 %v6333_v1, %v2966_v40  ;;  %v3566_v55 = vadd.f32 %v6339_v41, %v3265_v16  ;;  %v2986_v16 = vld [vmem:[#allocation12 + $0x380] sm:$0xff] }
 0x3bb   : > { %3840 = vst [vmem:[#allocation12 + $0x230] sm:$0xff] %v3546_v37  ;;  %v3268_v37 = vmul.f32 %v6329_v4, %v2967_v5  ;;  %v3567_v6 = vadd.f32 %v6341_v7, %v3266_v48  ;;  %v2987_v48 = vld [vmem:[#allocation12 + $0x388] sm:$0xff] }
 0x3bc   : > { %3841 = vst [vmem:[#allocation12 + $0x238] sm:$0xff] %v3547_v14  ;;  %v3269_v14 = vmul.f32 %v6331_v22, %v2968_v63  ;;  %v3568_v2 = vadd.f32 %v6343_v30, %v3267_v47  ;;  %v2988_v47 = vld [vmem:[#allocation12 + $0x390] sm:$0xff] }
 0x3bd   : > { %3842 = vst [vmem:[#allocation12 + $0x240] sm:$0xff] %v3548_v45  ;;  %v3270_v45 = vmul.f32 %v6333_v1, %v2969_v43  ;;  %v3569_v60 = vadd.f32 %v6339_v41, %v3268_v37  ;;  %v2989_v37 = vld [vmem:[#allocation12 + $0x398] sm:$0xff] }
 0x3be   : > { %3843 = vst [vmem:[#allocation12 + $0x248] sm:$0xff] %v3549_v56  ;;  %v3271_v56 = vmul.f32 %v6329_v4, %v2970_v19  ;;  %v3570_v8 = vadd.f32 %v6341_v7, %v3269_v14  ;;  %v2990_v14 = vld [vmem:[#allocation12 + $0x3a0] sm:$0xff] }
 0x3bf   : > { %3844 = vst [vmem:[#allocation12 + $0x250] sm:$0xff] %v3550_v33  ;;  %v3272_v33 = vmul.f32 %v6331_v22, %v2971_v46  ;;  %v3571_v0 = vadd.f32 %v6343_v30, %v3270_v45  ;;  %v2991_v45 = vld [vmem:[#allocation12 + $0x3a8] sm:$0xff] }
 0x3c0   : > { %3845 = vst [vmem:[#allocation12 + $0x258] sm:$0xff] %v3551_v11  ;;  %v3273_v11 = vmul.f32 %v6333_v1, %v2972_v15  ;;  %v3572_v26 = vadd.f32 %v6339_v41, %v3271_v56  ;;  %v2992_v56 = vld [vmem:[#allocation12 + $0x3b0] sm:$0xff] }
 0x3c1   : > { %3846 = vst [vmem:[#allocation12 + $0x260] sm:$0xff] %v3552_v35  ;;  %v3274_v35 = vmul.f32 %v6329_v4, %v2973_v51  ;;  %v3573_v44 = vadd.f32 %v6341_v7, %v3272_v33  ;;  %v2993_v33 = vld [vmem:[#allocation12 + $0x3b8] sm:$0xff] }
 0x3c2   : > { %3847 = vst [vmem:[#allocation12 + $0x268] sm:$0xff] %v3553_v17  ;;  %v3275_v17 = vmul.f32 %v6331_v22, %v2974_v31  ;;  %v3574_v9 = vadd.f32 %v6343_v30, %v3273_v11  ;;  %v2994_v11 = vld [vmem:[#allocation12 + $0x3c0] sm:$0xff] }
 0x3c3   : > { %3848 = vst [vmem:[#allocation12 + $0x270] sm:$0xff] %v3554_v61  ;;  %v3276_v61 = vmul.f32 %v6333_v1, %v2975_v24  ;;  %v3575_v36 = vadd.f32 %v6339_v41, %v3274_v35  ;;  %v2995_v35 = vld [vmem:[#allocation12 + $0x3c8] sm:$0xff] }
 0x3c4   : > { %3849 = vst [vmem:[#allocation12 + $0x278] sm:$0xff] %v3555_v3  ;;  %v3277_v3 = vmul.f32 %v6329_v4, %v2976_v28  ;;  %v3576_v39 = vadd.f32 %v6341_v7, %v3275_v17  ;;  %v2996_v17 = vld [vmem:[#allocation12 + $0x3d0] sm:$0xff] }
 0x3c5   : > { %3850 = vst [vmem:[#allocation12 + $0x280] sm:$0xff] %v3556_v32  ;;  %v3278_v32 = vmul.f32 %v6331_v22, %v2977_v38  ;;  %v3577_v29 = vadd.f32 %v6343_v30, %v3276_v61  ;;  %v2997_v61 = vld [vmem:[#allocation12 + $0x3d8] sm:$0xff] }
 0x3c6   : > { %3851 = vst [vmem:[#allocation12 + $0x288] sm:$0xff] %v3557_v53  ;;  %v3279_v53 = vmul.f32 %v6333_v1, %v2978_v54  ;;  %v3578_v10 = vadd.f32 %v6339_v41, %v3277_v3  ;;  %v2998_v3 = vld [vmem:[#allocation12 + $0x3e0] sm:$0xff] }
 0x3c7   : > { %3852 = vst [vmem:[#allocation12 + $0x290] sm:$0xff] %v3558_v34  ;;  %v3280_v34 = vmul.f32 %v6329_v4, %v2979_v59  ;;  %v3579_v12 = vadd.f32 %v6341_v7, %v3278_v32  ;;  %v2999_v32 = vld [vmem:[#allocation12 + $0x3e8] sm:$0xff] }
 0x3c8   : > { %3853 = vst [vmem:[#allocation12 + $0x298] sm:$0xff] %v3559_v25  ;;  %v3281_v25 = vmul.f32 %v6331_v22, %v2980_v50  ;;  %v3580_v42 = vadd.f32 %v6343_v30, %v3279_v53  ;;  %v3000_v53 = vld [vmem:[#allocation12 + $0x3f0] sm:$0xff] }
 0x3c9   : > { %3854 = vst [vmem:[#allocation12 + $0x2a0] sm:$0xff] %v3560_v27  ;;  %v3282_v27 = vmul.f32 %v6333_v1, %v2981_v49  ;;  %v3581_v40 = vadd.f32 %v6339_v41, %v3280_v34  ;;  %v3001_v34 = vld [vmem:[#allocation12 + $0x3f8] sm:$0xff] }
 0x3ca   : > { %3855 = vst [vmem:[#allocation12 + $0x2a8] sm:$0xff] %v3561_v23  ;;  %v3283_v23 = vmul.f32 %v6329_v4, %v2982_v20  ;;  %v3582_v5 = vadd.f32 %v6341_v7, %v3281_v25  ;;  %v3002_v25 = vld [vmem:[#allocation12 + $0x400] sm:$0xff] }
 0x3cb   : > { %3856 = vst [vmem:[#allocation12 + $0x2b0] sm:$0xff] %v3562_v52  ;;  %v3284_v52 = vmul.f32 %v6331_v22, %v2983_v62  ;;  %v3583_v63 = vadd.f32 %v6343_v30, %v3282_v27  ;;  %v3003_v27 = vld [vmem:[#allocation12 + $0x408] sm:$0xff] }
 0x3cc   : > { %3857 = vst [vmem:[#allocation12 + $0x2b8] sm:$0xff] %v3563_v18  ;;  %v3285_v18 = vmul.f32 %v6333_v1, %v2984_v57  ;;  %v3584_v43 = vadd.f32 %v6339_v41, %v3283_v23  ;;  %v3004_v23 = vld [vmem:[#allocation12 + $0x410] sm:$0xff] }
 0x3cd   : > { %3858 = vst [vmem:[#allocation12 + $0x2c0] sm:$0xff] %v3564_v13  ;;  %v3286_v13 = vmul.f32 %v6329_v4, %v2985_v58  ;;  %v3585_v19 = vadd.f32 %v6341_v7, %v3284_v52  ;;  %v3005_v52 = vld [vmem:[#allocation12 + $0x418] sm:$0xff] }
 0x3ce   : > { %3859 = vst [vmem:[#allocation12 + $0x2c8] sm:$0xff] %v3565_v21  ;;  %v3287_v21 = vmul.f32 %v6331_v22, %v2986_v16  ;;  %v3586_v46 = vadd.f32 %v6343_v30, %v3285_v18  ;;  %v3006_v18 = vld [vmem:[#allocation12 + $0x420] sm:$0xff] }
 0x3cf   : > { %3860 = vst [vmem:[#allocation12 + $0x2d0] sm:$0xff] %v3566_v55  ;;  %v3288_v55 = vmul.f32 %v6333_v1, %v2987_v48  ;;  %v3587_v15 = vadd.f32 %v6339_v41, %v3286_v13  ;;  %v3007_v13 = vld [vmem:[#allocation12 + $0x428] sm:$0xff] }
 0x3d0   : > { %3861 = vst [vmem:[#allocation12 + $0x2d8] sm:$0xff] %v3567_v6  ;;  %v3289_v6 = vmul.f32 %v6329_v4, %v2988_v47  ;;  %v3588_v51 = vadd.f32 %v6341_v7, %v3287_v21  ;;  %v3008_v21 = vld [vmem:[#allocation12 + $0x430] sm:$0xff] }
 0x3d1   : > { %3862 = vst [vmem:[#allocation12 + $0x2e0] sm:$0xff] %v3568_v2  ;;  %v3290_v2 = vmul.f32 %v6331_v22, %v2989_v37  ;;  %v3589_v31 = vadd.f32 %v6343_v30, %v3288_v55  ;;  %v3009_v55 = vld [vmem:[#allocation12 + $0x438] sm:$0xff] }
 0x3d2   : > { %3863 = vst [vmem:[#allocation12 + $0x2e8] sm:$0xff] %v3569_v60  ;;  %v3291_v60 = vmul.f32 %v6333_v1, %v2990_v14  ;;  %v3590_v24 = vadd.f32 %v6339_v41, %v3289_v6  ;;  %v3010_v6 = vld [vmem:[#allocation12 + $0x440] sm:$0xff] }
 0x3d3   : > { %3864 = vst [vmem:[#allocation12 + $0x2f0] sm:$0xff] %v3570_v8  ;;  %v3292_v8 = vmul.f32 %v6329_v4, %v2991_v45  ;;  %v3591_v28 = vadd.f32 %v6341_v7, %v3290_v2  ;;  %v3011_v2 = vld [vmem:[#allocation12 + $0x448] sm:$0xff] }
 0x3d4   : > { %3865 = vst [vmem:[#allocation12 + $0x2f8] sm:$0xff] %v3571_v0  ;;  %v3293_v0 = vmul.f32 %v6331_v22, %v2992_v56  ;;  %v3592_v38 = vadd.f32 %v6343_v30, %v3291_v60  ;;  %v3012_v60 = vld [vmem:[#allocation12 + $0x450] sm:$0xff] }
 0x3d5   : > { %3866 = vst [vmem:[#allocation12 + $0x300] sm:$0xff] %v3572_v26  ;;  %v3294_v26 = vmul.f32 %v6333_v1, %v2993_v33  ;;  %v3593_v54 = vadd.f32 %v6339_v41, %v3292_v8  ;;  %v3013_v8 = vld [vmem:[#allocation12 + $0x458] sm:$0xff] }
 0x3d6   : > { %3867 = vst [vmem:[#allocation12 + $0x308] sm:$0xff] %v3573_v44  ;;  %v3295_v44 = vmul.f32 %v6329_v4, %v2994_v11  ;;  %v3594_v59 = vadd.f32 %v6341_v7, %v3293_v0  ;;  %v3014_v0 = vld [vmem:[#allocation12 + $0x460] sm:$0xff] }
 0x3d7   : > { %3868 = vst [vmem:[#allocation12 + $0x310] sm:$0xff] %v3574_v9  ;;  %v3296_v9 = vmul.f32 %v6331_v22, %v2995_v35  ;;  %v3595_v50 = vadd.f32 %v6343_v30, %v3294_v26  ;;  %v3015_v26 = vld [vmem:[#allocation12 + $0x468] sm:$0xff] }
 0x3d8   : > { %3869 = vst [vmem:[#allocation12 + $0x318] sm:$0xff] %v3575_v36  ;;  %v3297_v36 = vmul.f32 %v6333_v1, %v2996_v17  ;;  %v3596_v49 = vadd.f32 %v6339_v41, %v3295_v44  ;;  %v3016_v44 = vld [vmem:[#allocation12 + $0x470] sm:$0xff] }
 0x3d9   : > { %3870 = vst [vmem:[#allocation12 + $0x320] sm:$0xff] %v3576_v39  ;;  %v3298_v39 = vmul.f32 %v6329_v4, %v2997_v61  ;;  %v3597_v20 = vadd.f32 %v6341_v7, %v3296_v9  ;;  %v3017_v9 = vld [vmem:[#allocation12 + $0x478] sm:$0xff] }
 0x3da   : > { %3871 = vst [vmem:[#allocation12 + $0x328] sm:$0xff] %v3577_v29  ;;  %v3299_v29 = vmul.f32 %v6331_v22, %v2998_v3  ;;  %v3598_v62 = vadd.f32 %v6343_v30, %v3297_v36  ;;  %v3018_v36 = vld [vmem:[#allocation12 + $0x480] sm:$0xff] }
 0x3db   : > { %3872 = vst [vmem:[#allocation12 + $0x330] sm:$0xff] %v3578_v10  ;;  %v3300_v10 = vmul.f32 %v6333_v1, %v2999_v32  ;;  %v3599_v57 = vadd.f32 %v6339_v41, %v3298_v39  ;;  %v3019_v39 = vld [vmem:[#allocation12 + $0x488] sm:$0xff] }
 0x3dc   : > { %3873 = vst [vmem:[#allocation12 + $0x338] sm:$0xff] %v3579_v12  ;;  %v3301_v12 = vmul.f32 %v6329_v4, %v3000_v53  ;;  %v3600_v58 = vadd.f32 %v6341_v7, %v3299_v29  ;;  %v3020_v29 = vld [vmem:[#allocation12 + $0x490] sm:$0xff] }
 0x3dd   : > { %3874 = vst [vmem:[#allocation12 + $0x340] sm:$0xff] %v3580_v42  ;;  %v3302_v42 = vmul.f32 %v6331_v22, %v3001_v34  ;;  %v3601_v16 = vadd.f32 %v6343_v30, %v3300_v10  ;;  %v3021_v10 = vld [vmem:[#allocation12 + $0x498] sm:$0xff] }
 0x3de   : > { %3875 = vst [vmem:[#allocation12 + $0x348] sm:$0xff] %v3581_v40  ;;  %v3303_v40 = vmul.f32 %v6333_v1, %v3002_v25  ;;  %v3602_v48 = vadd.f32 %v6339_v41, %v3301_v12  ;;  %v3022_v12 = vld [vmem:[#allocation12 + $0x4a0] sm:$0xff] }
 0x3df   : > { %3876 = vst [vmem:[#allocation12 + $0x350] sm:$0xff] %v3582_v5  ;;  %v3304_v5 = vmul.f32 %v6329_v4, %v3003_v27  ;;  %v3603_v47 = vadd.f32 %v6341_v7, %v3302_v42  ;;  %v3023_v42 = vld [vmem:[#allocation12 + $0x4a8] sm:$0xff] }
 0x3e0   : > { %3877 = vst [vmem:[#allocation12 + $0x358] sm:$0xff] %v3583_v63  ;;  %v3305_v63 = vmul.f32 %v6331_v22, %v3004_v23  ;;  %v3604_v37 = vadd.f32 %v6343_v30, %v3303_v40  ;;  %v3024_v40 = vld [vmem:[#allocation12 + $0x4b0] sm:$0xff] }
 0x3e1   : > { %3878 = vst [vmem:[#allocation12 + $0x360] sm:$0xff] %v3584_v43  ;;  %v3306_v43 = vmul.f32 %v6333_v1, %v3005_v52  ;;  %v3605_v14 = vadd.f32 %v6339_v41, %v3304_v5  ;;  %v3025_v5 = vld [vmem:[#allocation12 + $0x4b8] sm:$0xff] }
 0x3e2   : > { %3879 = vst [vmem:[#allocation12 + $0x368] sm:$0xff] %v3585_v19  ;;  %v3307_v19 = vmul.f32 %v6329_v4, %v3006_v18  ;;  %v3606_v45 = vadd.f32 %v6341_v7, %v3305_v63  ;;  %v3026_v63 = vld [vmem:[#allocation12 + $0x4c0] sm:$0xff] }
 0x3e3   : > { %3880 = vst [vmem:[#allocation12 + $0x370] sm:$0xff] %v3586_v46  ;;  %v3308_v46 = vmul.f32 %v6331_v22, %v3007_v13  ;;  %v3607_v56 = vadd.f32 %v6343_v30, %v3306_v43  ;;  %v3027_v43 = vld [vmem:[#allocation12 + $0x4c8] sm:$0xff] }
 0x3e4   : > { %3881 = vst [vmem:[#allocation12 + $0x378] sm:$0xff] %v3587_v15  ;;  %v3309_v15 = vmul.f32 %v6333_v1, %v3008_v21  ;;  %v3608_v33 = vadd.f32 %v6339_v41, %v3307_v19  ;;  %v3028_v19 = vld [vmem:[#allocation12 + $0x4d0] sm:$0xff] }
 0x3e5   : > { %3882 = vst [vmem:[#allocation12 + $0x380] sm:$0xff] %v3588_v51  ;;  %v3310_v51 = vmul.f32 %v6329_v4, %v3009_v55  ;;  %v3609_v11 = vadd.f32 %v6341_v7, %v3308_v46  ;;  %v3029_v46 = vld [vmem:[#allocation12 + $0x4d8] sm:$0xff] }
 0x3e6   : > { %3883 = vst [vmem:[#allocation12 + $0x388] sm:$0xff] %v3589_v31  ;;  %v3311_v31 = vmul.f32 %v6331_v22, %v3010_v6  ;;  %v3610_v35 = vadd.f32 %v6343_v30, %v3309_v15  ;;  %v3030_v15 = vld [vmem:[#allocation12 + $0x4e0] sm:$0xff] }
 0x3e7   : > { %3884 = vst [vmem:[#allocation12 + $0x390] sm:$0xff] %v3590_v24  ;;  %v3312_v24 = vmul.f32 %v6333_v1, %v3011_v2  ;;  %v3611_v17 = vadd.f32 %v6339_v41, %v3310_v51  ;;  %v3031_v51 = vld [vmem:[#allocation12 + $0x4e8] sm:$0xff] }
 0x3e8   : > { %3885 = vst [vmem:[#allocation12 + $0x398] sm:$0xff] %v3591_v28  ;;  %v3313_v28 = vmul.f32 %v6329_v4, %v3012_v60  ;;  %v3612_v61 = vadd.f32 %v6341_v7, %v3311_v31  ;;  %v3032_v31 = vld [vmem:[#allocation12 + $0x4f0] sm:$0xff] }
 0x3e9   : > { %3886 = vst [vmem:[#allocation12 + $0x3a0] sm:$0xff] %v3592_v38  ;;  %v3314_v38 = vmul.f32 %v6331_v22, %v3013_v8  ;;  %v3613_v3 = vadd.f32 %v6343_v30, %v3312_v24  ;;  %v3033_v24 = vld [vmem:[#allocation12 + $0x4f8] sm:$0xff] }
 0x3ea   : > { %3887 = vst [vmem:[#allocation12 + $0x3a8] sm:$0xff] %v3593_v54  ;;  %v3315_v54 = vmul.f32 %v6333_v1, %v3014_v0  ;;  %v3614_v32 = vadd.f32 %v6339_v41, %v3313_v28  ;;  %v3034_v28 = vld [vmem:[#allocation12 + $0x500] sm:$0xff] }
 0x3eb   : > { %3888 = vst [vmem:[#allocation12 + $0x3b0] sm:$0xff] %v3594_v59  ;;  %v3316_v59 = vmul.f32 %v6329_v4, %v3015_v26  ;;  %v3615_v53 = vadd.f32 %v6341_v7, %v3314_v38  ;;  %v3035_v38 = vld [vmem:[#allocation12 + $0x508] sm:$0xff] }
 0x3ec   : > { %3889 = vst [vmem:[#allocation12 + $0x3b8] sm:$0xff] %v3595_v50  ;;  %v3317_v50 = vmul.f32 %v6331_v22, %v3016_v44  ;;  %v3616_v34 = vadd.f32 %v6343_v30, %v3315_v54  ;;  %v3036_v54 = vld [vmem:[#allocation12 + $0x510] sm:$0xff] }
 0x3ed   : > { %3890 = vst [vmem:[#allocation12 + $0x3c0] sm:$0xff] %v3596_v49  ;;  %v3318_v49 = vmul.f32 %v6333_v1, %v3017_v9  ;;  %v3617_v25 = vadd.f32 %v6339_v41, %v3316_v59  ;;  %v3037_v59 = vld [vmem:[#allocation12 + $0x518] sm:$0xff] }
 0x3ee   : > { %3891 = vst [vmem:[#allocation12 + $0x3c8] sm:$0xff] %v3597_v20  ;;  %v3319_v20 = vmul.f32 %v6329_v4, %v3018_v36  ;;  %v3618_v27 = vadd.f32 %v6341_v7, %v3317_v50  ;;  %v3038_v50 = vld [vmem:[#allocation12 + $0x520] sm:$0xff] }
 0x3ef   : > { %3892 = vst [vmem:[#allocation12 + $0x3d0] sm:$0xff] %v3598_v62  ;;  %v3320_v62 = vmul.f32 %v6331_v22, %v3019_v39  ;;  %v3619_v23 = vadd.f32 %v6343_v30, %v3318_v49  ;;  %v3039_v49 = vld [vmem:[#allocation12 + $0x528] sm:$0xff] }
 0x3f0   : > { %3893 = vst [vmem:[#allocation12 + $0x3d8] sm:$0xff] %v3599_v57  ;;  %v3321_v57 = vmul.f32 %v6333_v1, %v3020_v29  ;;  %v3620_v52 = vadd.f32 %v6339_v41, %v3319_v20  ;;  %v3040_v20 = vld [vmem:[#allocation12 + $0x530] sm:$0xff] }
 0x3f1   : > { %3894 = vst [vmem:[#allocation12 + $0x3e0] sm:$0xff] %v3600_v58  ;;  %v3322_v58 = vmul.f32 %v6329_v4, %v3021_v10  ;;  %v3621_v18 = vadd.f32 %v6341_v7, %v3320_v62  ;;  %v3041_v62 = vld [vmem:[#allocation12 + $0x538] sm:$0xff] }
 0x3f2   : > { %3895 = vst [vmem:[#allocation12 + $0x3e8] sm:$0xff] %v3601_v16  ;;  %v3323_v16 = vmul.f32 %v6331_v22, %v3022_v12  ;;  %v3622_v13 = vadd.f32 %v6343_v30, %v3321_v57  ;;  %v3042_v57 = vld [vmem:[#allocation12 + $0x540] sm:$0xff] }
 0x3f3   : > { %3896 = vst [vmem:[#allocation12 + $0x3f0] sm:$0xff] %v3602_v48  ;;  %v3324_v48 = vmul.f32 %v6333_v1, %v3023_v42  ;;  %v3623_v21 = vadd.f32 %v6339_v41, %v3322_v58  ;;  %v3043_v58 = vld [vmem:[#allocation12 + $0x548] sm:$0xff] }
 0x3f4   : > { %3897 = vst [vmem:[#allocation12 + $0x3f8] sm:$0xff] %v3603_v47  ;;  %v3325_v47 = vmul.f32 %v6329_v4, %v3024_v40  ;;  %v3624_v55 = vadd.f32 %v6341_v7, %v3323_v16  ;;  %v3044_v16 = vld [vmem:[#allocation12 + $0x550] sm:$0xff] }
 0x3f5   : > { %3898 = vst [vmem:[#allocation12 + $0x400] sm:$0xff] %v3604_v37  ;;  %v3326_v37 = vmul.f32 %v6331_v22, %v3025_v5  ;;  %v3625_v6 = vadd.f32 %v6343_v30, %v3324_v48  ;;  %v3045_v48 = vld [vmem:[#allocation12 + $0x558] sm:$0xff] }
 0x3f6   : > { %3899 = vst [vmem:[#allocation12 + $0x408] sm:$0xff] %v3605_v14  ;;  %v3327_v14 = vmul.f32 %v6333_v1, %v3026_v63  ;;  %v3626_v2 = vadd.f32 %v6339_v41, %v3325_v47  ;;  %v3046_v47 = vld [vmem:[#allocation12 + $0x560] sm:$0xff] }
 0x3f7   : > { %3900 = vst [vmem:[#allocation12 + $0x410] sm:$0xff] %v3606_v45  ;;  %v3328_v45 = vmul.f32 %v6329_v4, %v3027_v43  ;;  %v3627_v60 = vadd.f32 %v6341_v7, %v3326_v37  ;;  %v3047_v37 = vld [vmem:[#allocation12 + $0x568] sm:$0xff] }
 0x3f8   : > { %3901 = vst [vmem:[#allocation12 + $0x418] sm:$0xff] %v3607_v56  ;;  %v3329_v56 = vmul.f32 %v6331_v22, %v3028_v19  ;;  %v3628_v8 = vadd.f32 %v6343_v30, %v3327_v14  ;;  %v3048_v14 = vld [vmem:[#allocation12 + $0x570] sm:$0xff] }
 0x3f9   : > { %3902 = vst [vmem:[#allocation12 + $0x420] sm:$0xff] %v3608_v33  ;;  %v3330_v33 = vmul.f32 %v6333_v1, %v3029_v46  ;;  %v3629_v0 = vadd.f32 %v6339_v41, %v3328_v45  ;;  %v3049_v45 = vld [vmem:[#allocation12 + $0x578] sm:$0xff] }
 0x3fa   : > { %3903 = vst [vmem:[#allocation12 + $0x428] sm:$0xff] %v3609_v11  ;;  %v3331_v11 = vmul.f32 %v6329_v4, %v3030_v15  ;;  %v3630_v26 = vadd.f32 %v6341_v7, %v3329_v56  ;;  %v3050_v56 = vld [vmem:[#allocation12 + $0x580] sm:$0xff] }
 0x3fb   : > { %3904 = vst [vmem:[#allocation12 + $0x430] sm:$0xff] %v3610_v35  ;;  %v3332_v35 = vmul.f32 %v6331_v22, %v3031_v51  ;;  %v3631_v44 = vadd.f32 %v6343_v30, %v3330_v33  ;;  %v3051_v33 = vld [vmem:[#allocation12 + $0x588] sm:$0xff] }
 0x3fc   : > { %3905 = vst [vmem:[#allocation12 + $0x438] sm:$0xff] %v3611_v17  ;;  %v3333_v17 = vmul.f32 %v6333_v1, %v3032_v31  ;;  %v3632_v9 = vadd.f32 %v6339_v41, %v3331_v11  ;;  %v3052_v11 = vld [vmem:[#allocation12 + $0x590] sm:$0xff] }
 0x3fd   : > { %3906 = vst [vmem:[#allocation12 + $0x440] sm:$0xff] %v3612_v61  ;;  %v3334_v61 = vmul.f32 %v6329_v4, %v3033_v24  ;;  %v3633_v36 = vadd.f32 %v6341_v7, %v3332_v35  ;;  %v3053_v35 = vld [vmem:[#allocation12 + $0x598] sm:$0xff] }
 0x3fe   : > { %3907 = vst [vmem:[#allocation12 + $0x448] sm:$0xff] %v3613_v3  ;;  %v3335_v3 = vmul.f32 %v6331_v22, %v3034_v28  ;;  %v3634_v39 = vadd.f32 %v6343_v30, %v3333_v17  ;;  %v3054_v17 = vld [vmem:[#allocation12 + $0x5a0] sm:$0xff] }
 0x3ff   : > { %3908 = vst [vmem:[#allocation12 + $0x450] sm:$0xff] %v3614_v32  ;;  %v3336_v32 = vmul.f32 %v6333_v1, %v3035_v38  ;;  %v3635_v29 = vadd.f32 %v6339_v41, %v3334_v61  ;;  %v3055_v61 = vld [vmem:[#allocation12 + $0x5a8] sm:$0xff] }
 0x400   : > { %3909 = vst [vmem:[#allocation12 + $0x458] sm:$0xff] %v3615_v53  ;;  %v3337_v53 = vmul.f32 %v6329_v4, %v3036_v54  ;;  %v3636_v10 = vadd.f32 %v6341_v7, %v3335_v3  ;;  %v3056_v3 = vld [vmem:[#allocation12 + $0x5b0] sm:$0xff] }
 0x401   : > { %3910 = vst [vmem:[#allocation12 + $0x460] sm:$0xff] %v3616_v34  ;;  %v3338_v34 = vmul.f32 %v6331_v22, %v3037_v59  ;;  %v3637_v12 = vadd.f32 %v6343_v30, %v3336_v32  ;;  %v3057_v32 = vld [vmem:[#allocation12 + $0x5b8] sm:$0xff] }
 0x402   : > { %3911 = vst [vmem:[#allocation12 + $0x468] sm:$0xff] %v3617_v25  ;;  %v3339_v25 = vmul.f32 %v6333_v1, %v3038_v50  ;;  %v3638_v42 = vadd.f32 %v6339_v41, %v3337_v53  ;;  %v3058_v53 = vld [vmem:[#allocation12 + $0x5c0] sm:$0xff] }
 0x403   : > { %3912 = vst [vmem:[#allocation12 + $0x470] sm:$0xff] %v3618_v27  ;;  %v3340_v27 = vmul.f32 %v6329_v4, %v3039_v49  ;;  %v3639_v40 = vadd.f32 %v6341_v7, %v3338_v34  ;;  %v3059_v34 = vld [vmem:[#allocation12 + $0x5c8] sm:$0xff] }
 0x404   : > { %3913 = vst [vmem:[#allocation12 + $0x478] sm:$0xff] %v3619_v23  ;;  %v3341_v23 = vmul.f32 %v6331_v22, %v3040_v20  ;;  %v3640_v5 = vadd.f32 %v6343_v30, %v3339_v25  ;;  %v3060_v25 = vld [vmem:[#allocation12 + $0x5d0] sm:$0xff] }
 0x405   : > { %3914 = vst [vmem:[#allocation12 + $0x480] sm:$0xff] %v3620_v52  ;;  %v3342_v52 = vmul.f32 %v6333_v1, %v3041_v62  ;;  %v3641_v63 = vadd.f32 %v6339_v41, %v3340_v27  ;;  %v3061_v27 = vld [vmem:[#allocation12 + $0x5d8] sm:$0xff] }
 0x406   : > { %3915 = vst [vmem:[#allocation12 + $0x488] sm:$0xff] %v3621_v18  ;;  %v3343_v18 = vmul.f32 %v6329_v4, %v3042_v57  ;;  %v3642_v43 = vadd.f32 %v6341_v7, %v3341_v23  ;;  %v3062_v23 = vld [vmem:[#allocation12 + $0x5e0] sm:$0xff] }
 0x407   : > { %3916 = vst [vmem:[#allocation12 + $0x490] sm:$0xff] %v3622_v13  ;;  %v3344_v13 = vmul.f32 %v6331_v22, %v3043_v58  ;;  %v3643_v19 = vadd.f32 %v6343_v30, %v3342_v52  ;;  %v3063_v52 = vld [vmem:[#allocation12 + $0x5e8] sm:$0xff] }
 0x408   : > { %3917 = vst [vmem:[#allocation12 + $0x498] sm:$0xff] %v3623_v21  ;;  %v3345_v21 = vmul.f32 %v6333_v1, %v3044_v16  ;;  %v3644_v46 = vadd.f32 %v6339_v41, %v3343_v18  ;;  %v3064_v18 = vld [vmem:[#allocation12 + $0x5f0] sm:$0xff] }
 0x409   : > { %3918 = vst [vmem:[#allocation12 + $0x4a0] sm:$0xff] %v3624_v55  ;;  %v3346_v55 = vmul.f32 %v6329_v4, %v3045_v48  ;;  %v3645_v15 = vadd.f32 %v6341_v7, %v3344_v13  ;;  %v3065_v13 = vld [vmem:[#allocation12 + $0x5f8] sm:$0xff] }
 0x40a   : > { %3919 = vst [vmem:[#allocation12 + $0x4a8] sm:$0xff] %v3625_v6  ;;  %v3347_v6 = vmul.f32 %v6331_v22, %v3046_v47  ;;  %v3646_v51 = vadd.f32 %v6343_v30, %v3345_v21  ;;  %v3066_v21 = vld [vmem:[#allocation12 + $0x600] sm:$0xff] }
 0x40b   : > { %3920 = vst [vmem:[#allocation12 + $0x4b0] sm:$0xff] %v3626_v2  ;;  %v3348_v2 = vmul.f32 %v6333_v1, %v3047_v37  ;;  %v3647_v31 = vadd.f32 %v6339_v41, %v3346_v55  ;;  %v3067_v55 = vld [vmem:[#allocation12 + $0x608] sm:$0xff] }
 0x40c   : > { %3921 = vst [vmem:[#allocation12 + $0x4b8] sm:$0xff] %v3627_v60  ;;  %v3349_v60 = vmul.f32 %v6329_v4, %v3048_v14  ;;  %v3648_v24 = vadd.f32 %v6341_v7, %v3347_v6  ;;  %v3068_v6 = vld [vmem:[#allocation12 + $0x610] sm:$0xff] }
 0x40d   : > { %3922 = vst [vmem:[#allocation12 + $0x4c0] sm:$0xff] %v3628_v8  ;;  %v3350_v8 = vmul.f32 %v6331_v22, %v3049_v45  ;;  %v3649_v28 = vadd.f32 %v6343_v30, %v3348_v2  ;;  %v3069_v2 = vld [vmem:[#allocation12 + $0x618] sm:$0xff] }
 0x40e   : > { %3923 = vst [vmem:[#allocation12 + $0x4c8] sm:$0xff] %v3629_v0  ;;  %v3351_v0 = vmul.f32 %v6333_v1, %v3050_v56  ;;  %v3650_v38 = vadd.f32 %v6339_v41, %v3349_v60  ;;  %v3070_v60 = vld [vmem:[#allocation12 + $0x620] sm:$0xff] }
 0x40f   : > { %3924 = vst [vmem:[#allocation12 + $0x4d0] sm:$0xff] %v3630_v26  ;;  %v3352_v26 = vmul.f32 %v6329_v4, %v3051_v33  ;;  %v3651_v54 = vadd.f32 %v6341_v7, %v3350_v8  ;;  %v3071_v8 = vld [vmem:[#allocation12 + $0x628] sm:$0xff] }
 0x410   : > { %3925 = vst [vmem:[#allocation12 + $0x4d8] sm:$0xff] %v3631_v44  ;;  %v3353_v44 = vmul.f32 %v6331_v22, %v3052_v11  ;;  %v3652_v59 = vadd.f32 %v6343_v30, %v3351_v0  ;;  %v3072_v0 = vld [vmem:[#allocation12 + $0x630] sm:$0xff] }
 0x411   : > { %3926 = vst [vmem:[#allocation12 + $0x4e0] sm:$0xff] %v3632_v9  ;;  %v3354_v9 = vmul.f32 %v6333_v1, %v3053_v35  ;;  %v3653_v50 = vadd.f32 %v6339_v41, %v3352_v26  ;;  %v3073_v26 = vld [vmem:[#allocation12 + $0x638] sm:$0xff] }
 0x412   : > { %3927 = vst [vmem:[#allocation12 + $0x4e8] sm:$0xff] %v3633_v36  ;;  %v3355_v36 = vmul.f32 %v6329_v4, %v3054_v17  ;;  %v3654_v49 = vadd.f32 %v6341_v7, %v3353_v44  ;;  %v3074_v44 = vld [vmem:[#allocation12 + $0x640] sm:$0xff] }
 0x413   : > { %3928 = vst [vmem:[#allocation12 + $0x4f0] sm:$0xff] %v3634_v39  ;;  %v3356_v39 = vmul.f32 %v6331_v22, %v3055_v61  ;;  %v3655_v20 = vadd.f32 %v6343_v30, %v3354_v9  ;;  %v3075_v9 = vld [vmem:[#allocation12 + $0x648] sm:$0xff] }
 0x414   : > { %3929 = vst [vmem:[#allocation12 + $0x4f8] sm:$0xff] %v3635_v29  ;;  %v3357_v29 = vmul.f32 %v6333_v1, %v3056_v3  ;;  %v3656_v62 = vadd.f32 %v6339_v41, %v3355_v36  ;;  %v3076_v36 = vld [vmem:[#allocation12 + $0x650] sm:$0xff] }
 0x415   : > { %3930 = vst [vmem:[#allocation12 + $0x500] sm:$0xff] %v3636_v10  ;;  %v3358_v10 = vmul.f32 %v6329_v4, %v3057_v32  ;;  %v3657_v57 = vadd.f32 %v6341_v7, %v3356_v39  ;;  %v3077_v39 = vld [vmem:[#allocation12 + $0x658] sm:$0xff] }
 0x416   : > { %3931 = vst [vmem:[#allocation12 + $0x508] sm:$0xff] %v3637_v12  ;;  %v3359_v12 = vmul.f32 %v6331_v22, %v3058_v53  ;;  %v3658_v58 = vadd.f32 %v6343_v30, %v3357_v29  ;;  %v3078_v29 = vld [vmem:[#allocation12 + $0x660] sm:$0xff] }
 0x417   : > { %3932 = vst [vmem:[#allocation12 + $0x510] sm:$0xff] %v3638_v42  ;;  %v3360_v42 = vmul.f32 %v6333_v1, %v3059_v34  ;;  %v3659_v16 = vadd.f32 %v6339_v41, %v3358_v10  ;;  %v3079_v10 = vld [vmem:[#allocation12 + $0x668] sm:$0xff] }
 0x418   : > { %3933 = vst [vmem:[#allocation12 + $0x518] sm:$0xff] %v3639_v40  ;;  %v3361_v40 = vmul.f32 %v6329_v4, %v3060_v25  ;;  %v3660_v48 = vadd.f32 %v6341_v7, %v3359_v12  ;;  %v3080_v12 = vld [vmem:[#allocation12 + $0x670] sm:$0xff] }
 0x419   : > { %3934 = vst [vmem:[#allocation12 + $0x520] sm:$0xff] %v3640_v5  ;;  %v3362_v5 = vmul.f32 %v6331_v22, %v3061_v27  ;;  %v3661_v47 = vadd.f32 %v6343_v30, %v3360_v42  ;;  %v3081_v42 = vld [vmem:[#allocation12 + $0x678] sm:$0xff] }
 0x41a   : > { %3935 = vst [vmem:[#allocation12 + $0x528] sm:$0xff] %v3641_v63  ;;  %v3363_v63 = vmul.f32 %v6333_v1, %v3062_v23  ;;  %v3662_v37 = vadd.f32 %v6339_v41, %v3361_v40  ;;  %v3082_v40 = vld [vmem:[#allocation12 + $0x680] sm:$0xff] }
 0x41b   : > { %3936 = vst [vmem:[#allocation12 + $0x530] sm:$0xff] %v3642_v43  ;;  %v3364_v43 = vmul.f32 %v6329_v4, %v3063_v52  ;;  %v3663_v14 = vadd.f32 %v6341_v7, %v3362_v5  ;;  %v3083_v5 = vld [vmem:[#allocation12 + $0x688] sm:$0xff] }
 0x41c   : > { %3937 = vst [vmem:[#allocation12 + $0x538] sm:$0xff] %v3643_v19  ;;  %v3365_v19 = vmul.f32 %v6331_v22, %v3064_v18  ;;  %v3664_v45 = vadd.f32 %v6343_v30, %v3363_v63  ;;  %v3084_v63 = vld [vmem:[#allocation12 + $0x690] sm:$0xff] }
 0x41d   : > { %3938 = vst [vmem:[#allocation12 + $0x540] sm:$0xff] %v3644_v46  ;;  %v3366_v46 = vmul.f32 %v6333_v1, %v3065_v13  ;;  %v3665_v56 = vadd.f32 %v6339_v41, %v3364_v43  ;;  %v3085_v43 = vld [vmem:[#allocation12 + $0x698] sm:$0xff] }
 0x41e   : > { %3939 = vst [vmem:[#allocation12 + $0x548] sm:$0xff] %v3645_v15  ;;  %v3367_v15 = vmul.f32 %v6329_v4, %v3066_v21  ;;  %v3666_v33 = vadd.f32 %v6341_v7, %v3365_v19  ;;  %v3086_v19 = vld [vmem:[#allocation12 + $0x6a0] sm:$0xff] }
 0x41f   : > { %3940 = vst [vmem:[#allocation12 + $0x550] sm:$0xff] %v3646_v51  ;;  %v3368_v51 = vmul.f32 %v6331_v22, %v3067_v55  ;;  %v3667_v11 = vadd.f32 %v6343_v30, %v3366_v46  ;;  %v3087_v46 = vld [vmem:[#allocation12 + $0x6a8] sm:$0xff] }
 0x420   : > { %3941 = vst [vmem:[#allocation12 + $0x558] sm:$0xff] %v3647_v31  ;;  %v3369_v31 = vmul.f32 %v6333_v1, %v3068_v6  ;;  %v3668_v35 = vadd.f32 %v6339_v41, %v3367_v15  ;;  %v3088_v15 = vld [vmem:[#allocation12 + $0x6b0] sm:$0xff] }
 0x421   : > { %3942 = vst [vmem:[#allocation12 + $0x560] sm:$0xff] %v3648_v24  ;;  %v3370_v24 = vmul.f32 %v6329_v4, %v3069_v2  ;;  %v3669_v17 = vadd.f32 %v6341_v7, %v3368_v51  ;;  %v3089_v51 = vld [vmem:[#allocation12 + $0x6b8] sm:$0xff] }
 0x422   : > { %3943 = vst [vmem:[#allocation12 + $0x568] sm:$0xff] %v3649_v28  ;;  %v3371_v28 = vmul.f32 %v6331_v22, %v3070_v60  ;;  %v3670_v61 = vadd.f32 %v6343_v30, %v3369_v31  ;;  %v3090_v31 = vld [vmem:[#allocation12 + $0x6c0] sm:$0xff] }
 0x423   : > { %3944 = vst [vmem:[#allocation12 + $0x570] sm:$0xff] %v3650_v38  ;;  %v3372_v38 = vmul.f32 %v6333_v1, %v3071_v8  ;;  %v3671_v3 = vadd.f32 %v6339_v41, %v3370_v24  ;;  %v3091_v24 = vld [vmem:[#allocation12 + $0x6c8] sm:$0xff] }
 0x424   : > { %3945 = vst [vmem:[#allocation12 + $0x578] sm:$0xff] %v3651_v54  ;;  %v3373_v54 = vmul.f32 %v6329_v4, %v3072_v0  ;;  %v3672_v32 = vadd.f32 %v6341_v7, %v3371_v28  ;;  %v3092_v28 = vld [vmem:[#allocation12 + $0x6d0] sm:$0xff] }
 0x425   : > { %3946 = vst [vmem:[#allocation12 + $0x580] sm:$0xff] %v3652_v59  ;;  %v3374_v59 = vmul.f32 %v6331_v22, %v3073_v26  ;;  %v3673_v53 = vadd.f32 %v6343_v30, %v3372_v38  ;;  %v3093_v38 = vld [vmem:[#allocation12 + $0x6d8] sm:$0xff] }
 0x426   : > { %3947 = vst [vmem:[#allocation12 + $0x588] sm:$0xff] %v3653_v50  ;;  %v3375_v50 = vmul.f32 %v6333_v1, %v3074_v44  ;;  %v3674_v34 = vadd.f32 %v6339_v41, %v3373_v54  ;;  %v3094_v54 = vld [vmem:[#allocation12 + $0x6e0] sm:$0xff] }
 0x427   : > { %3948 = vst [vmem:[#allocation12 + $0x590] sm:$0xff] %v3654_v49  ;;  %v3376_v49 = vmul.f32 %v6329_v4, %v3075_v9  ;;  %v3675_v25 = vadd.f32 %v6341_v7, %v3374_v59  ;;  %v3095_v59 = vld [vmem:[#allocation12 + $0x6e8] sm:$0xff] }
 0x428   : > { %3949 = vst [vmem:[#allocation12 + $0x598] sm:$0xff] %v3655_v20  ;;  %v3377_v20 = vmul.f32 %v6331_v22, %v3076_v36  ;;  %v3676_v27 = vadd.f32 %v6343_v30, %v3375_v50  ;;  %v3096_v50 = vld [vmem:[#allocation12 + $0x6f0] sm:$0xff] }
 0x429   : > { %3950 = vst [vmem:[#allocation12 + $0x5a0] sm:$0xff] %v3656_v62  ;;  %v3378_v62 = vmul.f32 %v6333_v1, %v3077_v39  ;;  %v3677_v23 = vadd.f32 %v6339_v41, %v3376_v49  ;;  %v3097_v49 = vld [vmem:[#allocation12 + $0x6f8] sm:$0xff] }
 0x42a   : > { %3951 = vst [vmem:[#allocation12 + $0x5a8] sm:$0xff] %v3657_v57  ;;  %v3379_v57 = vmul.f32 %v6329_v4, %v3078_v29  ;;  %v3678_v52 = vadd.f32 %v6341_v7, %v3377_v20  ;;  %v3098_v20 = vld [vmem:[#allocation12 + $0x700] sm:$0xff] }
 0x42b   : > { %3952 = vst [vmem:[#allocation12 + $0x5b0] sm:$0xff] %v3658_v58  ;;  %v3380_v58 = vmul.f32 %v6331_v22, %v3079_v10  ;;  %v3679_v18 = vadd.f32 %v6343_v30, %v3378_v62  ;;  %v3099_v62 = vld [vmem:[#allocation12 + $0x708] sm:$0xff] }
 0x42c   : > { %3953 = vst [vmem:[#allocation12 + $0x5b8] sm:$0xff] %v3659_v16  ;;  %v3381_v16 = vmul.f32 %v6333_v1, %v3080_v12  ;;  %v3680_v13 = vadd.f32 %v6339_v41, %v3379_v57  ;;  %v3100_v57 = vld [vmem:[#allocation12 + $0x710] sm:$0xff] }
 0x42d   : > { %3954 = vst [vmem:[#allocation12 + $0x5c0] sm:$0xff] %v3660_v48  ;;  %v3382_v48 = vmul.f32 %v6329_v4, %v3081_v42  ;;  %v3681_v21 = vadd.f32 %v6341_v7, %v3380_v58  ;;  %v3101_v58 = vld [vmem:[#allocation12 + $0x718] sm:$0xff] }
 0x42e   : > { %3955 = vst [vmem:[#allocation12 + $0x5c8] sm:$0xff] %v3661_v47  ;;  %v3383_v47 = vmul.f32 %v6331_v22, %v3082_v40  ;;  %v3682_v55 = vadd.f32 %v6343_v30, %v3381_v16  ;;  %v3102_v16 = vld [vmem:[#allocation12 + $0x720] sm:$0xff] }
 0x42f   : > { %3956 = vst [vmem:[#allocation12 + $0x5d0] sm:$0xff] %v3662_v37  ;;  %v3384_v37 = vmul.f32 %v6333_v1, %v3083_v5  ;;  %v3683_v6 = vadd.f32 %v6339_v41, %v3382_v48  ;;  %v3103_v48 = vld [vmem:[#allocation12 + $0x728] sm:$0xff] }
 0x430   : > { %3957 = vst [vmem:[#allocation12 + $0x5d8] sm:$0xff] %v3663_v14  ;;  %v3385_v14 = vmul.f32 %v6329_v4, %v3084_v63  ;;  %v3684_v2 = vadd.f32 %v6341_v7, %v3383_v47  ;;  %v3104_v47 = vld [vmem:[#allocation12 + $0x730] sm:$0xff] }
 0x431   : > { %3958 = vst [vmem:[#allocation12 + $0x5e0] sm:$0xff] %v3664_v45  ;;  %v3386_v45 = vmul.f32 %v6331_v22, %v3085_v43  ;;  %v3685_v60 = vadd.f32 %v6343_v30, %v3384_v37  ;;  %v3105_v37 = vld [vmem:[#allocation12 + $0x738] sm:$0xff] }
 0x432   : > { %3959 = vst [vmem:[#allocation12 + $0x5e8] sm:$0xff] %v3665_v56  ;;  %v3387_v56 = vmul.f32 %v6333_v1, %v3086_v19  ;;  %v3686_v8 = vadd.f32 %v6339_v41, %v3385_v14  ;;  %v3106_v14 = vld [vmem:[#allocation12 + $0x740] sm:$0xff] }
 0x433   : > { %3960 = vst [vmem:[#allocation12 + $0x5f0] sm:$0xff] %v3666_v33  ;;  %v3388_v33 = vmul.f32 %v6329_v4, %v3087_v46  ;;  %v3687_v0 = vadd.f32 %v6341_v7, %v3386_v45  ;;  %v3107_v45 = vld [vmem:[#allocation12 + $0x748] sm:$0xff] }
 0x434   : > { %3961 = vst [vmem:[#allocation12 + $0x5f8] sm:$0xff] %v3667_v11  ;;  %v3389_v11 = vmul.f32 %v6331_v22, %v3088_v15  ;;  %v3688_v26 = vadd.f32 %v6343_v30, %v3387_v56  ;;  %v3108_v56 = vld [vmem:[#allocation12 + $0x750] sm:$0xff] }
 0x435   : > { %3962 = vst [vmem:[#allocation12 + $0x600] sm:$0xff] %v3668_v35  ;;  %v3390_v35 = vmul.f32 %v6333_v1, %v3089_v51  ;;  %v3689_v44 = vadd.f32 %v6339_v41, %v3388_v33  ;;  %v3109_v33 = vld [vmem:[#allocation12 + $0x758] sm:$0xff] }
 0x436   : > { %3963 = vst [vmem:[#allocation12 + $0x608] sm:$0xff] %v3669_v17  ;;  %v3391_v17 = vmul.f32 %v6329_v4, %v3090_v31  ;;  %v3690_v9 = vadd.f32 %v6341_v7, %v3389_v11  ;;  %v3110_v11 = vld [vmem:[#allocation12 + $0x760] sm:$0xff] }
 0x437   : > { %3964 = vst [vmem:[#allocation12 + $0x610] sm:$0xff] %v3670_v61  ;;  %v3392_v61 = vmul.f32 %v6331_v22, %v3091_v24  ;;  %v3691_v36 = vadd.f32 %v6343_v30, %v3390_v35  ;;  %v3111_v35 = vld [vmem:[#allocation12 + $0x768] sm:$0xff] }
 0x438   : > { %3965 = vst [vmem:[#allocation12 + $0x618] sm:$0xff] %v3671_v3  ;;  %v3393_v3 = vmul.f32 %v6333_v1, %v3092_v28  ;;  %v3692_v39 = vadd.f32 %v6339_v41, %v3391_v17  ;;  %v3112_v17 = vld [vmem:[#allocation12 + $0x770] sm:$0xff] }
 0x439   : > { %3966 = vst [vmem:[#allocation12 + $0x620] sm:$0xff] %v3672_v32  ;;  %v3394_v32 = vmul.f32 %v6329_v4, %v3093_v38  ;;  %v3693_v29 = vadd.f32 %v6341_v7, %v3392_v61  ;;  %v3113_v61 = vld [vmem:[#allocation12 + $0x778] sm:$0xff] }
 0x43a   : > { %3967 = vst [vmem:[#allocation12 + $0x628] sm:$0xff] %v3673_v53  ;;  %v3395_v53 = vmul.f32 %v6331_v22, %v3094_v54  ;;  %v3694_v10 = vadd.f32 %v6343_v30, %v3393_v3  ;;  %v3114_v3 = vld [vmem:[#allocation12 + $0x780] sm:$0xff] }
 0x43b   : > { %3968 = vst [vmem:[#allocation12 + $0x630] sm:$0xff] %v3674_v34  ;;  %v3396_v34 = vmul.f32 %v6333_v1, %v3095_v59  ;;  %v3695_v12 = vadd.f32 %v6339_v41, %v3394_v32  ;;  %v3115_v32 = vld [vmem:[#allocation12 + $0x788] sm:$0xff] }
 0x43c   : > { %3969 = vst [vmem:[#allocation12 + $0x638] sm:$0xff] %v3675_v25  ;;  %v3397_v25 = vmul.f32 %v6329_v4, %v3096_v50  ;;  %v3696_v42 = vadd.f32 %v6341_v7, %v3395_v53  ;;  %v3116_v53 = vld [vmem:[#allocation12 + $0x790] sm:$0xff] }
 0x43d   : > { %3970 = vst [vmem:[#allocation12 + $0x640] sm:$0xff] %v3676_v27  ;;  %v3398_v27 = vmul.f32 %v6331_v22, %v3097_v49  ;;  %v3697_v40 = vadd.f32 %v6343_v30, %v3396_v34  ;;  %v3117_v34 = vld [vmem:[#allocation12 + $0x798] sm:$0xff] }
 0x43e   : > { %3971 = vst [vmem:[#allocation12 + $0x648] sm:$0xff] %v3677_v23  ;;  %v3399_v23 = vmul.f32 %v6333_v1, %v3098_v20  ;;  %v3698_v5 = vadd.f32 %v6339_v41, %v3397_v25  ;;  %v3118_v25 = vld [vmem:[#allocation12 + $0x7a0] sm:$0xff] }
 0x43f   : > { %3972 = vst [vmem:[#allocation12 + $0x650] sm:$0xff] %v3678_v52  ;;  %v3400_v52 = vmul.f32 %v6329_v4, %v3099_v62  ;;  %v3699_v63 = vadd.f32 %v6341_v7, %v3398_v27  ;;  %v3119_v27 = vld [vmem:[#allocation12 + $0x7a8] sm:$0xff] }
 0x440   : > { %3973 = vst [vmem:[#allocation12 + $0x658] sm:$0xff] %v3679_v18  ;;  %v3401_v18 = vmul.f32 %v6331_v22, %v3100_v57  ;;  %v3700_v43 = vadd.f32 %v6343_v30, %v3399_v23  ;;  %v3120_v23 = vld [vmem:[#allocation12 + $0x7b0] sm:$0xff] }
 0x441   : > { %3974 = vst [vmem:[#allocation12 + $0x660] sm:$0xff] %v3680_v13  ;;  %v3402_v13 = vmul.f32 %v6333_v1, %v3101_v58  ;;  %v3701_v19 = vadd.f32 %v6339_v41, %v3400_v52  ;;  %v3121_v52 = vld [vmem:[#allocation12 + $0x7b8] sm:$0xff] }
 0x442   : > { %3975 = vst [vmem:[#allocation12 + $0x668] sm:$0xff] %v3681_v21  ;;  %v3403_v21 = vmul.f32 %v6329_v4, %v3102_v16  ;;  %v3702_v46 = vadd.f32 %v6341_v7, %v3401_v18  ;;  %v3122_v18 = vld [vmem:[#allocation12 + $0x7c0] sm:$0xff] }
 0x443   : > { %3976 = vst [vmem:[#allocation12 + $0x670] sm:$0xff] %v3682_v55  ;;  %v3404_v55 = vmul.f32 %v6331_v22, %v3103_v48  ;;  %v3703_v15 = vadd.f32 %v6343_v30, %v3402_v13  ;;  %v3123_v13 = vld [vmem:[#allocation12 + $0x7c8] sm:$0xff] }
 0x444   : > { %3977 = vst [vmem:[#allocation12 + $0x678] sm:$0xff] %v3683_v6  ;;  %v3405_v6 = vmul.f32 %v6333_v1, %v3104_v47  ;;  %v3704_v51 = vadd.f32 %v6339_v41, %v3403_v21  ;;  %v3124_v21 = vld [vmem:[#allocation12 + $0x7d0] sm:$0xff] }
 0x445   : > { %3978 = vst [vmem:[#allocation12 + $0x680] sm:$0xff] %v3684_v2  ;;  %v3406_v2 = vmul.f32 %v6329_v4, %v3105_v37  ;;  %v3705_v31 = vadd.f32 %v6341_v7, %v3404_v55  ;;  %v3125_v55 = vld [vmem:[#allocation12 + $0x7d8] sm:$0xff] }
 0x446   : > { %3979 = vst [vmem:[#allocation12 + $0x688] sm:$0xff] %v3685_v60  ;;  %v3407_v60 = vmul.f32 %v6331_v22, %v3106_v14  ;;  %v3706_v24 = vadd.f32 %v6343_v30, %v3405_v6  ;;  %v3126_v6 = vld [vmem:[#allocation12 + $0x7e0] sm:$0xff] }
 0x447   : > { %3980 = vst [vmem:[#allocation12 + $0x690] sm:$0xff] %v3686_v8  ;;  %v3408_v8 = vmul.f32 %v6333_v1, %v3107_v45  ;;  %v3707_v28 = vadd.f32 %v6339_v41, %v3406_v2  ;;  %v3127_v2 = vld [vmem:[#allocation12 + $0x7e8] sm:$0xff] }
 0x448   : > { %3981 = vst [vmem:[#allocation12 + $0x698] sm:$0xff] %v3687_v0  ;;  %v3409_v0 = vmul.f32 %v6329_v4, %v3108_v56  ;;  %v3708_v38 = vadd.f32 %v6341_v7, %v3407_v60  ;;  %v3128_v60 = vld [vmem:[#allocation12 + $0x7f0] sm:$0xff] }
 0x449   : > { %3982 = vst [vmem:[#allocation12 + $0x6a0] sm:$0xff] %v3688_v26  ;;  %v3410_v26 = vmul.f32 %v6331_v22, %v3109_v33  ;;  %v3709_v54 = vadd.f32 %v6343_v30, %v3408_v8  ;;  %v3129_v8 = vld [vmem:[#allocation12 + $0x7f8] sm:$0xff] }
 0x44a   : > { %3983 = vst [vmem:[#allocation12 + $0x6a8] sm:$0xff] %v3689_v44  ;;  %v3411_v44 = vmul.f32 %v6333_v1, %v3110_v11  ;;  %v3710_v59 = vadd.f32 %v6339_v41, %v3409_v0  ;;  %v3130_v0 = vld [vmem:[#allocation12 + $0x800] sm:$0xff] }
 0x44b   : > { %3984 = vst [vmem:[#allocation12 + $0x6b0] sm:$0xff] %v3690_v9  ;;  %v3412_v9 = vmul.f32 %v6329_v4, %v3111_v35  ;;  %v3711_v50 = vadd.f32 %v6341_v7, %v3410_v26  ;;  %v3131_v26 = vld [vmem:[#allocation12 + $0x808] sm:$0xff] }
 0x44c   : > { %3985 = vst [vmem:[#allocation12 + $0x6b8] sm:$0xff] %v3691_v36  ;;  %v3413_v36 = vmul.f32 %v6331_v22, %v3112_v17  ;;  %v3712_v49 = vadd.f32 %v6343_v30, %v3411_v44  ;;  %v3132_v44 = vld [vmem:[#allocation12 + $0x810] sm:$0xff] }
 0x44d   : > { %3986 = vst [vmem:[#allocation12 + $0x6c0] sm:$0xff] %v3692_v39  ;;  %v3414_v39 = vmul.f32 %v6333_v1, %v3113_v61  ;;  %v3713_v20 = vadd.f32 %v6339_v41, %v3412_v9  ;;  %v3133_v9 = vld [vmem:[#allocation12 + $0x818] sm:$0xff] }
 0x44e   : > { %3987 = vst [vmem:[#allocation12 + $0x6c8] sm:$0xff] %v3693_v29  ;;  %v3415_v29 = vmul.f32 %v6329_v4, %v3114_v3  ;;  %v3714_v62 = vadd.f32 %v6341_v7, %v3413_v36  ;;  %v3134_v36 = vld [vmem:[#allocation12 + $0x820] sm:$0xff] }
 0x44f   : > { %3988 = vst [vmem:[#allocation12 + $0x6d0] sm:$0xff] %v3694_v10  ;;  %v3416_v10 = vmul.f32 %v6331_v22, %v3115_v32  ;;  %v3715_v57 = vadd.f32 %v6343_v30, %v3414_v39  ;;  %v3135_v39 = vld [vmem:[#allocation12 + $0x828] sm:$0xff] }
 0x450   : > { %3989 = vst [vmem:[#allocation12 + $0x6d8] sm:$0xff] %v3695_v12  ;;  %v3417_v12 = vmul.f32 %v6333_v1, %v3116_v53  ;;  %v3716_v58 = vadd.f32 %v6339_v41, %v3415_v29  ;;  %v3136_v29 = vld [vmem:[#allocation12 + $0x830] sm:$0xff] }
 0x451   : > { %3990 = vst [vmem:[#allocation12 + $0x6e0] sm:$0xff] %v3696_v42  ;;  %v3418_v42 = vmul.f32 %v6329_v4, %v3117_v34  ;;  %v3717_v16 = vadd.f32 %v6341_v7, %v3416_v10  ;;  %v3137_v10 = vld [vmem:[#allocation12 + $0x838] sm:$0xff] }
 0x452   : > { %3991 = vst [vmem:[#allocation12 + $0x6e8] sm:$0xff] %v3697_v40  ;;  %v3419_v40 = vmul.f32 %v6331_v22, %v3118_v25  ;;  %v3718_v48 = vadd.f32 %v6343_v30, %v3417_v12  ;;  %v3138_v12 = vld [vmem:[#allocation12 + $0x840] sm:$0xff] }
 0x453   : > { %3992 = vst [vmem:[#allocation12 + $0x6f0] sm:$0xff] %v3698_v5  ;;  %v3420_v5 = vmul.f32 %v6333_v1, %v3119_v27  ;;  %v3719_v47 = vadd.f32 %v6339_v41, %v3418_v42  ;;  %v3139_v42 = vld [vmem:[#allocation12 + $0x848] sm:$0xff] }
 0x454   : > { %3993 = vst [vmem:[#allocation12 + $0x6f8] sm:$0xff] %v3699_v63  ;;  %v3421_v63 = vmul.f32 %v6329_v4, %v3120_v23  ;;  %v3720_v37 = vadd.f32 %v6341_v7, %v3419_v40  ;;  %v3140_v40 = vld [vmem:[#allocation12 + $0x850] sm:$0xff] }
 0x455   : > { %3994 = vst [vmem:[#allocation12 + $0x700] sm:$0xff] %v3700_v43  ;;  %v3422_v43 = vmul.f32 %v6331_v22, %v3121_v52  ;;  %v3721_v14 = vadd.f32 %v6343_v30, %v3420_v5  ;;  %v3141_v5 = vld [vmem:[#allocation12 + $0x858] sm:$0xff] }
 0x456   : > { %3995 = vst [vmem:[#allocation12 + $0x708] sm:$0xff] %v3701_v19  ;;  %v3423_v19 = vmul.f32 %v6333_v1, %v3122_v18  ;;  %v3722_v45 = vadd.f32 %v6339_v41, %v3421_v63  ;;  %v3142_v63 = vld [vmem:[#allocation12 + $0x860] sm:$0xff] }
 0x457   : > { %3996 = vst [vmem:[#allocation12 + $0x710] sm:$0xff] %v3702_v46  ;;  %v3424_v46 = vmul.f32 %v6329_v4, %v3123_v13  ;;  %v3723_v56 = vadd.f32 %v6341_v7, %v3422_v43  ;;  %v3143_v43 = vld [vmem:[#allocation12 + $0x868] sm:$0xff] }
 0x458   : > { %3997 = vst [vmem:[#allocation12 + $0x718] sm:$0xff] %v3703_v15  ;;  %v3425_v15 = vmul.f32 %v6331_v22, %v3124_v21  ;;  %v3724_v33 = vadd.f32 %v6343_v30, %v3423_v19  ;;  %v3144_v19 = vld [vmem:[#allocation12 + $0x870] sm:$0xff] }
 0x459   : > { %3998 = vst [vmem:[#allocation12 + $0x720] sm:$0xff] %v3704_v51  ;;  %v3426_v51 = vmul.f32 %v6333_v1, %v3125_v55  ;;  %v3725_v11 = vadd.f32 %v6339_v41, %v3424_v46  ;;  %v3145_v46 = vld [vmem:[#allocation12 + $0x878] sm:$0xff] }
 0x45a   : > { %3999 = vst [vmem:[#allocation12 + $0x728] sm:$0xff] %v3705_v31  ;;  %v3427_v31 = vmul.f32 %v6329_v4, %v3126_v6  ;;  %v3726_v35 = vadd.f32 %v6341_v7, %v3425_v15  ;;  %v3146_v15 = vld [vmem:[#allocation12 + $0x880] sm:$0xff] }
 0x45b   : > { %4000 = vst [vmem:[#allocation12 + $0x730] sm:$0xff] %v3706_v24  ;;  %v3428_v24 = vmul.f32 %v6331_v22, %v3127_v2  ;;  %v3727_v17 = vadd.f32 %v6343_v30, %v3426_v51  ;;  %v3147_v51 = vld [vmem:[#allocation12 + $0x888] sm:$0xff] }
 0x45c   : > { %4001 = vst [vmem:[#allocation12 + $0x738] sm:$0xff] %v3707_v28  ;;  %v3429_v28 = vmul.f32 %v6333_v1, %v3128_v60  ;;  %v3728_v61 = vadd.f32 %v6339_v41, %v3427_v31  ;;  %v3148_v31 = vld [vmem:[#allocation12 + $0x890] sm:$0xff] }
 0x45d   : > { %4002 = vst [vmem:[#allocation12 + $0x740] sm:$0xff] %v3708_v38  ;;  %v3430_v38 = vmul.f32 %v6329_v4, %v3129_v8  ;;  %v3729_v3 = vadd.f32 %v6341_v7, %v3428_v24  ;;  %v3149_v24 = vld [vmem:[#allocation12 + $0x898] sm:$0xff] }
 0x45e   : > { %4003 = vst [vmem:[#allocation12 + $0x748] sm:$0xff] %v3709_v54  ;;  %v3431_v54 = vmul.f32 %v6331_v22, %v3130_v0  ;;  %v3730_v32 = vadd.f32 %v6343_v30, %v3429_v28  ;;  %v3150_v28 = vld [vmem:[#allocation12 + $0x8a0] sm:$0xff] }
 0x45f   : > { %4004 = vst [vmem:[#allocation12 + $0x750] sm:$0xff] %v3710_v59  ;;  %v3432_v59 = vmul.f32 %v6333_v1, %v3131_v26  ;;  %v3731_v53 = vadd.f32 %v6339_v41, %v3430_v38  ;;  %v3151_v38 = vld [vmem:[#allocation12 + $0x8a8] sm:$0xff] }
 0x460   : > { %4005 = vst [vmem:[#allocation12 + $0x758] sm:$0xff] %v3711_v50  ;;  %v3433_v50 = vmul.f32 %v6329_v4, %v3132_v44  ;;  %v3732_v34 = vadd.f32 %v6341_v7, %v3431_v54  ;;  %v3152_v54 = vld [vmem:[#allocation12 + $0x8b0] sm:$0xff] }
 0x461   : > { %4006 = vst [vmem:[#allocation12 + $0x760] sm:$0xff] %v3712_v49  ;;  %v3434_v49 = vmul.f32 %v6331_v22, %v3133_v9  ;;  %v3733_v25 = vadd.f32 %v6343_v30, %v3432_v59  ;;  %v3153_v59 = vld [vmem:[#allocation12 + $0x8b8] sm:$0xff] }
 0x462   : > { %4007 = vst [vmem:[#allocation12 + $0x768] sm:$0xff] %v3713_v20  ;;  %v3435_v20 = vmul.f32 %v6333_v1, %v3134_v36  ;;  %v3734_v27 = vadd.f32 %v6339_v41, %v3433_v50  ;;  %v3154_v50 = vld [vmem:[#allocation12 + $0x8c0] sm:$0xff] }
 0x463   : > { %4008 = vst [vmem:[#allocation12 + $0x770] sm:$0xff] %v3714_v62  ;;  %v3436_v62 = vmul.f32 %v6329_v4, %v3135_v39  ;;  %v3735_v23 = vadd.f32 %v6341_v7, %v3434_v49  ;;  %v3155_v49 = vld [vmem:[#allocation12 + $0x8c8] sm:$0xff] }
 0x464   : > { %4009 = vst [vmem:[#allocation12 + $0x778] sm:$0xff] %v3715_v57  ;;  %v3437_v57 = vmul.f32 %v6331_v22, %v3136_v29  ;;  %v3736_v52 = vadd.f32 %v6343_v30, %v3435_v20  ;;  %v3156_v20 = vld [vmem:[#allocation12 + $0x8d0] sm:$0xff] }
 0x465   : > { %4010 = vst [vmem:[#allocation12 + $0x780] sm:$0xff] %v3716_v58  ;;  %v3438_v58 = vmul.f32 %v6333_v1, %v3137_v10  ;;  %v3737_v18 = vadd.f32 %v6339_v41, %v3436_v62  ;;  %v3157_v62 = vld [vmem:[#allocation12 + $0x8d8] sm:$0xff] }
 0x466   : > { %4011 = vst [vmem:[#allocation12 + $0x788] sm:$0xff] %v3717_v16  ;;  %v3439_v16 = vmul.f32 %v6329_v4, %v3138_v12  ;;  %v3738_v13 = vadd.f32 %v6341_v7, %v3437_v57  ;;  %v3158_v57 = vld [vmem:[#allocation12 + $0x8e0] sm:$0xff] }
 0x467   : > { %4012 = vst [vmem:[#allocation12 + $0x790] sm:$0xff] %v3718_v48  ;;  %v3440_v48 = vmul.f32 %v6331_v22, %v3139_v42  ;;  %v3739_v21 = vadd.f32 %v6343_v30, %v3438_v58  ;;  %v3159_v58 = vld [vmem:[#allocation12 + $0x8e8] sm:$0xff] }
 0x468   : > { %4013 = vst [vmem:[#allocation12 + $0x798] sm:$0xff] %v3719_v47  ;;  %v3441_v47 = vmul.f32 %v6333_v1, %v3140_v40  ;;  %v3740_v55 = vadd.f32 %v6339_v41, %v3439_v16  ;;  %v3160_v16 = vld [vmem:[#allocation12 + $0x8f0] sm:$0xff] }
 0x469   : > { %4014 = vst [vmem:[#allocation12 + $0x7a0] sm:$0xff] %v3720_v37  ;;  %v3442_v37 = vmul.f32 %v6329_v4, %v3141_v5  ;;  %v3741_v6 = vadd.f32 %v6341_v7, %v3440_v48  ;;  %v3161_v48 = vld [vmem:[#allocation12 + $0x8f8] sm:$0xff] }
 0x46a   : > { %4015 = vst [vmem:[#allocation12 + $0x7a8] sm:$0xff] %v3721_v14  ;;  %v3443_v14 = vmul.f32 %v6331_v22, %v3142_v63  ;;  %v3742_v2 = vadd.f32 %v6343_v30, %v3441_v47  ;;  %v3162_v47 = vld [vmem:[#allocation12 + $0x900] sm:$0xff] }
 0x46b   : > { %4016 = vst [vmem:[#allocation12 + $0x7b0] sm:$0xff] %v3722_v45  ;;  %v3444_v45 = vmul.f32 %v6333_v1, %v3143_v43  ;;  %v3743_v60 = vadd.f32 %v6339_v41, %v3442_v37  ;;  %v3163_v37 = vld [vmem:[#allocation12 + $0x908] sm:$0xff] }
 0x46c   : > { %4017 = vst [vmem:[#allocation12 + $0x7b8] sm:$0xff] %v3723_v56  ;;  %v3445_v56 = vmul.f32 %v6329_v4, %v3144_v19  ;;  %v3744_v8 = vadd.f32 %v6341_v7, %v3443_v14  ;;  %v3164_v14 = vld [vmem:[#allocation12 + $0x910] sm:$0xff] }
 0x46d   : > { %4018 = vst [vmem:[#allocation12 + $0x7c0] sm:$0xff] %v3724_v33  ;;  %v3446_v33 = vmul.f32 %v6331_v22, %v3145_v46  ;;  %v3745_v0 = vadd.f32 %v6343_v30, %v3444_v45  ;;  %v3165_v45 = vld [vmem:[#allocation12 + $0x918] sm:$0xff] }
 0x46e   : > { %4019 = vst [vmem:[#allocation12 + $0x7c8] sm:$0xff] %v3725_v11  ;;  %v3447_v11 = vmul.f32 %v6333_v1, %v3146_v15  ;;  %v3746_v26 = vadd.f32 %v6339_v41, %v3445_v56  ;;  %v3166_v56 = vld [vmem:[#allocation12 + $0x920] sm:$0xff] }
 0x46f   : > { %4020 = vst [vmem:[#allocation12 + $0x7d0] sm:$0xff] %v3726_v35  ;;  %v3448_v35 = vmul.f32 %v6329_v4, %v3147_v51  ;;  %v3747_v44 = vadd.f32 %v6341_v7, %v3446_v33  ;;  %v3167_v33 = vld [vmem:[#allocation12 + $0x928] sm:$0xff] }
 0x470   : > { %4021 = vst [vmem:[#allocation12 + $0x7d8] sm:$0xff] %v3727_v17  ;;  %v3449_v17 = vmul.f32 %v6331_v22, %v3148_v31  ;;  %v3748_v9 = vadd.f32 %v6343_v30, %v3447_v11 }
 0x471   : > { %4022 = vst [vmem:[#allocation12 + $0x7e0] sm:$0xff] %v3728_v61  ;;  %v3450_v61 = vmul.f32 %v6333_v1, %v3149_v24  ;;  %v3749_v36 = vadd.f32 %v6339_v41, %v3448_v35  ;;  %v3467_v24 = vmul.f32 %v6331_v22, %v3166_v56  ;;  %v3468_v35 = vmul.f32 %v6333_v1, %v3167_v33 }
 0x472   : > { %4023 = vst [vmem:[#allocation12 + $0x7e8] sm:$0xff] %v3729_v3  ;;  %v3451_v3 = vmul.f32 %v6329_v4, %v3150_v28  ;;  %v3750_v39 = vadd.f32 %v6341_v7, %v3449_v17 }
 0x473   : > { %4024 = vst [vmem:[#allocation12 + $0x7f0] sm:$0xff] %v3730_v32  ;;  %v3452_v32 = vmul.f32 %v6331_v22, %v3151_v38  ;;  %v3751_v29 = vadd.f32 %v6343_v30, %v3450_v61  ;;  %v3768_v17 = vadd.f32 %v6341_v7, %v3467_v24 }
 0x474   : > { %4025 = vst [vmem:[#allocation12 + $0x7f8] sm:$0xff] %v3731_v53  ;;  %v3453_v53 = vmul.f32 %v6333_v1, %v3152_v54  ;;  %v3752_v10 = vadd.f32 %v6339_v41, %v3451_v3 }
 0x475   : > { %4026 = vst [vmem:[#allocation12 + $0x800] sm:$0xff] %v3732_v34  ;;  %v3454_v34 = vmul.f32 %v6329_v4, %v3153_v59  ;;  %v3753_v12 = vadd.f32 %v6341_v7, %v3452_v32 }
 0x476   : > { %4027 = vst [vmem:[#allocation12 + $0x808] sm:$0xff] %v3733_v25  ;;  %v3455_v25 = vmul.f32 %v6331_v22, %v3154_v50  ;;  %v3754_v42 = vadd.f32 %v6343_v30, %v3453_v53 }
 0x477   : > { %4028 = vst [vmem:[#allocation12 + $0x810] sm:$0xff] %v3734_v27  ;;  %v3456_v27 = vmul.f32 %v6333_v1, %v3155_v49  ;;  %v3755_v40 = vadd.f32 %v6339_v41, %v3454_v34 }
 0x478   : > { %4029 = vst [vmem:[#allocation12 + $0x818] sm:$0xff] %v3735_v23  ;;  %v3457_v23 = vmul.f32 %v6329_v4, %v3156_v20  ;;  %v3756_v5 = vadd.f32 %v6341_v7, %v3455_v25 }
 0x479   : > { %4030 = vst [vmem:[#allocation12 + $0x820] sm:$0xff] %v3736_v52  ;;  %v3458_v52 = vmul.f32 %v6331_v22, %v3157_v62  ;;  %v3757_v63 = vadd.f32 %v6343_v30, %v3456_v27 }
 0x47a   : > { %4031 = vst [vmem:[#allocation12 + $0x828] sm:$0xff] %v3737_v18  ;;  %v3459_v18 = vmul.f32 %v6333_v1, %v3158_v57  ;;  %v3758_v43 = vadd.f32 %v6339_v41, %v3457_v23 }
 0x47b   : > { %4032 = vst [vmem:[#allocation12 + $0x830] sm:$0xff] %v3738_v13  ;;  %v3460_v13 = vmul.f32 %v6329_v4, %v3159_v58  ;;  %v3759_v19 = vadd.f32 %v6341_v7, %v3458_v52 }
 0x47c   : > { %4033 = vst [vmem:[#allocation12 + $0x838] sm:$0xff] %v3739_v21  ;;  %v3461_v21 = vmul.f32 %v6331_v22, %v3160_v16  ;;  %v3760_v46 = vadd.f32 %v6343_v30, %v3459_v18 }
 0x47d   : > { %4034 = vst [vmem:[#allocation12 + $0x840] sm:$0xff] %v3740_v55  ;;  %v3462_v55 = vmul.f32 %v6333_v1, %v3161_v48  ;;  %v3761_v15 = vadd.f32 %v6339_v41, %v3460_v13 }
 0x47e   : > { %4035 = vst [vmem:[#allocation12 + $0x848] sm:$0xff] %v3741_v6  ;;  %v3463_v6 = vmul.f32 %v6329_v4, %v3162_v47  ;;  %v3762_v51 = vadd.f32 %v6341_v7, %v3461_v21 }
 0x47f   : > { %4036 = vst [vmem:[#allocation12 + $0x850] sm:$0xff] %v3742_v2  ;;  %v3464_v2 = vmul.f32 %v6331_v22, %v3163_v37  ;;  %v3763_v31 = vadd.f32 %v6343_v30, %v3462_v55 }
 0x480   : > { %4037 = vst [vmem:[#allocation12 + $0x858] sm:$0xff] %v3743_v60  ;;  %v3465_v60 = vmul.f32 %v6333_v1, %v3164_v14  ;;  %v3764_v11 = vadd.f32 %v6339_v41, %v3463_v6 }
 0x481   : > { %4038 = vst [vmem:[#allocation12 + $0x860] sm:$0xff] %v3744_v8  ;;  %v3466_v8 = vmul.f32 %v6329_v4, %v3165_v45  ;;  %v3769_v4 = vadd.f32 %v6343_v30, %v3468_v35 }
 0x482   : > { %4039 = vst [vmem:[#allocation12 + $0x868] sm:$0xff] %v3745_v0  ;;  %v3765_v0 = vadd.f32 %v6341_v7, %v3464_v2  ;;  %v3766_v28 = vadd.f32 %v6343_v30, %v3465_v60 }
 0x483   : > { %4040 = vst [vmem:[#allocation12 + $0x870] sm:$0xff] %v3746_v26  ;;  %v3767_v26 = vadd.f32 %v6339_v41, %v3466_v8 }
 0x484   : > { %4041 = vst [vmem:[#allocation12 + $0x878] sm:$0xff] %v3747_v44 }
 0x485   : > { %4042 = vst [vmem:[#allocation12 + $0x880] sm:$0xff] %v3748_v9 }
 0x486   : > { %4043 = vst [vmem:[#allocation12 + $0x888] sm:$0xff] %v3749_v36 }
 0x487   : > { %4044 = vst [vmem:[#allocation12 + $0x890] sm:$0xff] %v3750_v39 }
 0x488   : > { %4045 = vst [vmem:[#allocation12 + $0x898] sm:$0xff] %v3751_v29 }
 0x489   : > { %4046 = vst [vmem:[#allocation12 + $0x8a0] sm:$0xff] %v3752_v10 }
 0x48a   : > { %4047 = vst [vmem:[#allocation12 + $0x8a8] sm:$0xff] %v3753_v12 }
 0x48b   : > { %4048 = vst [vmem:[#allocation12 + $0x8b0] sm:$0xff] %v3754_v42 }
 0x48c   : > { %4049 = vst [vmem:[#allocation12 + $0x8b8] sm:$0xff] %v3755_v40 }
 0x48d   : > { %4050 = vst [vmem:[#allocation12 + $0x8c0] sm:$0xff] %v3756_v5 }
 0x48e   : > { %4051 = vst [vmem:[#allocation12 + $0x8c8] sm:$0xff] %v3757_v63 }
 0x48f   : > { %4052 = vst [vmem:[#allocation12 + $0x8d0] sm:$0xff] %v3758_v43 }
 0x490   : > { %4053 = vst [vmem:[#allocation12 + $0x8d8] sm:$0xff] %v3759_v19 }
 0x491   : > { %4054 = vst [vmem:[#allocation12 + $0x8e0] sm:$0xff] %v3760_v46 }
 0x492   : > { %4055 = vst [vmem:[#allocation12 + $0x8e8] sm:$0xff] %v3761_v15 }
 0x493   : > { %4056 = vst [vmem:[#allocation12 + $0x8f0] sm:$0xff] %v3762_v51 }
 0x494   : > { %4057 = vst [vmem:[#allocation12 + $0x8f8] sm:$0xff] %v3763_v31 }
 0x495   : > { %4058 = vst [vmem:[#allocation12 + $0x900] sm:$0xff] %v3764_v11 }
 0x496   : > { %4059 = vst [vmem:[#allocation12 + $0x908] sm:$0xff] %v3765_v0 }
 0x497   : > { %4060 = vst [vmem:[#allocation12 + $0x910] sm:$0xff] %v3766_v28 }
 0x498   : > { %4061 = vst [vmem:[#allocation12 + $0x918] sm:$0xff] %v3767_v26 }
 0x499   : > { %4062 = vst [vmem:[#allocation12 + $0x920] sm:$0xff] %v3768_v17 }
 0x49a   : > { %4063 = vst [vmem:[#allocation12 + $0x928] sm:$0xff] %v3769_v4 }
 0x49b PF: > { %p5327_p4 = scmp.eq.s32.totalorder %s5625_s19, 6  ;;  %s5578_s5 = smov [#allocation12]  }
 0x49c   : > { %s4069_s6 = sshll.u32 %s5578_s5, 4  ;;  %s4071_s9 = sshll.u32 %s6950_s4, 4  ;;  %s4070_s6 = int_to_ptr.vmem [resolvable:$true] %s4069_s6  ;;  %s4072_s9 = int_to_ptr.hbm [resolvable:$true] %s4071_s9 }
 0x49d   : > { %s5579_s10 = smov 384   ;;  %s5580_s18 = smov 24  }
 0x49e   : > { %5302 = dma.vmem_to_hbm [thread:$0]  (%p5327_p4), %s4070_s6, 37632, %s4072_s9, [#allocation6], %s5579_s10, %s5579_s10, %s5580_s18  }
 0x49f   : > { %5551 = dma.done.wait (%p5327_p4), [#allocation6], 37632  }
 0x4a0   : > { %5553 = vsyncadd (%p5327_p4), [#allocation6], 4294929664 }
 0x4a1 PF: > { %p17_p5 = scmp.ge.s32.totalorder %s5666_s14, 9   ;;  %s7047_s15 = smov %s5560_s16 }
 0x4a2   : > { %s7048_s16 = smov %s5564_s17  ;;  %s7049_s17 = smov %s5677_s23 }
 0x4a3   : > { %s7050_s18 = smov %s5666_s14  ;;  %19 = sbr.rel (!%p17_p5) target bundleno = 6 (0x6), region = 94 }
 0x4a8   :  { %4088 = vsyncpa [#allocation5], 1 }
 0x4a9   :  { %4090 = vsyncpa [#allocation5 + $0x1], 1 }
 0x4aa   :  { %4091 = vsyncpa [#allocation8], 1 }
 0x4ab   :  { %4092 = vsyncpa [#allocation11], 1 }
 0x4ac   :  { %4093 = vsyncpa [#allocation6], 1 }
 0x4ad   :  { %4095 = vsyncpa [#allocation6 + $0x1], 1 }

</bundles_post_ra>
